<compile_context>
chip_gen: v7x
topology: tpu7x:2x2x1
jax: 0.10.0
libtpu: 0.0.40
codegen_flags: <defaults>
</compile_context>

<pallas_src>
import functools
import math

import jax
import jax.numpy as jnp
from jax.experimental import pallas as pl
from jax.experimental.pallas import tpu as pltpu


def _sigmoid(x):
    # Exact identity sigmoid(x) = 0.5 * (1 + tanh(x/2)); single EUP pass per call.
    return 0.5 * jnp.tanh(0.5 * x) + 0.5


# ----------------------------- Pallas kernel ------------------------------- #

def _bilstm_kernel(*refs, T, B, H, L, D):
    """Fused multi-layer (bi)directional LSTM.

    refs = (x_ref, [wih, whh, b] * L, out_ref, hn_ref, cn_ref)
      wih : (Fin, 4*D*H)  bf16, per-gate direction-interleaved columns
      whh : (D*H, 4*D*H)  bf16, block-diagonal over directions
      b   : (1, 4*D*H)    f32, b_ih + b_hh, interleaved like wih
    """
    nparam = 3 * L
    x_ref = refs[0]
    p = refs[1:1 + nparam]
    out_ref, hn_ref, cn_ref = refs[1 + nparam:]

    HW = D * H          # merged hidden width (128 when bidirectional, H=64)
    G = 4 * HW          # merged gate width (512)

    if D == 2:
        # Lane mask selecting the forward half of each 2H-wide gate block. Hoisted.
        lane = jax.lax.broadcasted_iota(jnp.int32, (B, G), 1)
        fwd_mask = (lane % HW) < H

    for l in range(L):
        if l == 0:
            layer_in = x_ref[...].astype(jnp.float32)          # (T, B, Fin)
        else:
            layer_in = out_ref[...]                            # (T, B, HW) f32
        Fin = layer_in.shape[-1]

        wih = p[3 * l][...]                                    # (Fin, G) bf16, read once
        whh = p[3 * l + 1][...]                                # (HW,  G) bf16, read once
        b = p[3 * l + 2][...]                                  # (1,   G) f32,  read once

        # One MXU matmul covering all timesteps and BOTH directions of this layer.
        x2d = layer_in.reshape(T * B, Fin).astype(jnp.bfloat16)
        xp = (jnp.dot(x2d, wih, preferred_element_type=jnp.float32)
              + b).reshape(T, B, G)

        h = jnp.zeros((B, HW), jnp.float32)                    # [h_fwd | h_bwd]
        c = jnp.zeros((B, HW), jnp.float32)

        # Static unroll: fine at small T (see TODO at top for large T).
        for t in range(T):
            if D == 2:
                # fwd gate columns use x(t); bwd gate columns use x(T-1-t).
                gx = jnp.where(fwd_mask, xp[t], xp[T - 1 - t])
            else:
                gx = xp[t]
            g = gx + jnp.dot(h.astype(jnp.bfloat16), whh,
                             preferred_element_type=jnp.float32)
            i = _sigmoid(g[:, 0 * HW:1 * HW])                  # 128-lane aligned slices
            f = _sigmoid(g[:, 1 * HW:2 * HW])
            gg = jnp.tanh(g[:, 2 * HW:3 * HW])
            o = _sigmoid(g[:, 3 * HW:4 * HW])
            c = f * c + i * gg
            h = o * jnp.tanh(c)

            # Direct stores (off the recurrent dependency chain).
            if D == 2:
                out_ref[t, :, 0:H] = h[:, 0:H]                 # forward, time t
                out_ref[T - 1 - t, :, H:HW] = h[:, H:HW]       # backward, time T-1-t
            else:
                out_ref[t] = h

        for d in range(D):
            hn_ref[l * D + d] = h[:, d * H:(d + 1) * H]
            cn_ref[l * D + d] = c[:, d * H:(d + 1) * H]


# ----------------------------- wrapper -------------------------------------- #

def _full_spec(shape):
    nd = len(shape)
    return pl.BlockSpec(shape, lambda i, _nd=nd: (0,) * _nd)


def temporal_lstm_forward(fused, x):
    """x: (T, B, in_size) — batch_first=False, like the PyTorch module."""
    T, B, _ = x.shape
    H = fused['hidden_size']
    L = fused['num_layers']
    D = 2 if fused['bidirectional'] else 1

    inputs = [x]
    for l in range(L):
        inputs += [fused[f'l{l}_wih'], fused[f'l{l}_whh'], fused[f'l{l}_b']]

    out_shapes = (
        jax.ShapeDtypeStruct((T, B, D * H), jnp.float32),      # output
        jax.ShapeDtypeStruct((L * D, B, H), jnp.float32),      # h_n
        jax.ShapeDtypeStruct((L * D, B, H), jnp.float32),      # c_n
    )

    kernel = functools.partial(_bilstm_kernel, T=T, B=B, H=H, L=L, D=D)
    return pl.pallas_call(
        kernel,
        out_shape=out_shapes,
        grid=(1,),
        in_specs=[_full_spec(a.shape) for a in inputs],
        out_specs=tuple(_full_spec(s.shape) for s in out_shapes),
        compiler_params=pltpu.CompilerParams(dimension_semantics=("arbitrary",)),
    )(*inputs)


# ----------------------------- parameters ----------------------------------- #

def init_params(key, in_size, hidden_size, num_layers, bidirectional=True):
    """PyTorch nn.LSTM default init: U(-1/sqrt(H), 1/sqrt(H)) for every parameter.
    Weights stored pre-transposed (Fin, 4H); bias stored as b_ih + b_hh."""
    D = 2 if bidirectional else 1
    bound = 1.0 / math.sqrt(hidden_size)
    p = {'hidden_size': hidden_size, 'num_layers': num_layers,
         'bidirectional': bidirectional}
    for l in range(num_layers):
        fin = in_size if l == 0 else D * hidden_size
        for d in range(D):
            key, k1, k2, k3, k4 = jax.random.split(key, 5)
            name = f'l{l}_d{d}'
            p[name + '_wih_t'] = jax.random.uniform(
                k1, (fin, 4 * hidden_size), jnp.float32, -bound, bound)
            p[name + '_whh_t'] = jax.random.uniform(
                k2, (hidden_size, 4 * hidden_size), jnp.float32, -bound, bound)
            b_ih = jax.random.uniform(
                k3, (1, 4 * hidden_size), jnp.float32, -bound, bound)
            b_hh = jax.random.uniform(
                k4, (1, 4 * hidden_size), jnp.float32, -bound, bound)
            p[name + '_b'] = b_ih + b_hh
    return p


def prepare_fused_params(params):
    """Build the kernel's fused layout: per-gate direction-interleaved W_ih / bias,
    block-diagonal W_hh over directions, weights in bf16 (bias stays f32)."""
    H = params['hidden_size']
    L = params['num_layers']
    D = 2 if params['bidirectional'] else 1
    fused = {'hidden_size': H, 'num_layers': L,
             'bidirectional': params['bidirectional']}

    def interleave(a, b):  # (r, 4H), (r, 4H) -> (r, 8H) per-gate [fwd|bwd]
        r = a.shape[0]
        return jnp.concatenate(
            [a.reshape(r, 4, H), b.reshape(r, 4, H)], axis=2).reshape(r, 8 * H)

    for l in range(L):
        wih_f = params[f'l{l}_d0_wih_t']
        whh_f = params[f'l{l}_d0_whh_t']
        b_f = params[f'l{l}_d0_b']
        if D == 2:
            wih_b = params[f'l{l}_d1_wih_t']
            whh_b = params[f'l{l}_d1_whh_t']
            b_b = params[f'l{l}_d1_b']
            wih = interleave(wih_f, wih_b)
            b = interleave(b_f, b_b)
            z = jnp.zeros((H, 4, H), jnp.float32)
            top = jnp.concatenate([whh_f.reshape(H, 4, H), z], axis=2).reshape(H, 8 * H)
            bot = jnp.concatenate([z, whh_b.reshape(H, 4, H)], axis=2).reshape(H, 8 * H)
            whh = jnp.concatenate([top, bot], axis=0)          # (2H, 8H)
        else:
            wih, whh, b = wih_f, whh_f, b_f
        fused[f'l{l}_wih'] = wih.astype(jnp.bfloat16)
        fused[f'l{l}_whh'] = whh.astype(jnp.bfloat16)
        fused[f'l{l}_b'] = b.astype(jnp.float32)
    return fused


# ----------------------------- pure-JAX reference --------------------------- #

def _reference_forward(params, x, matmul_dtype=jnp.bfloat16):
    """Standard per-direction LSTM reference. matmul_dtype=bfloat16 mirrors the
    kernel's bf16 MXU operands (f32 accumulation); float32 gives a full-f32 check."""
    T, B, _ = x.shape
    H = params['hidden_size']
    L = params['num_layers']
    D = 2 if params['bidirectional'] else 1
    layer_in = x
    hn, cn = [], []
    for l in range(L):
        outs = []
        for d in range(D):
            name = f'l{l}_d{d}'
            wih = params[name + '_wih_t'].astype(matmul_dtype)
            whh = params[name + '_whh_t'].astype(matmul_dtype)
            b = params[name + '_b']
            xs = layer_in.astype(matmul_dtype)
            h = jnp.zeros((B, H), jnp.float32)
            c = jnp.zeros((B, H), jnp.float32)
            hs = [None] * T
            t_order = range(T) if d == 0 else range(T - 1, -1, -1)
            for t in t_order:
                g = (jnp.dot(xs[t], wih, preferred_element_type=jnp.float32)
                     + jnp.dot(h.astype(matmul_dtype), whh,
                               preferred_element_type=jnp.float32)
                     + b)
                i = _sigmoid(g[:, :H])
                f = _sigmoid(g[:, H:2 * H])
                gg = jnp.tanh(g[:, 2 * H:3 * H])
                o = _sigmoid(g[:, 3 * H:])
                c = f * c + i * gg
                h = o * jnp.tanh(c)
                hs[t] = h
            outs.append(jnp.stack(hs, axis=0))
            hn.append(h)
            cn.append(c)
        layer_in = jnp.concatenate(outs, axis=-1)
    return layer_in, jnp.stack(hn, axis=0), jnp.stack(cn, axis=0)


# ----------------------------- main ------------------------------------------ #

if __name__ == "__main__":
    T, B = 8, 8            # seq_len, batch (batch_first=False -> x is (T, B, F)); B sublane-dense
    IN_SIZE = 32
    HIDDEN = 64            # merged state 2H = 128 lanes, merged gates 8H = 512 lanes
    NUM_LAYERS = 2
    BIDIR = True

    key = jax.random.PRNGKey(0)
    kp, kx = jax.random.split(key)
    params = init_params(kp, IN_SIZE, HIDDEN, NUM_LAYERS, bidirectional=BIDIR)
    fused = prepare_fused_params(params)
    x = jax.random.normal(kx, (T, B, IN_SIZE), jnp.float32)

    output, h_n, c_n = temporal_lstm_forward(fused, x)
    jax.block_until_ready((output, h_n, c_n))

    D = 2 if BIDIR else 1
    assert output.shape == (T, B, D * HIDDEN)
    assert h_n.shape == (NUM_LAYERS * D, B, HIDDEN)
    assert c_n.shape == (NUM_LAYERS * D, B, HIDDEN)
    assert all(bool(jnp.isfinite(a).all()) for a in (output, h_n, c_n))

    # Tight check against a reference using the same bf16 matmul operands.
    ref_o, ref_h, ref_c = _reference_forward(params, x, matmul_dtype=jnp.bfloat16)
    assert jnp.allclose(output, ref_o, atol=2e-3, rtol=2e-3)
    assert jnp.allclose(h_n, ref_h, atol=2e-3, rtol=2e-3)
    assert jnp.allclose(c_n, ref_c, atol=2e-3, rtol=2e-3)

    # Loose sanity check against the full-f32 reference (guards gross semantic errors).
    f32_o, f32_h, f32_c = _reference_forward(params, x, matmul_dtype=jnp.float32)
    assert jnp.allclose(output, f32_o, atol=5e-2, rtol=5e-2)
    assert jnp.allclose(h_n, f32_h, atol=5e-2, rtol=5e-2)
    assert jnp.allclose(c_n, f32_c, atol=5e-2, rtol=5e-2)

    print("KERNEL_OK")
</pallas_src>

<mosaic_0001>
module attributes {stable_mosaic.version = 11 : i64} {
  func.func @_bilstm_kernel(%arg0: i32, %arg1: memref<8x8x32xf32, #tpu.memory_space<vmem>>, %arg2: memref<32x512xbf16, #tpu.memory_space<vmem>>, %arg3: memref<128x512xbf16, #tpu.memory_space<vmem>>, %arg4: memref<1x512xf32, #tpu.memory_space<vmem>>, %arg5: memref<128x512xbf16, #tpu.memory_space<vmem>>, %arg6: memref<128x512xbf16, #tpu.memory_space<vmem>>, %arg7: memref<1x512xf32, #tpu.memory_space<vmem>>, %arg8: memref<8x8x128xf32, #tpu.memory_space<vmem>>, %arg9: memref<4x8x64xf32, #tpu.memory_space<vmem>>, %arg10: memref<4x8x64xf32, #tpu.memory_space<vmem>>) attributes {dimension_semantics = [#tpu.dimension_semantics<arbitrary>], iteration_bounds = array<i64: 1>, scalar_prefetch = 0 : i64, scratch_operands = 0 : i64, tpu.core_type = #tpu.core_type<tc>, window_params = [{pipeline_mode = #tpu.pipeline_mode<synchronous>, transform_indices = @transform_0, window_bounds = array<i64: 8, 8, 32>}, {pipeline_mode = #tpu.pipeline_mode<synchronous>, transform_indices = @transform_1, window_bounds = array<i64: 32, 512>}, {pipeline_mode = #tpu.pipeline_mode<synchronous>, transform_indices = @transform_2, window_bounds = array<i64: 128, 512>}, {pipeline_mode = #tpu.pipeline_mode<synchronous>, transform_indices = @transform_3, window_bounds = array<i64: 1, 512>}, {pipeline_mode = #tpu.pipeline_mode<synchronous>, transform_indices = @transform_4, window_bounds = array<i64: 128, 512>}, {pipeline_mode = #tpu.pipeline_mode<synchronous>, transform_indices = @transform_5, window_bounds = array<i64: 128, 512>}, {pipeline_mode = #tpu.pipeline_mode<synchronous>, transform_indices = @transform_6, window_bounds = array<i64: 1, 512>}, {pipeline_mode = #tpu.pipeline_mode<synchronous>, transform_indices = @transform_7, window_bounds = array<i64: 8, 8, 128>}, {pipeline_mode = #tpu.pipeline_mode<synchronous>, transform_indices = @transform_8, window_bounds = array<i64: 4, 8, 64>}, {pipeline_mode = #tpu.pipeline_mode<synchronous>, transform_indices = @transform_9, window_bounds = array<i64: 4, 8, 64>}]} {
    %0 = tpu.iota {dimensions = array<i32: 1>} : vector<8x512xi32>
    %c128_i32 = arith.constant 128 : i32
    %c0_i32 = arith.constant 0 : i32
    %1 = arith.cmpi eq, %c128_i32, %c0_i32 : i32
    %c1_i32 = arith.constant 1 : i32
    %2 = arith.select %1, %c1_i32, %c128_i32 : i32
    %3 = vector.broadcast %2 : i32 to vector<8x512xi32>
    %4 = arith.remsi %0, %3 : vector<8x512xi32>
    %c0_i32_0 = arith.constant 0 : i32
    %5 = vector.broadcast %c0_i32_0 : i32 to vector<8x512xi32>
    %6 = arith.cmpi ne, %4, %5 : vector<8x512xi32>
    %c0_i32_1 = arith.constant 0 : i32
    %7 = vector.broadcast %c0_i32_1 : i32 to vector<8x512xi32>
    %8 = arith.cmpi slt, %4, %7 : vector<8x512xi32>
    %c0_i32_2 = arith.constant 0 : i32
    %9 = arith.cmpi slt, %2, %c0_i32_2 : i32
    %10 = vector.broadcast %9 : i1 to vector<8x512xi1>
    %11 = vector.broadcast %10 : vector<8x512xi1> to vector<8x512xi1>
    %12 = arith.xori %8, %11 : vector<8x512xi1>
    %13 = arith.andi %12, %6 : vector<8x512xi1>
    %14 = vector.broadcast %2 : i32 to vector<8x512xi32>
    %15 = arith.addi %4, %14 : vector<8x512xi32>
    %16 = arith.select %13, %15, %4 : vector<8x512xi1>, vector<8x512xi32>
    %c64_i32 = arith.constant 64 : i32
    %17 = vector.broadcast %c64_i32 : i32 to vector<8x512xi32>
    %18 = arith.cmpi slt, %16, %17 : vector<8x512xi32>
    %c0 = arith.constant 0 : index
    %c0_3 = arith.constant 0 : index
    %c0_4 = arith.constant 0 : index
    %19 = vector.load %arg1[%c0, %c0_3, %c0_4] : memref<8x8x32xf32, #tpu.memory_space<vmem>>, vector<8x8x32xf32>
    %c0_5 = arith.constant 0 : index
    %c0_6 = arith.constant 0 : index
    %20 = vector.load %arg2[%c0_5, %c0_6] : memref<32x512xbf16, #tpu.memory_space<vmem>>, vector<32x512xbf16>
    %c0_7 = arith.constant 0 : index
    %c0_8 = arith.constant 0 : index
    %21 = vector.load %arg3[%c0_7, %c0_8] : memref<128x512xbf16, #tpu.memory_space<vmem>>, vector<128x512xbf16>
    %c0_9 = arith.constant 0 : index
    %c0_10 = arith.constant 0 : index
    %22 = vector.load %arg4[%c0_9, %c0_10] : memref<1x512xf32, #tpu.memory_space<vmem>>, vector<1x512xf32>
    %23 = vector.shape_cast %19 : vector<8x8x32xf32> to vector<64x32xf32>
    %24 = arith.truncf %23 : vector<64x32xf32> to vector<64x32xbf16>
    %cst = arith.constant dense<0.000000e+00> : vector<64x512xf32>
    %25 = tpu.matmul %24, %20, %cst {dimension_numbers = #tpu.dot_dimension_numbers<[1], [0], [0], [1], [0, 0, 1, 1], [], []>} : vector<64x32xbf16>, vector<32x512xbf16>, vector<64x512xf32> -> vector<64x512xf32>
    %26 = vector.broadcast %22 : vector<1x512xf32> to vector<64x512xf32>
    %27 = arith.addf %25, %26 : vector<64x512xf32>
    %28 = vector.shape_cast %27 : vector<64x512xf32> to vector<8x8x512xf32>
    %cst_11 = arith.constant 0.000000e+00 : f32
    %29 = vector.broadcast %cst_11 : f32 to vector<8x128xf32>
    %cst_12 = arith.constant 0.000000e+00 : f32
    %30 = vector.broadcast %cst_12 : f32 to vector<8x128xf32>
    %31 = vector.extract_strided_slice %28 {offsets = [0, 0, 0], sizes = [1, 8, 512], strides = [1, 1, 1]} : vector<8x8x512xf32> to vector<1x8x512xf32>
    %32 = vector.shape_cast %31 : vector<1x8x512xf32> to vector<8x512xf32>
    %33 = vector.extract_strided_slice %28 {offsets = [7, 0, 0], sizes = [1, 8, 512], strides = [1, 1, 1]} : vector<8x8x512xf32> to vector<1x8x512xf32>
    %34 = vector.shape_cast %33 : vector<1x8x512xf32> to vector<8x512xf32>
    %35 = arith.select %18, %32, %34 : vector<8x512xi1>, vector<8x512xf32>
    %36 = arith.truncf %29 : vector<8x128xf32> to vector<8x128xbf16>
    %cst_13 = arith.constant dense<0.000000e+00> : vector<8x512xf32>
    %37 = tpu.matmul %36, %21, %cst_13 {dimension_numbers = #tpu.dot_dimension_numbers<[1], [0], [0], [1], [0, 0, 1, 1], [], []>} : vector<8x128xbf16>, vector<128x512xbf16>, vector<8x512xf32> -> vector<8x512xf32>
    %38 = arith.addf %35, %37 : vector<8x512xf32>
    %39 = vector.extract_strided_slice %38 {offsets = [0, 0], sizes = [8, 128], strides = [1, 1]} : vector<8x512xf32> to vector<8x128xf32>
    %cst_14 = arith.constant 5.000000e-01 : f32
    %40 = vector.broadcast %cst_14 : f32 to vector<8x128xf32>
    %41 = arith.mulf %40, %39 : vector<8x128xf32>
    %42 = math.tanh %41 : vector<8x128xf32>
    %cst_15 = arith.constant 5.000000e-01 : f32
    %43 = vector.broadcast %cst_15 : f32 to vector<8x128xf32>
    %44 = arith.mulf %43, %42 : vector<8x128xf32>
    %cst_16 = arith.constant 5.000000e-01 : f32
    %45 = vector.broadcast %cst_16 : f32 to vector<8x128xf32>
    %46 = arith.addf %44, %45 : vector<8x128xf32>
    %47 = vector.extract_strided_slice %38 {offsets = [0, 128], sizes = [8, 128], strides = [1, 1]} : vector<8x512xf32> to vector<8x128xf32>
    %cst_17 = arith.constant 5.000000e-01 : f32
    %48 = vector.broadcast %cst_17 : f32 to vector<8x128xf32>
    %49 = arith.mulf %48, %47 : vector<8x128xf32>
    %50 = math.tanh %49 : vector<8x128xf32>
    %cst_18 = arith.constant 5.000000e-01 : f32
    %51 = vector.broadcast %cst_18 : f32 to vector<8x128xf32>
    %52 = arith.mulf %51, %50 : vector<8x128xf32>
    %cst_19 = arith.constant 5.000000e-01 : f32
    %53 = vector.broadcast %cst_19 : f32 to vector<8x128xf32>
    %54 = arith.addf %52, %53 : vector<8x128xf32>
    %55 = vector.extract_strided_slice %38 {offsets = [0, 256], sizes = [8, 128], strides = [1, 1]} : vector<8x512xf32> to vector<8x128xf32>
    %56 = math.tanh %55 : vector<8x128xf32>
    %57 = vector.extract_strided_slice %38 {offsets = [0, 384], sizes = [8, 128], strides = [1, 1]} : vector<8x512xf32> to vector<8x128xf32>
    %cst_20 = arith.constant 5.000000e-01 : f32
    %58 = vector.broadcast %cst_20 : f32 to vector<8x128xf32>
    %59 = arith.mulf %58, %57 : vector<8x128xf32>
    %60 = math.tanh %59 : vector<8x128xf32>
    %cst_21 = arith.constant 5.000000e-01 : f32
    %61 = vector.broadcast %cst_21 : f32 to vector<8x128xf32>
    %62 = arith.mulf %61, %60 : vector<8x128xf32>
    %cst_22 = arith.constant 5.000000e-01 : f32
    %63 = vector.broadcast %cst_22 : f32 to vector<8x128xf32>
    %64 = arith.addf %62, %63 : vector<8x128xf32>
    %65 = arith.mulf %54, %30 : vector<8x128xf32>
    %66 = arith.mulf %46, %56 : vector<8x128xf32>
    %67 = arith.addf %65, %66 : vector<8x128xf32>
    %68 = math.tanh %67 : vector<8x128xf32>
    %69 = arith.mulf %64, %68 : vector<8x128xf32>
    %70 = vector.extract_strided_slice %69 {offsets = [0, 0], sizes = [8, 64], strides = [1, 1]} : vector<8x128xf32> to vector<8x64xf32>
    %c0_23 = arith.constant 0 : index
    %c0_24 = arith.constant 0 : index
    %c0_25 = arith.constant 0 : index
    %71 = vector.load %arg8[%c0_23, %c0_24, %c0_25] : memref<8x8x128xf32, #tpu.memory_space<vmem>>, vector<1x8x64xf32>
    %72 = vector.shape_cast %71 : vector<1x8x64xf32> to vector<8x64xf32>
    %73 = vector.shape_cast %70 : vector<8x64xf32> to vector<1x8x64xf32>
    tpu.vector_store %arg8[%c0_23, %c0_24, %c0_25], %73 {strides = array<i32>} : memref<8x8x128xf32, #tpu.memory_space<vmem>>, vector<1x8x64xf32>,
    %74 = vector.extract_strided_slice %69 {offsets = [0, 64], sizes = [8, 64], strides = [1, 1]} : vector<8x128xf32> to vector<8x64xf32>
    %c7 = arith.constant 7 : index
    %c0_26 = arith.constant 0 : index
    %c64 = arith.constant 64 : index
    %75 = vector.load %arg8[%c7, %c0_26, %c64] : memref<8x8x128xf32, #tpu.memory_space<vmem>>, vector<1x8x64xf32>
    %76 = vector.shape_cast %75 : vector<1x8x64xf32> to vector<8x64xf32>
    %77 = vector.shape_cast %74 : vector<8x64xf32> to vector<1x8x64xf32>
    tpu.vector_store %arg8[%c7, %c0_26, %c64], %77 {strides = array<i32>} : memref<8x8x128xf32, #tpu.memory_space<vmem>>, vector<1x8x64xf32>,
    %78 = vector.extract_strided_slice %28 {offsets = [1, 0, 0], sizes = [1, 8, 512], strides = [1, 1, 1]} : vector<8x8x512xf32> to vector<1x8x512xf32>
    %79 = vector.shape_cast %78 : vector<1x8x512xf32> to vector<8x512xf32>
    %80 = vector.extract_strided_slice %28 {offsets = [6, 0, 0], sizes = [1, 8, 512], strides = [1, 1, 1]} : vector<8x8x512xf32> to vector<1x8x512xf32>
    %81 = vector.shape_cast %80 : vector<1x8x512xf32> to vector<8x512xf32>
    %82 = arith.select %18, %79, %81 : vector<8x512xi1>, vector<8x512xf32>
    %83 = arith.truncf %69 : vector<8x128xf32> to vector<8x128xbf16>
    %cst_27 = arith.constant dense<0.000000e+00> : vector<8x512xf32>
    %84 = tpu.matmul %83, %21, %cst_27 {dimension_numbers = #tpu.dot_dimension_numbers<[1], [0], [0], [1], [0, 0, 1, 1], [], []>} : vector<8x128xbf16>, vector<128x512xbf16>, vector<8x512xf32> -> vector<8x512xf32>
    %85 = arith.addf %82, %84 : vector<8x512xf32>
    %86 = vector.extract_strided_slice %85 {offsets = [0, 0], sizes = [8, 128], strides = [1, 1]} : vector<8x512xf32> to vector<8x128xf32>
    %cst_28 = arith.constant 5.000000e-01 : f32
    %87 = vector.broadcast %cst_28 : f32 to vector<8x128xf32>
    %88 = arith.mulf %87, %86 : vector<8x128xf32>
    %89 = math.tanh %88 : vector<8x128xf32>
    %cst_29 = arith.constant 5.000000e-01 : f32
    %90 = vector.broadcast %cst_29 : f32 to vector<8x128xf32>
    %91 = arith.mulf %90, %89 : vector<8x128xf32>
    %cst_30 = arith.constant 5.000000e-01 : f32
    %92 = vector.broadcast %cst_30 : f32 to vector<8x128xf32>
    %93 = arith.addf %91, %92 : vector<8x128xf32>
    %94 = vector.extract_strided_slice %85 {offsets = [0, 128], sizes = [8, 128], strides = [1, 1]} : vector<8x512xf32> to vector<8x128xf32>
    %cst_31 = arith.constant 5.000000e-01 : f32
    %95 = vector.broadcast %cst_31 : f32 to vector<8x128xf32>
    %96 = arith.mulf %95, %94 : vector<8x128xf32>
    %97 = math.tanh %96 : vector<8x128xf32>
    %cst_32 = arith.constant 5.000000e-01 : f32
    %98 = vector.broadcast %cst_32 : f32 to vector<8x128xf32>
    %99 = arith.mulf %98, %97 : vector<8x128xf32>
    %cst_33 = arith.constant 5.000000e-01 : f32
    %100 = vector.broadcast %cst_33 : f32 to vector<8x128xf32>
    %101 = arith.addf %99, %100 : vector<8x128xf32>
    %102 = vector.extract_strided_slice %85 {offsets = [0, 256], sizes = [8, 128], strides = [1, 1]} : vector<8x512xf32> to vector<8x128xf32>
    %103 = math.tanh %102 : vector<8x128xf32>
    %104 = vector.extract_strided_slice %85 {offsets = [0, 384], sizes = [8, 128], strides = [1, 1]} : vector<8x512xf32> to vector<8x128xf32>
    %cst_34 = arith.constant 5.000000e-01 : f32
    %105 = vector.broadcast %cst_34 : f32 to vector<8x128xf32>
    %106 = arith.mulf %105, %104 : vector<8x128xf32>
    %107 = math.tanh %106 : vector<8x128xf32>
    %cst_35 = arith.constant 5.000000e-01 : f32
    %108 = vector.broadcast %cst_35 : f32 to vector<8x128xf32>
    %109 = arith.mulf %108, %107 : vector<8x128xf32>
    %cst_36 = arith.constant 5.000000e-01 : f32
    %110 = vector.broadcast %cst_36 : f32 to vector<8x128xf32>
    %111 = arith.addf %109, %110 : vector<8x128xf32>
    %112 = arith.mulf %101, %67 : vector<8x128xf32>
    %113 = arith.mulf %93, %103 : vector<8x128xf32>
    %114 = arith.addf %112, %113 : vector<8x128xf32>
    %115 = math.tanh %114 : vector<8x128xf32>
    %116 = arith.mulf %111, %115 : vector<8x128xf32>
    %117 = vector.extract_strided_slice %116 {offsets = [0, 0], sizes = [8, 64], strides = [1, 1]} : vector<8x128xf32> to vector<8x64xf32>
    %c1 = arith.constant 1 : index
    %c0_37 = arith.constant 0 : index
    %c0_38 = arith.constant 0 : index
    %118 = vector.load %arg8[%c1, %c0_37, %c0_38] : memref<8x8x128xf32, #tpu.memory_space<vmem>>, vector<1x8x64xf32>
    %119 = vector.shape_cast %118 : vector<1x8x64xf32> to vector<8x64xf32>
    %120 = vector.shape_cast %117 : vector<8x64xf32> to vector<1x8x64xf32>
    tpu.vector_store %arg8[%c1, %c0_37, %c0_38], %120 {strides = array<i32>} : memref<8x8x128xf32, #tpu.memory_space<vmem>>, vector<1x8x64xf32>,
    %121 = vector.extract_strided_slice %116 {offsets = [0, 64], sizes = [8, 64], strides = [1, 1]} : vector<8x128xf32> to vector<8x64xf32>
    %c6 = arith.constant 6 : index
    %c0_39 = arith.constant 0 : index
    %c64_40 = arith.constant 64 : index
    %122 = vector.load %arg8[%c6, %c0_39, %c64_40] : memref<8x8x128xf32, #tpu.memory_space<vmem>>, vector<1x8x64xf32>
    %123 = vector.shape_cast %122 : vector<1x8x64xf32> to vector<8x64xf32>
    %124 = vector.shape_cast %121 : vector<8x64xf32> to vector<1x8x64xf32>
    tpu.vector_store %arg8[%c6, %c0_39, %c64_40], %124 {strides = array<i32>} : memref<8x8x128xf32, #tpu.memory_space<vmem>>, vector<1x8x64xf32>,
    %125 = vector.extract_strided_slice %28 {offsets = [2, 0, 0], sizes = [1, 8, 512], strides = [1, 1, 1]} : vector<8x8x512xf32> to vector<1x8x512xf32>
    %126 = vector.shape_cast %125 : vector<1x8x512xf32> to vector<8x512xf32>
    %127 = vector.extract_strided_slice %28 {offsets = [5, 0, 0], sizes = [1, 8, 512], strides = [1, 1, 1]} : vector<8x8x512xf32> to vector<1x8x512xf32>
    %128 = vector.shape_cast %127 : vector<1x8x512xf32> to vector<8x512xf32>
    %129 = arith.select %18, %126, %128 : vector<8x512xi1>, vector<8x512xf32>
    %130 = arith.truncf %116 : vector<8x128xf32> to vector<8x128xbf16>
    %cst_41 = arith.constant dense<0.000000e+00> : vector<8x512xf32>
    %131 = tpu.matmul %130, %21, %cst_41 {dimension_numbers = #tpu.dot_dimension_numbers<[1], [0], [0], [1], [0, 0, 1, 1], [], []>} : vector<8x128xbf16>, vector<128x512xbf16>, vector<8x512xf32> -> vector<8x512xf32>
    %132 = arith.addf %129, %131 : vector<8x512xf32>
    %133 = vector.extract_strided_slice %132 {offsets = [0, 0], sizes = [8, 128], strides = [1, 1]} : vector<8x512xf32> to vector<8x128xf32>
    %cst_42 = arith.constant 5.000000e-01 : f32
    %134 = vector.broadcast %cst_42 : f32 to vector<8x128xf32>
    %135 = arith.mulf %134, %133 : vector<8x128xf32>
    %136 = math.tanh %135 : vector<8x128xf32>
    %cst_43 = arith.constant 5.000000e-01 : f32
    %137 = vector.broadcast %cst_43 : f32 to vector<8x128xf32>
    %138 = arith.mulf %137, %136 : vector<8x128xf32>
    %cst_44 = arith.constant 5.000000e-01 : f32
    %139 = vector.broadcast %cst_44 : f32 to vector<8x128xf32>
    %140 = arith.addf %138, %139 : vector<8x128xf32>
    %141 = vector.extract_strided_slice %132 {offsets = [0, 128], sizes = [8, 128], strides = [1, 1]} : vector<8x512xf32> to vector<8x128xf32>
    %cst_45 = arith.constant 5.000000e-01 : f32
    %142 = vector.broadcast %cst_45 : f32 to vector<8x128xf32>
    %143 = arith.mulf %142, %141 : vector<8x128xf32>
    %144 = math.tanh %143 : vector<8x128xf32>
    %cst_46 = arith.constant 5.000000e-01 : f32
    %145 = vector.broadcast %cst_46 : f32 to vector<8x128xf32>
    %146 = arith.mulf %145, %144 : vector<8x128xf32>
    %cst_47 = arith.constant 5.000000e-01 : f32
    %147 = vector.broadcast %cst_47 : f32 to vector<8x128xf32>
    %148 = arith.addf %146, %147 : vector<8x128xf32>
    %149 = vector.extract_strided_slice %132 {offsets = [0, 256], sizes = [8, 128], strides = [1, 1]} : vector<8x512xf32> to vector<8x128xf32>
    %150 = math.tanh %149 : vector<8x128xf32>
    %151 = vector.extract_strided_slice %132 {offsets = [0, 384], sizes = [8, 128], strides = [1, 1]} : vector<8x512xf32> to vector<8x128xf32>
    %cst_48 = arith.constant 5.000000e-01 : f32
    %152 = vector.broadcast %cst_48 : f32 to vector<8x128xf32>
    %153 = arith.mulf %152, %151 : vector<8x128xf32>
    %154 = math.tanh %153 : vector<8x128xf32>
    %cst_49 = arith.constant 5.000000e-01 : f32
    %155 = vector.broadcast %cst_49 : f32 to vector<8x128xf32>
    %156 = arith.mulf %155, %154 : vector<8x128xf32>
    %cst_50 = arith.constant 5.000000e-01 : f32
    %157 = vector.broadcast %cst_50 : f32 to vector<8x128xf32>
    %158 = arith.addf %156, %157 : vector<8x128xf32>
    %159 = arith.mulf %148, %114 : vector<8x128xf32>
    %160 = arith.mulf %140, %150 : vector<8x128xf32>
    %161 = arith.addf %159, %160 : vector<8x128xf32>
    %162 = math.tanh %161 : vector<8x128xf32>
    %163 = arith.mulf %158, %162 : vector<8x128xf32>
    %164 = vector.extract_strided_slice %163 {offsets = [0, 0], sizes = [8, 64], strides = [1, 1]} : vector<8x128xf32> to vector<8x64xf32>
    %c2 = arith.constant 2 : index
    %c0_51 = arith.constant 0 : index
    %c0_52 = arith.constant 0 : index
    %165 = vector.load %arg8[%c2, %c0_51, %c0_52] : memref<8x8x128xf32, #tpu.memory_space<vmem>>, vector<1x8x64xf32>
    %166 = vector.shape_cast %165 : vector<1x8x64xf32> to vector<8x64xf32>
    %167 = vector.shape_cast %164 : vector<8x64xf32> to vector<1x8x64xf32>
    tpu.vector_store %arg8[%c2, %c0_51, %c0_52], %167 {strides = array<i32>} : memref<8x8x128xf32, #tpu.memory_space<vmem>>, vector<1x8x64xf32>,
    %168 = vector.extract_strided_slice %163 {offsets = [0, 64], sizes = [8, 64], strides = [1, 1]} : vector<8x128xf32> to vector<8x64xf32>
    %c5 = arith.constant 5 : index
    %c0_53 = arith.constant 0 : index
    %c64_54 = arith.constant 64 : index
    %169 = vector.load %arg8[%c5, %c0_53, %c64_54] : memref<8x8x128xf32, #tpu.memory_space<vmem>>, vector<1x8x64xf32>
    %170 = vector.shape_cast %169 : vector<1x8x64xf32> to vector<8x64xf32>
    %171 = vector.shape_cast %168 : vector<8x64xf32> to vector<1x8x64xf32>
    tpu.vector_store %arg8[%c5, %c0_53, %c64_54], %171 {strides = array<i32>} : memref<8x8x128xf32, #tpu.memory_space<vmem>>, vector<1x8x64xf32>,
    %172 = vector.extract_strided_slice %28 {offsets = [3, 0, 0], sizes = [1, 8, 512], strides = [1, 1, 1]} : vector<8x8x512xf32> to vector<1x8x512xf32>
    %173 = vector.shape_cast %172 : vector<1x8x512xf32> to vector<8x512xf32>
    %174 = vector.extract_strided_slice %28 {offsets = [4, 0, 0], sizes = [1, 8, 512], strides = [1, 1, 1]} : vector<8x8x512xf32> to vector<1x8x512xf32>
    %175 = vector.shape_cast %174 : vector<1x8x512xf32> to vector<8x512xf32>
    %176 = arith.select %18, %173, %175 : vector<8x512xi1>, vector<8x512xf32>
    %177 = arith.truncf %163 : vector<8x128xf32> to vector<8x128xbf16>
    %cst_55 = arith.constant dense<0.000000e+00> : vector<8x512xf32>
    %178 = tpu.matmul %177, %21, %cst_55 {dimension_numbers = #tpu.dot_dimension_numbers<[1], [0], [0], [1], [0, 0, 1, 1], [], []>} : vector<8x128xbf16>, vector<128x512xbf16>, vector<8x512xf32> -> vector<8x512xf32>
    %179 = arith.addf %176, %178 : vector<8x512xf32>
    %180 = vector.extract_strided_slice %179 {offsets = [0, 0], sizes = [8, 128], strides = [1, 1]} : vector<8x512xf32> to vector<8x128xf32>
    %cst_56 = arith.constant 5.000000e-01 : f32
    %181 = vector.broadcast %cst_56 : f32 to vector<8x128xf32>
    %182 = arith.mulf %181, %180 : vector<8x128xf32>
    %183 = math.tanh %182 : vector<8x128xf32>
    %cst_57 = arith.constant 5.000000e-01 : f32
    %184 = vector.broadcast %cst_57 : f32 to vector<8x128xf32>
    %185 = arith.mulf %184, %183 : vector<8x128xf32>
    %cst_58 = arith.constant 5.000000e-01 : f32
    %186 = vector.broadcast %cst_58 : f32 to vector<8x128xf32>
    %187 = arith.addf %185, %186 : vector<8x128xf32>
    %188 = vector.extract_strided_slice %179 {offsets = [0, 128], sizes = [8, 128], strides = [1, 1]} : vector<8x512xf32> to vector<8x128xf32>
    %cst_59 = arith.constant 5.000000e-01 : f32
    %189 = vector.broadcast %cst_59 : f32 to vector<8x128xf32>
    %190 = arith.mulf %189, %188 : vector<8x128xf32>
    %191 = math.tanh %190 : vector<8x128xf32>
    %cst_60 = arith.constant 5.000000e-01 : f32
    %192 = vector.broadcast %cst_60 : f32 to vector<8x128xf32>
    %193 = arith.mulf %192, %191 : vector<8x128xf32>
    %cst_61 = arith.constant 5.000000e-01 : f32
    %194 = vector.broadcast %cst_61 : f32 to vector<8x128xf32>
    %195 = arith.addf %193, %194 : vector<8x128xf32>
    %196 = vector.extract_strided_slice %179 {offsets = [0, 256], sizes = [8, 128], strides = [1, 1]} : vector<8x512xf32> to vector<8x128xf32>
    %197 = math.tanh %196 : vector<8x128xf32>
    %198 = vector.extract_strided_slice %179 {offsets = [0, 384], sizes = [8, 128], strides = [1, 1]} : vector<8x512xf32> to vector<8x128xf32>
    %cst_62 = arith.constant 5.000000e-01 : f32
    %199 = vector.broadcast %cst_62 : f32 to vector<8x128xf32>
    %200 = arith.mulf %199, %198 : vector<8x128xf32>
    %201 = math.tanh %200 : vector<8x128xf32>
    %cst_63 = arith.constant 5.000000e-01 : f32
    %202 = vector.broadcast %cst_63 : f32 to vector<8x128xf32>
    %203 = arith.mulf %202, %201 : vector<8x128xf32>
    %cst_64 = arith.constant 5.000000e-01 : f32
    %204 = vector.broadcast %cst_64 : f32 to vector<8x128xf32>
    %205 = arith.addf %203, %204 : vector<8x128xf32>
    %206 = arith.mulf %195, %161 : vector<8x128xf32>
    %207 = arith.mulf %187, %197 : vector<8x128xf32>
    %208 = arith.addf %206, %207 : vector<8x128xf32>
    %209 = math.tanh %208 : vector<8x128xf32>
    %210 = arith.mulf %205, %209 : vector<8x128xf32>
    %211 = vector.extract_strided_slice %210 {offsets = [0, 0], sizes = [8, 64], strides = [1, 1]} : vector<8x128xf32> to vector<8x64xf32>
    %c3 = arith.constant 3 : index
    %c0_65 = arith.constant 0 : index
    %c0_66 = arith.constant 0 : index
    %212 = vector.load %arg8[%c3, %c0_65, %c0_66] : memref<8x8x128xf32, #tpu.memory_space<vmem>>, vector<1x8x64xf32>
    %213 = vector.shape_cast %212 : vector<1x8x64xf32> to vector<8x64xf32>
    %214 = vector.shape_cast %211 : vector<8x64xf32> to vector<1x8x64xf32>
    tpu.vector_store %arg8[%c3, %c0_65, %c0_66], %214 {strides = array<i32>} : memref<8x8x128xf32, #tpu.memory_space<vmem>>, vector<1x8x64xf32>,
    %215 = vector.extract_strided_slice %210 {offsets = [0, 64], sizes = [8, 64], strides = [1, 1]} : vector<8x128xf32> to vector<8x64xf32>
    %c4 = arith.constant 4 : index
    %c0_67 = arith.constant 0 : index
    %c64_68 = arith.constant 64 : index
    %216 = vector.load %arg8[%c4, %c0_67, %c64_68] : memref<8x8x128xf32, #tpu.memory_space<vmem>>, vector<1x8x64xf32>
    %217 = vector.shape_cast %216 : vector<1x8x64xf32> to vector<8x64xf32>
    %218 = vector.shape_cast %215 : vector<8x64xf32> to vector<1x8x64xf32>
    tpu.vector_store %arg8[%c4, %c0_67, %c64_68], %218 {strides = array<i32>} : memref<8x8x128xf32, #tpu.memory_space<vmem>>, vector<1x8x64xf32>,
    %219 = vector.extract_strided_slice %28 {offsets = [4, 0, 0], sizes = [1, 8, 512], strides = [1, 1, 1]} : vector<8x8x512xf32> to vector<1x8x512xf32>
    %220 = vector.shape_cast %219 : vector<1x8x512xf32> to vector<8x512xf32>
    %221 = vector.extract_strided_slice %28 {offsets = [3, 0, 0], sizes = [1, 8, 512], strides = [1, 1, 1]} : vector<8x8x512xf32> to vector<1x8x512xf32>
    %222 = vector.shape_cast %221 : vector<1x8x512xf32> to vector<8x512xf32>
    %223 = arith.select %18, %220, %222 : vector<8x512xi1>, vector<8x512xf32>
    %224 = arith.truncf %210 : vector<8x128xf32> to vector<8x128xbf16>
    %cst_69 = arith.constant dense<0.000000e+00> : vector<8x512xf32>
    %225 = tpu.matmul %224, %21, %cst_69 {dimension_numbers = #tpu.dot_dimension_numbers<[1], [0], [0], [1], [0, 0, 1, 1], [], []>} : vector<8x128xbf16>, vector<128x512xbf16>, vector<8x512xf32> -> vector<8x512xf32>
    %226 = arith.addf %223, %225 : vector<8x512xf32>
    %227 = vector.extract_strided_slice %226 {offsets = [0, 0], sizes = [8, 128], strides = [1, 1]} : vector<8x512xf32> to vector<8x128xf32>
    %cst_70 = arith.constant 5.000000e-01 : f32
    %228 = vector.broadcast %cst_70 : f32 to vector<8x128xf32>
    %229 = arith.mulf %228, %227 : vector<8x128xf32>
    %230 = math.tanh %229 : vector<8x128xf32>
    %cst_71 = arith.constant 5.000000e-01 : f32
    %231 = vector.broadcast %cst_71 : f32 to vector<8x128xf32>
    %232 = arith.mulf %231, %230 : vector<8x128xf32>
    %cst_72 = arith.constant 5.000000e-01 : f32
    %233 = vector.broadcast %cst_72 : f32 to vector<8x128xf32>
    %234 = arith.addf %232, %233 : vector<8x128xf32>
    %235 = vector.extract_strided_slice %226 {offsets = [0, 128], sizes = [8, 128], strides = [1, 1]} : vector<8x512xf32> to vector<8x128xf32>
    %cst_73 = arith.constant 5.000000e-01 : f32
    %236 = vector.broadcast %cst_73 : f32 to vector<8x128xf32>
    %237 = arith.mulf %236, %235 : vector<8x128xf32>
    %238 = math.tanh %237 : vector<8x128xf32>
    %cst_74 = arith.constant 5.000000e-01 : f32
    %239 = vector.broadcast %cst_74 : f32 to vector<8x128xf32>
    %240 = arith.mulf %239, %238 : vector<8x128xf32>
    %cst_75 = arith.constant 5.000000e-01 : f32
    %241 = vector.broadcast %cst_75 : f32 to vector<8x128xf32>
    %242 = arith.addf %240, %241 : vector<8x128xf32>
    %243 = vector.extract_strided_slice %226 {offsets = [0, 256], sizes = [8, 128], strides = [1, 1]} : vector<8x512xf32> to vector<8x128xf32>
    %244 = math.tanh %243 : vector<8x128xf32>
    %245 = vector.extract_strided_slice %226 {offsets = [0, 384], sizes = [8, 128], strides = [1, 1]} : vector<8x512xf32> to vector<8x128xf32>
    %cst_76 = arith.constant 5.000000e-01 : f32
    %246 = vector.broadcast %cst_76 : f32 to vector<8x128xf32>
    %247 = arith.mulf %246, %245 : vector<8x128xf32>
    %248 = math.tanh %247 : vector<8x128xf32>
    %cst_77 = arith.constant 5.000000e-01 : f32
    %249 = vector.broadcast %cst_77 : f32 to vector<8x128xf32>
    %250 = arith.mulf %249, %248 : vector<8x128xf32>
    %cst_78 = arith.constant 5.000000e-01 : f32
    %251 = vector.broadcast %cst_78 : f32 to vector<8x128xf32>
    %252 = arith.addf %250, %251 : vector<8x128xf32>
    %253 = arith.mulf %242, %208 : vector<8x128xf32>
    %254 = arith.mulf %234, %244 : vector<8x128xf32>
    %255 = arith.addf %253, %254 : vector<8x128xf32>
    %256 = math.tanh %255 : vector<8x128xf32>
    %257 = arith.mulf %252, %256 : vector<8x128xf32>
    %258 = vector.extract_strided_slice %257 {offsets = [0, 0], sizes = [8, 64], strides = [1, 1]} : vector<8x128xf32> to vector<8x64xf32>
    %c4_79 = arith.constant 4 : index
    %c0_80 = arith.constant 0 : index
    %c0_81 = arith.constant 0 : index
    %259 = vector.load %arg8[%c4_79, %c0_80, %c0_81] : memref<8x8x128xf32, #tpu.memory_space<vmem>>, vector<1x8x64xf32>
    %260 = vector.shape_cast %259 : vector<1x8x64xf32> to vector<8x64xf32>
    %261 = vector.shape_cast %258 : vector<8x64xf32> to vector<1x8x64xf32>
    tpu.vector_store %arg8[%c4_79, %c0_80, %c0_81], %261 {strides = array<i32>} : memref<8x8x128xf32, #tpu.memory_space<vmem>>, vector<1x8x64xf32>,
    %262 = vector.extract_strided_slice %257 {offsets = [0, 64], sizes = [8, 64], strides = [1, 1]} : vector<8x128xf32> to vector<8x64xf32>
    %c3_82 = arith.constant 3 : index
    %c0_83 = arith.constant 0 : index
    %c64_84 = arith.constant 64 : index
    %263 = vector.load %arg8[%c3_82, %c0_83, %c64_84] : memref<8x8x128xf32, #tpu.memory_space<vmem>>, vector<1x8x64xf32>
    %264 = vector.shape_cast %263 : vector<1x8x64xf32> to vector<8x64xf32>
    %265 = vector.shape_cast %262 : vector<8x64xf32> to vector<1x8x64xf32>
    tpu.vector_store %arg8[%c3_82, %c0_83, %c64_84], %265 {strides = array<i32>} : memref<8x8x128xf32, #tpu.memory_space<vmem>>, vector<1x8x64xf32>,
    %266 = vector.extract_strided_slice %28 {offsets = [5, 0, 0], sizes = [1, 8, 512], strides = [1, 1, 1]} : vector<8x8x512xf32> to vector<1x8x512xf32>
    %267 = vector.shape_cast %266 : vector<1x8x512xf32> to vector<8x512xf32>
    %268 = vector.extract_strided_slice %28 {offsets = [2, 0, 0], sizes = [1, 8, 512], strides = [1, 1, 1]} : vector<8x8x512xf32> to vector<1x8x512xf32>
    %269 = vector.shape_cast %268 : vector<1x8x512xf32> to vector<8x512xf32>
    %270 = arith.select %18, %267, %269 : vector<8x512xi1>, vector<8x512xf32>
    %271 = arith.truncf %257 : vector<8x128xf32> to vector<8x128xbf16>
    %cst_85 = arith.constant dense<0.000000e+00> : vector<8x512xf32>
    %272 = tpu.matmul %271, %21, %cst_85 {dimension_numbers = #tpu.dot_dimension_numbers<[1], [0], [0], [1], [0, 0, 1, 1], [], []>} : vector<8x128xbf16>, vector<128x512xbf16>, vector<8x512xf32> -> vector<8x512xf32>
    %273 = arith.addf %270, %272 : vector<8x512xf32>
    %274 = vector.extract_strided_slice %273 {offsets = [0, 0], sizes = [8, 128], strides = [1, 1]} : vector<8x512xf32> to vector<8x128xf32>
    %cst_86 = arith.constant 5.000000e-01 : f32
    %275 = vector.broadcast %cst_86 : f32 to vector<8x128xf32>
    %276 = arith.mulf %275, %274 : vector<8x128xf32>
    %277 = math.tanh %276 : vector<8x128xf32>
    %cst_87 = arith.constant 5.000000e-01 : f32
    %278 = vector.broadcast %cst_87 : f32 to vector<8x128xf32>
    %279 = arith.mulf %278, %277 : vector<8x128xf32>
    %cst_88 = arith.constant 5.000000e-01 : f32
    %280 = vector.broadcast %cst_88 : f32 to vector<8x128xf32>
    %281 = arith.addf %279, %280 : vector<8x128xf32>
    %282 = vector.extract_strided_slice %273 {offsets = [0, 128], sizes = [8, 128], strides = [1, 1]} : vector<8x512xf32> to vector<8x128xf32>
    %cst_89 = arith.constant 5.000000e-01 : f32
    %283 = vector.broadcast %cst_89 : f32 to vector<8x128xf32>
    %284 = arith.mulf %283, %282 : vector<8x128xf32>
    %285 = math.tanh %284 : vector<8x128xf32>
    %cst_90 = arith.constant 5.000000e-01 : f32
    %286 = vector.broadcast %cst_90 : f32 to vector<8x128xf32>
    %287 = arith.mulf %286, %285 : vector<8x128xf32>
    %cst_91 = arith.constant 5.000000e-01 : f32
    %288 = vector.broadcast %cst_91 : f32 to vector<8x128xf32>
    %289 = arith.addf %287, %288 : vector<8x128xf32>
    %290 = vector.extract_strided_slice %273 {offsets = [0, 256], sizes = [8, 128], strides = [1, 1]} : vector<8x512xf32> to vector<8x128xf32>
    %291 = math.tanh %290 : vector<8x128xf32>
    %292 = vector.extract_strided_slice %273 {offsets = [0, 384], sizes = [8, 128], strides = [1, 1]} : vector<8x512xf32> to vector<8x128xf32>
    %cst_92 = arith.constant 5.000000e-01 : f32
    %293 = vector.broadcast %cst_92 : f32 to vector<8x128xf32>
    %294 = arith.mulf %293, %292 : vector<8x128xf32>
    %295 = math.tanh %294 : vector<8x128xf32>
    %cst_93 = arith.constant 5.000000e-01 : f32
    %296 = vector.broadcast %cst_93 : f32 to vector<8x128xf32>
    %297 = arith.mulf %296, %295 : vector<8x128xf32>
    %cst_94 = arith.constant 5.000000e-01 : f32
    %298 = vector.broadcast %cst_94 : f32 to vector<8x128xf32>
    %299 = arith.addf %297, %298 : vector<8x128xf32>
    %300 = arith.mulf %289, %255 : vector<8x128xf32>
    %301 = arith.mulf %281, %291 : vector<8x128xf32>
    %302 = arith.addf %300, %301 : vector<8x128xf32>
    %303 = math.tanh %302 : vector<8x128xf32>
    %304 = arith.mulf %299, %303 : vector<8x128xf32>
    %305 = vector.extract_strided_slice %304 {offsets = [0, 0], sizes = [8, 64], strides = [1, 1]} : vector<8x128xf32> to vector<8x64xf32>
    %c5_95 = arith.constant 5 : index
    %c0_96 = arith.constant 0 : index
    %c0_97 = arith.constant 0 : index
    %306 = vector.load %arg8[%c5_95, %c0_96, %c0_97] : memref<8x8x128xf32, #tpu.memory_space<vmem>>, vector<1x8x64xf32>
    %307 = vector.shape_cast %306 : vector<1x8x64xf32> to vector<8x64xf32>
    %308 = vector.shape_cast %305 : vector<8x64xf32> to vector<1x8x64xf32>
    tpu.vector_store %arg8[%c5_95, %c0_96, %c0_97], %308 {strides = array<i32>} : memref<8x8x128xf32, #tpu.memory_space<vmem>>, vector<1x8x64xf32>,
    %309 = vector.extract_strided_slice %304 {offsets = [0, 64], sizes = [8, 64], strides = [1, 1]} : vector<8x128xf32> to vector<8x64xf32>
    %c2_98 = arith.constant 2 : index
    %c0_99 = arith.constant 0 : index
    %c64_100 = arith.constant 64 : index
    %310 = vector.load %arg8[%c2_98, %c0_99, %c64_100] : memref<8x8x128xf32, #tpu.memory_space<vmem>>, vector<1x8x64xf32>
    %311 = vector.shape_cast %310 : vector<1x8x64xf32> to vector<8x64xf32>
    %312 = vector.shape_cast %309 : vector<8x64xf32> to vector<1x8x64xf32>
    tpu.vector_store %arg8[%c2_98, %c0_99, %c64_100], %312 {strides = array<i32>} : memref<8x8x128xf32, #tpu.memory_space<vmem>>, vector<1x8x64xf32>,
    %313 = vector.extract_strided_slice %28 {offsets = [6, 0, 0], sizes = [1, 8, 512], strides = [1, 1, 1]} : vector<8x8x512xf32> to vector<1x8x512xf32>
    %314 = vector.shape_cast %313 : vector<1x8x512xf32> to vector<8x512xf32>
    %315 = vector.extract_strided_slice %28 {offsets = [1, 0, 0], sizes = [1, 8, 512], strides = [1, 1, 1]} : vector<8x8x512xf32> to vector<1x8x512xf32>
    %316 = vector.shape_cast %315 : vector<1x8x512xf32> to vector<8x512xf32>
    %317 = arith.select %18, %314, %316 : vector<8x512xi1>, vector<8x512xf32>
    %318 = arith.truncf %304 : vector<8x128xf32> to vector<8x128xbf16>
    %cst_101 = arith.constant dense<0.000000e+00> : vector<8x512xf32>
    %319 = tpu.matmul %318, %21, %cst_101 {dimension_numbers = #tpu.dot_dimension_numbers<[1], [0], [0], [1], [0, 0, 1, 1], [], []>} : vector<8x128xbf16>, vector<128x512xbf16>, vector<8x512xf32> -> vector<8x512xf32>
    %320 = arith.addf %317, %319 : vector<8x512xf32>
    %321 = vector.extract_strided_slice %320 {offsets = [0, 0], sizes = [8, 128], strides = [1, 1]} : vector<8x512xf32> to vector<8x128xf32>
    %cst_102 = arith.constant 5.000000e-01 : f32
    %322 = vector.broadcast %cst_102 : f32 to vector<8x128xf32>
    %323 = arith.mulf %322, %321 : vector<8x128xf32>
    %324 = math.tanh %323 : vector<8x128xf32>
    %cst_103 = arith.constant 5.000000e-01 : f32
    %325 = vector.broadcast %cst_103 : f32 to vector<8x128xf32>
    %326 = arith.mulf %325, %324 : vector<8x128xf32>
    %cst_104 = arith.constant 5.000000e-01 : f32
    %327 = vector.broadcast %cst_104 : f32 to vector<8x128xf32>
    %328 = arith.addf %326, %327 : vector<8x128xf32>
    %329 = vector.extract_strided_slice %320 {offsets = [0, 128], sizes = [8, 128], strides = [1, 1]} : vector<8x512xf32> to vector<8x128xf32>
    %cst_105 = arith.constant 5.000000e-01 : f32
    %330 = vector.broadcast %cst_105 : f32 to vector<8x128xf32>
    %331 = arith.mulf %330, %329 : vector<8x128xf32>
    %332 = math.tanh %331 : vector<8x128xf32>
    %cst_106 = arith.constant 5.000000e-01 : f32
    %333 = vector.broadcast %cst_106 : f32 to vector<8x128xf32>
    %334 = arith.mulf %333, %332 : vector<8x128xf32>
    %cst_107 = arith.constant 5.000000e-01 : f32
    %335 = vector.broadcast %cst_107 : f32 to vector<8x128xf32>
    %336 = arith.addf %334, %335 : vector<8x128xf32>
    %337 = vector.extract_strided_slice %320 {offsets = [0, 256], sizes = [8, 128], strides = [1, 1]} : vector<8x512xf32> to vector<8x128xf32>
    %338 = math.tanh %337 : vector<8x128xf32>
    %339 = vector.extract_strided_slice %320 {offsets = [0, 384], sizes = [8, 128], strides = [1, 1]} : vector<8x512xf32> to vector<8x128xf32>
    %cst_108 = arith.constant 5.000000e-01 : f32
    %340 = vector.broadcast %cst_108 : f32 to vector<8x128xf32>
    %341 = arith.mulf %340, %339 : vector<8x128xf32>
    %342 = math.tanh %341 : vector<8x128xf32>
    %cst_109 = arith.constant 5.000000e-01 : f32
    %343 = vector.broadcast %cst_109 : f32 to vector<8x128xf32>
    %344 = arith.mulf %343, %342 : vector<8x128xf32>
    %cst_110 = arith.constant 5.000000e-01 : f32
    %345 = vector.broadcast %cst_110 : f32 to vector<8x128xf32>
    %346 = arith.addf %344, %345 : vector<8x128xf32>
    %347 = arith.mulf %336, %302 : vector<8x128xf32>
    %348 = arith.mulf %328, %338 : vector<8x128xf32>
    %349 = arith.addf %347, %348 : vector<8x128xf32>
    %350 = math.tanh %349 : vector<8x128xf32>
    %351 = arith.mulf %346, %350 : vector<8x128xf32>
    %352 = vector.extract_strided_slice %351 {offsets = [0, 0], sizes = [8, 64], strides = [1, 1]} : vector<8x128xf32> to vector<8x64xf32>
    %c6_111 = arith.constant 6 : index
    %c0_112 = arith.constant 0 : index
    %c0_113 = arith.constant 0 : index
    %353 = vector.load %arg8[%c6_111, %c0_112, %c0_113] : memref<8x8x128xf32, #tpu.memory_space<vmem>>, vector<1x8x64xf32>
    %354 = vector.shape_cast %353 : vector<1x8x64xf32> to vector<8x64xf32>
    %355 = vector.shape_cast %352 : vector<8x64xf32> to vector<1x8x64xf32>
    tpu.vector_store %arg8[%c6_111, %c0_112, %c0_113], %355 {strides = array<i32>} : memref<8x8x128xf32, #tpu.memory_space<vmem>>, vector<1x8x64xf32>,
    %356 = vector.extract_strided_slice %351 {offsets = [0, 64], sizes = [8, 64], strides = [1, 1]} : vector<8x128xf32> to vector<8x64xf32>
    %c1_114 = arith.constant 1 : index
    %c0_115 = arith.constant 0 : index
    %c64_116 = arith.constant 64 : index
    %357 = vector.load %arg8[%c1_114, %c0_115, %c64_116] : memref<8x8x128xf32, #tpu.memory_space<vmem>>, vector<1x8x64xf32>
    %358 = vector.shape_cast %357 : vector<1x8x64xf32> to vector<8x64xf32>
    %359 = vector.shape_cast %356 : vector<8x64xf32> to vector<1x8x64xf32>
    tpu.vector_store %arg8[%c1_114, %c0_115, %c64_116], %359 {strides = array<i32>} : memref<8x8x128xf32, #tpu.memory_space<vmem>>, vector<1x8x64xf32>,
    %360 = vector.extract_strided_slice %28 {offsets = [7, 0, 0], sizes = [1, 8, 512], strides = [1, 1, 1]} : vector<8x8x512xf32> to vector<1x8x512xf32>
    %361 = vector.shape_cast %360 : vector<1x8x512xf32> to vector<8x512xf32>
    %362 = vector.extract_strided_slice %28 {offsets = [0, 0, 0], sizes = [1, 8, 512], strides = [1, 1, 1]} : vector<8x8x512xf32> to vector<1x8x512xf32>
    %363 = vector.shape_cast %362 : vector<1x8x512xf32> to vector<8x512xf32>
    %364 = arith.select %18, %361, %363 : vector<8x512xi1>, vector<8x512xf32>
    %365 = arith.truncf %351 : vector<8x128xf32> to vector<8x128xbf16>
    %cst_117 = arith.constant dense<0.000000e+00> : vector<8x512xf32>
    %366 = tpu.matmul %365, %21, %cst_117 {dimension_numbers = #tpu.dot_dimension_numbers<[1], [0], [0], [1], [0, 0, 1, 1], [], []>} : vector<8x128xbf16>, vector<128x512xbf16>, vector<8x512xf32> -> vector<8x512xf32>
    %367 = arith.addf %364, %366 : vector<8x512xf32>
    %368 = vector.extract_strided_slice %367 {offsets = [0, 0], sizes = [8, 128], strides = [1, 1]} : vector<8x512xf32> to vector<8x128xf32>
    %cst_118 = arith.constant 5.000000e-01 : f32
    %369 = vector.broadcast %cst_118 : f32 to vector<8x128xf32>
    %370 = arith.mulf %369, %368 : vector<8x128xf32>
    %371 = math.tanh %370 : vector<8x128xf32>
    %cst_119 = arith.constant 5.000000e-01 : f32
    %372 = vector.broadcast %cst_119 : f32 to vector<8x128xf32>
    %373 = arith.mulf %372, %371 : vector<8x128xf32>
    %cst_120 = arith.constant 5.000000e-01 : f32
    %374 = vector.broadcast %cst_120 : f32 to vector<8x128xf32>
    %375 = arith.addf %373, %374 : vector<8x128xf32>
    %376 = vector.extract_strided_slice %367 {offsets = [0, 128], sizes = [8, 128], strides = [1, 1]} : vector<8x512xf32> to vector<8x128xf32>
    %cst_121 = arith.constant 5.000000e-01 : f32
    %377 = vector.broadcast %cst_121 : f32 to vector<8x128xf32>
    %378 = arith.mulf %377, %376 : vector<8x128xf32>
    %379 = math.tanh %378 : vector<8x128xf32>
    %cst_122 = arith.constant 5.000000e-01 : f32
    %380 = vector.broadcast %cst_122 : f32 to vector<8x128xf32>
    %381 = arith.mulf %380, %379 : vector<8x128xf32>
    %cst_123 = arith.constant 5.000000e-01 : f32
    %382 = vector.broadcast %cst_123 : f32 to vector<8x128xf32>
    %383 = arith.addf %381, %382 : vector<8x128xf32>
    %384 = vector.extract_strided_slice %367 {offsets = [0, 256], sizes = [8, 128], strides = [1, 1]} : vector<8x512xf32> to vector<8x128xf32>
    %385 = math.tanh %384 : vector<8x128xf32>
    %386 = vector.extract_strided_slice %367 {offsets = [0, 384], sizes = [8, 128], strides = [1, 1]} : vector<8x512xf32> to vector<8x128xf32>
    %cst_124 = arith.constant 5.000000e-01 : f32
    %387 = vector.broadcast %cst_124 : f32 to vector<8x128xf32>
    %388 = arith.mulf %387, %386 : vector<8x128xf32>
    %389 = math.tanh %388 : vector<8x128xf32>
    %cst_125 = arith.constant 5.000000e-01 : f32
    %390 = vector.broadcast %cst_125 : f32 to vector<8x128xf32>
    %391 = arith.mulf %390, %389 : vector<8x128xf32>
    %cst_126 = arith.constant 5.000000e-01 : f32
    %392 = vector.broadcast %cst_126 : f32 to vector<8x128xf32>
    %393 = arith.addf %391, %392 : vector<8x128xf32>
    %394 = arith.mulf %383, %349 : vector<8x128xf32>
    %395 = arith.mulf %375, %385 : vector<8x128xf32>
    %396 = arith.addf %394, %395 : vector<8x128xf32>
    %397 = math.tanh %396 : vector<8x128xf32>
    %398 = arith.mulf %393, %397 : vector<8x128xf32>
    %399 = vector.extract_strided_slice %398 {offsets = [0, 0], sizes = [8, 64], strides = [1, 1]} : vector<8x128xf32> to vector<8x64xf32>
    %c7_127 = arith.constant 7 : index
    %c0_128 = arith.constant 0 : index
    %c0_129 = arith.constant 0 : index
    %400 = vector.load %arg8[%c7_127, %c0_128, %c0_129] : memref<8x8x128xf32, #tpu.memory_space<vmem>>, vector<1x8x64xf32>
    %401 = vector.shape_cast %400 : vector<1x8x64xf32> to vector<8x64xf32>
    %402 = vector.shape_cast %399 : vector<8x64xf32> to vector<1x8x64xf32>
    tpu.vector_store %arg8[%c7_127, %c0_128, %c0_129], %402 {strides = array<i32>} : memref<8x8x128xf32, #tpu.memory_space<vmem>>, vector<1x8x64xf32>,
    %403 = vector.extract_strided_slice %398 {offsets = [0, 64], sizes = [8, 64], strides = [1, 1]} : vector<8x128xf32> to vector<8x64xf32>
    %c0_130 = arith.constant 0 : index
    %c0_131 = arith.constant 0 : index
    %c64_132 = arith.constant 64 : index
    %404 = vector.load %arg8[%c0_130, %c0_131, %c64_132] : memref<8x8x128xf32, #tpu.memory_space<vmem>>, vector<1x8x64xf32>
    %405 = vector.shape_cast %404 : vector<1x8x64xf32> to vector<8x64xf32>
    %406 = vector.shape_cast %403 : vector<8x64xf32> to vector<1x8x64xf32>
    tpu.vector_store %arg8[%c0_130, %c0_131, %c64_132], %406 {strides = array<i32>} : memref<8x8x128xf32, #tpu.memory_space<vmem>>, vector<1x8x64xf32>,
    %407 = vector.extract_strided_slice %398 {offsets = [0, 0], sizes = [8, 64], strides = [1, 1]} : vector<8x128xf32> to vector<8x64xf32>
    %c0_133 = arith.constant 0 : index
    %c0_134 = arith.constant 0 : index
    %c0_135 = arith.constant 0 : index
    %408 = vector.load %arg9[%c0_133, %c0_134, %c0_135] : memref<4x8x64xf32, #tpu.memory_space<vmem>>, vector<1x8x64xf32>
    %409 = vector.shape_cast %408 : vector<1x8x64xf32> to vector<8x64xf32>
    %410 = vector.shape_cast %407 : vector<8x64xf32> to vector<1x8x64xf32>
    tpu.vector_store %arg9[%c0_133, %c0_134, %c0_135], %410 {strides = array<i32>} : memref<4x8x64xf32, #tpu.memory_space<vmem>>, vector<1x8x64xf32>,
    %411 = vector.extract_strided_slice %396 {offsets = [0, 0], sizes = [8, 64], strides = [1, 1]} : vector<8x128xf32> to vector<8x64xf32>
    %c0_136 = arith.constant 0 : index
    %c0_137 = arith.constant 0 : index
    %c0_138 = arith.constant 0 : index
    %412 = vector.load %arg10[%c0_136, %c0_137, %c0_138] : memref<4x8x64xf32, #tpu.memory_space<vmem>>, vector<1x8x64xf32>
    %413 = vector.shape_cast %412 : vector<1x8x64xf32> to vector<8x64xf32>
    %414 = vector.shape_cast %411 : vector<8x64xf32> to vector<1x8x64xf32>
    tpu.vector_store %arg10[%c0_136, %c0_137, %c0_138], %414 {strides = array<i32>} : memref<4x8x64xf32, #tpu.memory_space<vmem>>, vector<1x8x64xf32>,
    %415 = vector.extract_strided_slice %398 {offsets = [0, 64], sizes = [8, 64], strides = [1, 1]} : vector<8x128xf32> to vector<8x64xf32>
    %c1_139 = arith.constant 1 : index
    %c0_140 = arith.constant 0 : index
    %c0_141 = arith.constant 0 : index
    %416 = vector.load %arg9[%c1_139, %c0_140, %c0_141] : memref<4x8x64xf32, #tpu.memory_space<vmem>>, vector<1x8x64xf32>
    %417 = vector.shape_cast %416 : vector<1x8x64xf32> to vector<8x64xf32>
    %418 = vector.shape_cast %415 : vector<8x64xf32> to vector<1x8x64xf32>
    tpu.vector_store %arg9[%c1_139, %c0_140, %c0_141], %418 {strides = array<i32>} : memref<4x8x64xf32, #tpu.memory_space<vmem>>, vector<1x8x64xf32>,
    %419 = vector.extract_strided_slice %396 {offsets = [0, 64], sizes = [8, 64], strides = [1, 1]} : vector<8x128xf32> to vector<8x64xf32>
    %c1_142 = arith.constant 1 : index
    %c0_143 = arith.constant 0 : index
    %c0_144 = arith.constant 0 : index
    %420 = vector.load %arg10[%c1_142, %c0_143, %c0_144] : memref<4x8x64xf32, #tpu.memory_space<vmem>>, vector<1x8x64xf32>
    %421 = vector.shape_cast %420 : vector<1x8x64xf32> to vector<8x64xf32>
    %422 = vector.shape_cast %419 : vector<8x64xf32> to vector<1x8x64xf32>
    tpu.vector_store %arg10[%c1_142, %c0_143, %c0_144], %422 {strides = array<i32>} : memref<4x8x64xf32, #tpu.memory_space<vmem>>, vector<1x8x64xf32>,
    %c0_145 = arith.constant 0 : index
    %c0_146 = arith.constant 0 : index
    %c0_147 = arith.constant 0 : index
    %423 = vector.load %arg8[%c0_145, %c0_146, %c0_147] : memref<8x8x128xf32, #tpu.memory_space<vmem>>, vector<8x8x128xf32>
    %c0_148 = arith.constant 0 : index
    %c0_149 = arith.constant 0 : index
    %424 = vector.load %arg5[%c0_148, %c0_149] : memref<128x512xbf16, #tpu.memory_space<vmem>>, vector<128x512xbf16>
    %c0_150 = arith.constant 0 : index
    %c0_151 = arith.constant 0 : index
    %425 = vector.load %arg6[%c0_150, %c0_151] : memref<128x512xbf16, #tpu.memory_space<vmem>>, vector<128x512xbf16>
    %c0_152 = arith.constant 0 : index
    %c0_153 = arith.constant 0 : index
    %426 = vector.load %arg7[%c0_152, %c0_153] : memref<1x512xf32, #tpu.memory_space<vmem>>, vector<1x512xf32>
    %427 = vector.shape_cast %423 : vector<8x8x128xf32> to vector<64x128xf32>
    %428 = arith.truncf %427 : vector<64x128xf32> to vector<64x128xbf16>
    %cst_154 = arith.constant dense<0.000000e+00> : vector<64x512xf32>
    %429 = tpu.matmul %428, %424, %cst_154 {dimension_numbers = #tpu.dot_dimension_numbers<[1], [0], [0], [1], [0, 0, 1, 1], [], []>} : vector<64x128xbf16>, vector<128x512xbf16>, vector<64x512xf32> -> vector<64x512xf32>
    %430 = vector.broadcast %426 : vector<1x512xf32> to vector<64x512xf32>
    %431 = arith.addf %429, %430 : vector<64x512xf32>
    %432 = vector.shape_cast %431 : vector<64x512xf32> to vector<8x8x512xf32>
    %cst_155 = arith.constant 0.000000e+00 : f32
    %433 = vector.broadcast %cst_155 : f32 to vector<8x128xf32>
    %cst_156 = arith.constant 0.000000e+00 : f32
    %434 = vector.broadcast %cst_156 : f32 to vector<8x128xf32>
    %435 = vector.extract_strided_slice %432 {offsets = [0, 0, 0], sizes = [1, 8, 512], strides = [1, 1, 1]} : vector<8x8x512xf32> to vector<1x8x512xf32>
    %436 = vector.shape_cast %435 : vector<1x8x512xf32> to vector<8x512xf32>
    %437 = vector.extract_strided_slice %432 {offsets = [7, 0, 0], sizes = [1, 8, 512], strides = [1, 1, 1]} : vector<8x8x512xf32> to vector<1x8x512xf32>
    %438 = vector.shape_cast %437 : vector<1x8x512xf32> to vector<8x512xf32>
    %439 = arith.select %18, %436, %438 : vector<8x512xi1>, vector<8x512xf32>
    %440 = arith.truncf %433 : vector<8x128xf32> to vector<8x128xbf16>
    %cst_157 = arith.constant dense<0.000000e+00> : vector<8x512xf32>
    %441 = tpu.matmul %440, %425, %cst_157 {dimension_numbers = #tpu.dot_dimension_numbers<[1], [0], [0], [1], [0, 0, 1, 1], [], []>} : vector<8x128xbf16>, vector<128x512xbf16>, vector<8x512xf32> -> vector<8x512xf32>
    %442 = arith.addf %439, %441 : vector<8x512xf32>
    %443 = vector.extract_strided_slice %442 {offsets = [0, 0], sizes = [8, 128], strides = [1, 1]} : vector<8x512xf32> to vector<8x128xf32>
    %cst_158 = arith.constant 5.000000e-01 : f32
    %444 = vector.broadcast %cst_158 : f32 to vector<8x128xf32>
    %445 = arith.mulf %444, %443 : vector<8x128xf32>
    %446 = math.tanh %445 : vector<8x128xf32>
    %cst_159 = arith.constant 5.000000e-01 : f32
    %447 = vector.broadcast %cst_159 : f32 to vector<8x128xf32>
    %448 = arith.mulf %447, %446 : vector<8x128xf32>
    %cst_160 = arith.constant 5.000000e-01 : f32
    %449 = vector.broadcast %cst_160 : f32 to vector<8x128xf32>
    %450 = arith.addf %448, %449 : vector<8x128xf32>
    %451 = vector.extract_strided_slice %442 {offsets = [0, 128], sizes = [8, 128], strides = [1, 1]} : vector<8x512xf32> to vector<8x128xf32>
    %cst_161 = arith.constant 5.000000e-01 : f32
    %452 = vector.broadcast %cst_161 : f32 to vector<8x128xf32>
    %453 = arith.mulf %452, %451 : vector<8x128xf32>
    %454 = math.tanh %453 : vector<8x128xf32>
    %cst_162 = arith.constant 5.000000e-01 : f32
    %455 = vector.broadcast %cst_162 : f32 to vector<8x128xf32>
    %456 = arith.mulf %455, %454 : vector<8x128xf32>
    %cst_163 = arith.constant 5.000000e-01 : f32
    %457 = vector.broadcast %cst_163 : f32 to vector<8x128xf32>
    %458 = arith.addf %456, %457 : vector<8x128xf32>
    %459 = vector.extract_strided_slice %442 {offsets = [0, 256], sizes = [8, 128], strides = [1, 1]} : vector<8x512xf32> to vector<8x128xf32>
    %460 = math.tanh %459 : vector<8x128xf32>
    %461 = vector.extract_strided_slice %442 {offsets = [0, 384], sizes = [8, 128], strides = [1, 1]} : vector<8x512xf32> to vector<8x128xf32>
    %cst_164 = arith.constant 5.000000e-01 : f32
    %462 = vector.broadcast %cst_164 : f32 to vector<8x128xf32>
    %463 = arith.mulf %462, %461 : vector<8x128xf32>
    %464 = math.tanh %463 : vector<8x128xf32>
    %cst_165 = arith.constant 5.000000e-01 : f32
    %465 = vector.broadcast %cst_165 : f32 to vector<8x128xf32>
    %466 = arith.mulf %465, %464 : vector<8x128xf32>
    %cst_166 = arith.constant 5.000000e-01 : f32
    %467 = vector.broadcast %cst_166 : f32 to vector<8x128xf32>
    %468 = arith.addf %466, %467 : vector<8x128xf32>
    %469 = arith.mulf %458, %434 : vector<8x128xf32>
    %470 = arith.mulf %450, %460 : vector<8x128xf32>
    %471 = arith.addf %469, %470 : vector<8x128xf32>
    %472 = math.tanh %471 : vector<8x128xf32>
    %473 = arith.mulf %468, %472 : vector<8x128xf32>
    %474 = vector.extract_strided_slice %473 {offsets = [0, 0], sizes = [8, 64], strides = [1, 1]} : vector<8x128xf32> to vector<8x64xf32>
    %c0_167 = arith.constant 0 : index
    %c0_168 = arith.constant 0 : index
    %c0_169 = arith.constant 0 : index
    %475 = vector.load %arg8[%c0_167, %c0_168, %c0_169] : memref<8x8x128xf32, #tpu.memory_space<vmem>>, vector<1x8x64xf32>
    %476 = vector.shape_cast %475 : vector<1x8x64xf32> to vector<8x64xf32>
    %477 = vector.shape_cast %474 : vector<8x64xf32> to vector<1x8x64xf32>
    tpu.vector_store %arg8[%c0_167, %c0_168, %c0_169], %477 {strides = array<i32>} : memref<8x8x128xf32, #tpu.memory_space<vmem>>, vector<1x8x64xf32>,
    %478 = vector.extract_strided_slice %473 {offsets = [0, 64], sizes = [8, 64], strides = [1, 1]} : vector<8x128xf32> to vector<8x64xf32>
    %c7_170 = arith.constant 7 : index
    %c0_171 = arith.constant 0 : index
    %c64_172 = arith.constant 64 : index
    %479 = vector.load %arg8[%c7_170, %c0_171, %c64_172] : memref<8x8x128xf32, #tpu.memory_space<vmem>>, vector<1x8x64xf32>
    %480 = vector.shape_cast %479 : vector<1x8x64xf32> to vector<8x64xf32>
    %481 = vector.shape_cast %478 : vector<8x64xf32> to vector<1x8x64xf32>
    tpu.vector_store %arg8[%c7_170, %c0_171, %c64_172], %481 {strides = array<i32>} : memref<8x8x128xf32, #tpu.memory_space<vmem>>, vector<1x8x64xf32>,
    %482 = vector.extract_strided_slice %432 {offsets = [1, 0, 0], sizes = [1, 8, 512], strides = [1, 1, 1]} : vector<8x8x512xf32> to vector<1x8x512xf32>
    %483 = vector.shape_cast %482 : vector<1x8x512xf32> to vector<8x512xf32>
    %484 = vector.extract_strided_slice %432 {offsets = [6, 0, 0], sizes = [1, 8, 512], strides = [1, 1, 1]} : vector<8x8x512xf32> to vector<1x8x512xf32>
    %485 = vector.shape_cast %484 : vector<1x8x512xf32> to vector<8x512xf32>
    %486 = arith.select %18, %483, %485 : vector<8x512xi1>, vector<8x512xf32>
    %487 = arith.truncf %473 : vector<8x128xf32> to vector<8x128xbf16>
    %cst_173 = arith.constant dense<0.000000e+00> : vector<8x512xf32>
    %488 = tpu.matmul %487, %425, %cst_173 {dimension_numbers = #tpu.dot_dimension_numbers<[1], [0], [0], [1], [0, 0, 1, 1], [], []>} : vector<8x128xbf16>, vector<128x512xbf16>, vector<8x512xf32> -> vector<8x512xf32>
    %489 = arith.addf %486, %488 : vector<8x512xf32>
    %490 = vector.extract_strided_slice %489 {offsets = [0, 0], sizes = [8, 128], strides = [1, 1]} : vector<8x512xf32> to vector<8x128xf32>
    %cst_174 = arith.constant 5.000000e-01 : f32
    %491 = vector.broadcast %cst_174 : f32 to vector<8x128xf32>
    %492 = arith.mulf %491, %490 : vector<8x128xf32>
    %493 = math.tanh %492 : vector<8x128xf32>
    %cst_175 = arith.constant 5.000000e-01 : f32
    %494 = vector.broadcast %cst_175 : f32 to vector<8x128xf32>
    %495 = arith.mulf %494, %493 : vector<8x128xf32>
    %cst_176 = arith.constant 5.000000e-01 : f32
    %496 = vector.broadcast %cst_176 : f32 to vector<8x128xf32>
    %497 = arith.addf %495, %496 : vector<8x128xf32>
    %498 = vector.extract_strided_slice %489 {offsets = [0, 128], sizes = [8, 128], strides = [1, 1]} : vector<8x512xf32> to vector<8x128xf32>
    %cst_177 = arith.constant 5.000000e-01 : f32
    %499 = vector.broadcast %cst_177 : f32 to vector<8x128xf32>
    %500 = arith.mulf %499, %498 : vector<8x128xf32>
    %501 = math.tanh %500 : vector<8x128xf32>
    %cst_178 = arith.constant 5.000000e-01 : f32
    %502 = vector.broadcast %cst_178 : f32 to vector<8x128xf32>
    %503 = arith.mulf %502, %501 : vector<8x128xf32>
    %cst_179 = arith.constant 5.000000e-01 : f32
    %504 = vector.broadcast %cst_179 : f32 to vector<8x128xf32>
    %505 = arith.addf %503, %504 : vector<8x128xf32>
    %506 = vector.extract_strided_slice %489 {offsets = [0, 256], sizes = [8, 128], strides = [1, 1]} : vector<8x512xf32> to vector<8x128xf32>
    %507 = math.tanh %506 : vector<8x128xf32>
    %508 = vector.extract_strided_slice %489 {offsets = [0, 384], sizes = [8, 128], strides = [1, 1]} : vector<8x512xf32> to vector<8x128xf32>
    %cst_180 = arith.constant 5.000000e-01 : f32
    %509 = vector.broadcast %cst_180 : f32 to vector<8x128xf32>
    %510 = arith.mulf %509, %508 : vector<8x128xf32>
    %511 = math.tanh %510 : vector<8x128xf32>
    %cst_181 = arith.constant 5.000000e-01 : f32
    %512 = vector.broadcast %cst_181 : f32 to vector<8x128xf32>
    %513 = arith.mulf %512, %511 : vector<8x128xf32>
    %cst_182 = arith.constant 5.000000e-01 : f32
    %514 = vector.broadcast %cst_182 : f32 to vector<8x128xf32>
    %515 = arith.addf %513, %514 : vector<8x128xf32>
    %516 = arith.mulf %505, %471 : vector<8x128xf32>
    %517 = arith.mulf %497, %507 : vector<8x128xf32>
    %518 = arith.addf %516, %517 : vector<8x128xf32>
    %519 = math.tanh %518 : vector<8x128xf32>
    %520 = arith.mulf %515, %519 : vector<8x128xf32>
    %521 = vector.extract_strided_slice %520 {offsets = [0, 0], sizes = [8, 64], strides = [1, 1]} : vector<8x128xf32> to vector<8x64xf32>
    %c1_183 = arith.constant 1 : index
    %c0_184 = arith.constant 0 : index
    %c0_185 = arith.constant 0 : index
    %522 = vector.load %arg8[%c1_183, %c0_184, %c0_185] : memref<8x8x128xf32, #tpu.memory_space<vmem>>, vector<1x8x64xf32>
    %523 = vector.shape_cast %522 : vector<1x8x64xf32> to vector<8x64xf32>
    %524 = vector.shape_cast %521 : vector<8x64xf32> to vector<1x8x64xf32>
    tpu.vector_store %arg8[%c1_183, %c0_184, %c0_185], %524 {strides = array<i32>} : memref<8x8x128xf32, #tpu.memory_space<vmem>>, vector<1x8x64xf32>,
    %525 = vector.extract_strided_slice %520 {offsets = [0, 64], sizes = [8, 64], strides = [1, 1]} : vector<8x128xf32> to vector<8x64xf32>
    %c6_186 = arith.constant 6 : index
    %c0_187 = arith.constant 0 : index
    %c64_188 = arith.constant 64 : index
    %526 = vector.load %arg8[%c6_186, %c0_187, %c64_188] : memref<8x8x128xf32, #tpu.memory_space<vmem>>, vector<1x8x64xf32>
    %527 = vector.shape_cast %526 : vector<1x8x64xf32> to vector<8x64xf32>
    %528 = vector.shape_cast %525 : vector<8x64xf32> to vector<1x8x64xf32>
    tpu.vector_store %arg8[%c6_186, %c0_187, %c64_188], %528 {strides = array<i32>} : memref<8x8x128xf32, #tpu.memory_space<vmem>>, vector<1x8x64xf32>,
    %529 = vector.extract_strided_slice %432 {offsets = [2, 0, 0], sizes = [1, 8, 512], strides = [1, 1, 1]} : vector<8x8x512xf32> to vector<1x8x512xf32>
    %530 = vector.shape_cast %529 : vector<1x8x512xf32> to vector<8x512xf32>
    %531 = vector.extract_strided_slice %432 {offsets = [5, 0, 0], sizes = [1, 8, 512], strides = [1, 1, 1]} : vector<8x8x512xf32> to vector<1x8x512xf32>
    %532 = vector.shape_cast %531 : vector<1x8x512xf32> to vector<8x512xf32>
    %533 = arith.select %18, %530, %532 : vector<8x512xi1>, vector<8x512xf32>
    %534 = arith.truncf %520 : vector<8x128xf32> to vector<8x128xbf16>
    %cst_189 = arith.constant dense<0.000000e+00> : vector<8x512xf32>
    %535 = tpu.matmul %534, %425, %cst_189 {dimension_numbers = #tpu.dot_dimension_numbers<[1], [0], [0], [1], [0, 0, 1, 1], [], []>} : vector<8x128xbf16>, vector<128x512xbf16>, vector<8x512xf32> -> vector<8x512xf32>
    %536 = arith.addf %533, %535 : vector<8x512xf32>
    %537 = vector.extract_strided_slice %536 {offsets = [0, 0], sizes = [8, 128], strides = [1, 1]} : vector<8x512xf32> to vector<8x128xf32>
    %cst_190 = arith.constant 5.000000e-01 : f32
    %538 = vector.broadcast %cst_190 : f32 to vector<8x128xf32>
    %539 = arith.mulf %538, %537 : vector<8x128xf32>
    %540 = math.tanh %539 : vector<8x128xf32>
    %cst_191 = arith.constant 5.000000e-01 : f32
    %541 = vector.broadcast %cst_191 : f32 to vector<8x128xf32>
    %542 = arith.mulf %541, %540 : vector<8x128xf32>
    %cst_192 = arith.constant 5.000000e-01 : f32
    %543 = vector.broadcast %cst_192 : f32 to vector<8x128xf32>
    %544 = arith.addf %542, %543 : vector<8x128xf32>
    %545 = vector.extract_strided_slice %536 {offsets = [0, 128], sizes = [8, 128], strides = [1, 1]} : vector<8x512xf32> to vector<8x128xf32>
    %cst_193 = arith.constant 5.000000e-01 : f32
    %546 = vector.broadcast %cst_193 : f32 to vector<8x128xf32>
    %547 = arith.mulf %546, %545 : vector<8x128xf32>
    %548 = math.tanh %547 : vector<8x128xf32>
    %cst_194 = arith.constant 5.000000e-01 : f32
    %549 = vector.broadcast %cst_194 : f32 to vector<8x128xf32>
    %550 = arith.mulf %549, %548 : vector<8x128xf32>
    %cst_195 = arith.constant 5.000000e-01 : f32
    %551 = vector.broadcast %cst_195 : f32 to vector<8x128xf32>
    %552 = arith.addf %550, %551 : vector<8x128xf32>
    %553 = vector.extract_strided_slice %536 {offsets = [0, 256], sizes = [8, 128], strides = [1, 1]} : vector<8x512xf32> to vector<8x128xf32>
    %554 = math.tanh %553 : vector<8x128xf32>
    %555 = vector.extract_strided_slice %536 {offsets = [0, 384], sizes = [8, 128], strides = [1, 1]} : vector<8x512xf32> to vector<8x128xf32>
    %cst_196 = arith.constant 5.000000e-01 : f32
    %556 = vector.broadcast %cst_196 : f32 to vector<8x128xf32>
    %557 = arith.mulf %556, %555 : vector<8x128xf32>
    %558 = math.tanh %557 : vector<8x128xf32>
    %cst_197 = arith.constant 5.000000e-01 : f32
    %559 = vector.broadcast %cst_197 : f32 to vector<8x128xf32>
    %560 = arith.mulf %559, %558 : vector<8x128xf32>
    %cst_198 = arith.constant 5.000000e-01 : f32
    %561 = vector.broadcast %cst_198 : f32 to vector<8x128xf32>
    %562 = arith.addf %560, %561 : vector<8x128xf32>
    %563 = arith.mulf %552, %518 : vector<8x128xf32>
    %564 = arith.mulf %544, %554 : vector<8x128xf32>
    %565 = arith.addf %563, %564 : vector<8x128xf32>
    %566 = math.tanh %565 : vector<8x128xf32>
    %567 = arith.mulf %562, %566 : vector<8x128xf32>
    %568 = vector.extract_strided_slice %567 {offsets = [0, 0], sizes = [8, 64], strides = [1, 1]} : vector<8x128xf32> to vector<8x64xf32>
    %c2_199 = arith.constant 2 : index
    %c0_200 = arith.constant 0 : index
    %c0_201 = arith.constant 0 : index
    %569 = vector.load %arg8[%c2_199, %c0_200, %c0_201] : memref<8x8x128xf32, #tpu.memory_space<vmem>>, vector<1x8x64xf32>
    %570 = vector.shape_cast %569 : vector<1x8x64xf32> to vector<8x64xf32>
    %571 = vector.shape_cast %568 : vector<8x64xf32> to vector<1x8x64xf32>
    tpu.vector_store %arg8[%c2_199, %c0_200, %c0_201], %571 {strides = array<i32>} : memref<8x8x128xf32, #tpu.memory_space<vmem>>, vector<1x8x64xf32>,
    %572 = vector.extract_strided_slice %567 {offsets = [0, 64], sizes = [8, 64], strides = [1, 1]} : vector<8x128xf32> to vector<8x64xf32>
    %c5_202 = arith.constant 5 : index
    %c0_203 = arith.constant 0 : index
    %c64_204 = arith.constant 64 : index
    %573 = vector.load %arg8[%c5_202, %c0_203, %c64_204] : memref<8x8x128xf32, #tpu.memory_space<vmem>>, vector<1x8x64xf32>
    %574 = vector.shape_cast %573 : vector<1x8x64xf32> to vector<8x64xf32>
    %575 = vector.shape_cast %572 : vector<8x64xf32> to vector<1x8x64xf32>
    tpu.vector_store %arg8[%c5_202, %c0_203, %c64_204], %575 {strides = array<i32>} : memref<8x8x128xf32, #tpu.memory_space<vmem>>, vector<1x8x64xf32>,
    %576 = vector.extract_strided_slice %432 {offsets = [3, 0, 0], sizes = [1, 8, 512], strides = [1, 1, 1]} : vector<8x8x512xf32> to vector<1x8x512xf32>
    %577 = vector.shape_cast %576 : vector<1x8x512xf32> to vector<8x512xf32>
    %578 = vector.extract_strided_slice %432 {offsets = [4, 0, 0], sizes = [1, 8, 512], strides = [1, 1, 1]} : vector<8x8x512xf32> to vector<1x8x512xf32>
    %579 = vector.shape_cast %578 : vector<1x8x512xf32> to vector<8x512xf32>
    %580 = arith.select %18, %577, %579 : vector<8x512xi1>, vector<8x512xf32>
    %581 = arith.truncf %567 : vector<8x128xf32> to vector<8x128xbf16>
    %cst_205 = arith.constant dense<0.000000e+00> : vector<8x512xf32>
    %582 = tpu.matmul %581, %425, %cst_205 {dimension_numbers = #tpu.dot_dimension_numbers<[1], [0], [0], [1], [0, 0, 1, 1], [], []>} : vector<8x128xbf16>, vector<128x512xbf16>, vector<8x512xf32> -> vector<8x512xf32>
    %583 = arith.addf %580, %582 : vector<8x512xf32>
    %584 = vector.extract_strided_slice %583 {offsets = [0, 0], sizes = [8, 128], strides = [1, 1]} : vector<8x512xf32> to vector<8x128xf32>
    %cst_206 = arith.constant 5.000000e-01 : f32
    %585 = vector.broadcast %cst_206 : f32 to vector<8x128xf32>
    %586 = arith.mulf %585, %584 : vector<8x128xf32>
    %587 = math.tanh %586 : vector<8x128xf32>
    %cst_207 = arith.constant 5.000000e-01 : f32
    %588 = vector.broadcast %cst_207 : f32 to vector<8x128xf32>
    %589 = arith.mulf %588, %587 : vector<8x128xf32>
    %cst_208 = arith.constant 5.000000e-01 : f32
    %590 = vector.broadcast %cst_208 : f32 to vector<8x128xf32>
    %591 = arith.addf %589, %590 : vector<8x128xf32>
    %592 = vector.extract_strided_slice %583 {offsets = [0, 128], sizes = [8, 128], strides = [1, 1]} : vector<8x512xf32> to vector<8x128xf32>
    %cst_209 = arith.constant 5.000000e-01 : f32
    %593 = vector.broadcast %cst_209 : f32 to vector<8x128xf32>
    %594 = arith.mulf %593, %592 : vector<8x128xf32>
    %595 = math.tanh %594 : vector<8x128xf32>
    %cst_210 = arith.constant 5.000000e-01 : f32
    %596 = vector.broadcast %cst_210 : f32 to vector<8x128xf32>
    %597 = arith.mulf %596, %595 : vector<8x128xf32>
    %cst_211 = arith.constant 5.000000e-01 : f32
    %598 = vector.broadcast %cst_211 : f32 to vector<8x128xf32>
    %599 = arith.addf %597, %598 : vector<8x128xf32>
    %600 = vector.extract_strided_slice %583 {offsets = [0, 256], sizes = [8, 128], strides = [1, 1]} : vector<8x512xf32> to vector<8x128xf32>
    %601 = math.tanh %600 : vector<8x128xf32>
    %602 = vector.extract_strided_slice %583 {offsets = [0, 384], sizes = [8, 128], strides = [1, 1]} : vector<8x512xf32> to vector<8x128xf32>
    %cst_212 = arith.constant 5.000000e-01 : f32
    %603 = vector.broadcast %cst_212 : f32 to vector<8x128xf32>
    %604 = arith.mulf %603, %602 : vector<8x128xf32>
    %605 = math.tanh %604 : vector<8x128xf32>
    %cst_213 = arith.constant 5.000000e-01 : f32
    %606 = vector.broadcast %cst_213 : f32 to vector<8x128xf32>
    %607 = arith.mulf %606, %605 : vector<8x128xf32>
    %cst_214 = arith.constant 5.000000e-01 : f32
    %608 = vector.broadcast %cst_214 : f32 to vector<8x128xf32>
    %609 = arith.addf %607, %608 : vector<8x128xf32>
    %610 = arith.mulf %599, %565 : vector<8x128xf32>
    %611 = arith.mulf %591, %601 : vector<8x128xf32>
    %612 = arith.addf %610, %611 : vector<8x128xf32>
    %613 = math.tanh %612 : vector<8x128xf32>
    %614 = arith.mulf %609, %613 : vector<8x128xf32>
    %615 = vector.extract_strided_slice %614 {offsets = [0, 0], sizes = [8, 64], strides = [1, 1]} : vector<8x128xf32> to vector<8x64xf32>
    %c3_215 = arith.constant 3 : index
    %c0_216 = arith.constant 0 : index
    %c0_217 = arith.constant 0 : index
    %616 = vector.load %arg8[%c3_215, %c0_216, %c0_217] : memref<8x8x128xf32, #tpu.memory_space<vmem>>, vector<1x8x64xf32>
    %617 = vector.shape_cast %616 : vector<1x8x64xf32> to vector<8x64xf32>
    %618 = vector.shape_cast %615 : vector<8x64xf32> to vector<1x8x64xf32>
    tpu.vector_store %arg8[%c3_215, %c0_216, %c0_217], %618 {strides = array<i32>} : memref<8x8x128xf32, #tpu.memory_space<vmem>>, vector<1x8x64xf32>,
    %619 = vector.extract_strided_slice %614 {offsets = [0, 64], sizes = [8, 64], strides = [1, 1]} : vector<8x128xf32> to vector<8x64xf32>
    %c4_218 = arith.constant 4 : index
    %c0_219 = arith.constant 0 : index
    %c64_220 = arith.constant 64 : index
    %620 = vector.load %arg8[%c4_218, %c0_219, %c64_220] : memref<8x8x128xf32, #tpu.memory_space<vmem>>, vector<1x8x64xf32>
    %621 = vector.shape_cast %620 : vector<1x8x64xf32> to vector<8x64xf32>
    %622 = vector.shape_cast %619 : vector<8x64xf32> to vector<1x8x64xf32>
    tpu.vector_store %arg8[%c4_218, %c0_219, %c64_220], %622 {strides = array<i32>} : memref<8x8x128xf32, #tpu.memory_space<vmem>>, vector<1x8x64xf32>,
    %623 = vector.extract_strided_slice %432 {offsets = [4, 0, 0], sizes = [1, 8, 512], strides = [1, 1, 1]} : vector<8x8x512xf32> to vector<1x8x512xf32>
    %624 = vector.shape_cast %623 : vector<1x8x512xf32> to vector<8x512xf32>
    %625 = vector.extract_strided_slice %432 {offsets = [3, 0, 0], sizes = [1, 8, 512], strides = [1, 1, 1]} : vector<8x8x512xf32> to vector<1x8x512xf32>
    %626 = vector.shape_cast %625 : vector<1x8x512xf32> to vector<8x512xf32>
    %627 = arith.select %18, %624, %626 : vector<8x512xi1>, vector<8x512xf32>
    %628 = arith.truncf %614 : vector<8x128xf32> to vector<8x128xbf16>
    %cst_221 = arith.constant dense<0.000000e+00> : vector<8x512xf32>
    %629 = tpu.matmul %628, %425, %cst_221 {dimension_numbers = #tpu.dot_dimension_numbers<[1], [0], [0], [1], [0, 0, 1, 1], [], []>} : vector<8x128xbf16>, vector<128x512xbf16>, vector<8x512xf32> -> vector<8x512xf32>
    %630 = arith.addf %627, %629 : vector<8x512xf32>
    %631 = vector.extract_strided_slice %630 {offsets = [0, 0], sizes = [8, 128], strides = [1, 1]} : vector<8x512xf32> to vector<8x128xf32>
    %cst_222 = arith.constant 5.000000e-01 : f32
    %632 = vector.broadcast %cst_222 : f32 to vector<8x128xf32>
    %633 = arith.mulf %632, %631 : vector<8x128xf32>
    %634 = math.tanh %633 : vector<8x128xf32>
    %cst_223 = arith.constant 5.000000e-01 : f32
    %635 = vector.broadcast %cst_223 : f32 to vector<8x128xf32>
    %636 = arith.mulf %635, %634 : vector<8x128xf32>
    %cst_224 = arith.constant 5.000000e-01 : f32
    %637 = vector.broadcast %cst_224 : f32 to vector<8x128xf32>
    %638 = arith.addf %636, %637 : vector<8x128xf32>
    %639 = vector.extract_strided_slice %630 {offsets = [0, 128], sizes = [8, 128], strides = [1, 1]} : vector<8x512xf32> to vector<8x128xf32>
    %cst_225 = arith.constant 5.000000e-01 : f32
    %640 = vector.broadcast %cst_225 : f32 to vector<8x128xf32>
    %641 = arith.mulf %640, %639 : vector<8x128xf32>
    %642 = math.tanh %641 : vector<8x128xf32>
    %cst_226 = arith.constant 5.000000e-01 : f32
    %643 = vector.broadcast %cst_226 : f32 to vector<8x128xf32>
    %644 = arith.mulf %643, %642 : vector<8x128xf32>
    %cst_227 = arith.constant 5.000000e-01 : f32
    %645 = vector.broadcast %cst_227 : f32 to vector<8x128xf32>
    %646 = arith.addf %644, %645 : vector<8x128xf32>
    %647 = vector.extract_strided_slice %630 {offsets = [0, 256], sizes = [8, 128], strides = [1, 1]} : vector<8x512xf32> to vector<8x128xf32>
    %648 = math.tanh %647 : vector<8x128xf32>
    %649 = vector.extract_strided_slice %630 {offsets = [0, 384], sizes = [8, 128], strides = [1, 1]} : vector<8x512xf32> to vector<8x128xf32>
    %cst_228 = arith.constant 5.000000e-01 : f32
    %650 = vector.broadcast %cst_228 : f32 to vector<8x128xf32>
    %651 = arith.mulf %650, %649 : vector<8x128xf32>
    %652 = math.tanh %651 : vector<8x128xf32>
    %cst_229 = arith.constant 5.000000e-01 : f32
    %653 = vector.broadcast %cst_229 : f32 to vector<8x128xf32>
    %654 = arith.mulf %653, %652 : vector<8x128xf32>
    %cst_230 = arith.constant 5.000000e-01 : f32
    %655 = vector.broadcast %cst_230 : f32 to vector<8x128xf32>
    %656 = arith.addf %654, %655 : vector<8x128xf32>
    %657 = arith.mulf %646, %612 : vector<8x128xf32>
    %658 = arith.mulf %638, %648 : vector<8x128xf32>
    %659 = arith.addf %657, %658 : vector<8x128xf32>
    %660 = math.tanh %659 : vector<8x128xf32>
    %661 = arith.mulf %656, %660 : vector<8x128xf32>
    %662 = vector.extract_strided_slice %661 {offsets = [0, 0], sizes = [8, 64], strides = [1, 1]} : vector<8x128xf32> to vector<8x64xf32>
    %c4_231 = arith.constant 4 : index
    %c0_232 = arith.constant 0 : index
    %c0_233 = arith.constant 0 : index
    %663 = vector.load %arg8[%c4_231, %c0_232, %c0_233] : memref<8x8x128xf32, #tpu.memory_space<vmem>>, vector<1x8x64xf32>
    %664 = vector.shape_cast %663 : vector<1x8x64xf32> to vector<8x64xf32>
    %665 = vector.shape_cast %662 : vector<8x64xf32> to vector<1x8x64xf32>
    tpu.vector_store %arg8[%c4_231, %c0_232, %c0_233], %665 {strides = array<i32>} : memref<8x8x128xf32, #tpu.memory_space<vmem>>, vector<1x8x64xf32>,
    %666 = vector.extract_strided_slice %661 {offsets = [0, 64], sizes = [8, 64], strides = [1, 1]} : vector<8x128xf32> to vector<8x64xf32>
    %c3_234 = arith.constant 3 : index
    %c0_235 = arith.constant 0 : index
    %c64_236 = arith.constant 64 : index
    %667 = vector.load %arg8[%c3_234, %c0_235, %c64_236] : memref<8x8x128xf32, #tpu.memory_space<vmem>>, vector<1x8x64xf32>
    %668 = vector.shape_cast %667 : vector<1x8x64xf32> to vector<8x64xf32>
    %669 = vector.shape_cast %666 : vector<8x64xf32> to vector<1x8x64xf32>
    tpu.vector_store %arg8[%c3_234, %c0_235, %c64_236], %669 {strides = array<i32>} : memref<8x8x128xf32, #tpu.memory_space<vmem>>, vector<1x8x64xf32>,
    %670 = vector.extract_strided_slice %432 {offsets = [5, 0, 0], sizes = [1, 8, 512], strides = [1, 1, 1]} : vector<8x8x512xf32> to vector<1x8x512xf32>
    %671 = vector.shape_cast %670 : vector<1x8x512xf32> to vector<8x512xf32>
    %672 = vector.extract_strided_slice %432 {offsets = [2, 0, 0], sizes = [1, 8, 512], strides = [1, 1, 1]} : vector<8x8x512xf32> to vector<1x8x512xf32>
    %673 = vector.shape_cast %672 : vector<1x8x512xf32> to vector<8x512xf32>
    %674 = arith.select %18, %671, %673 : vector<8x512xi1>, vector<8x512xf32>
    %675 = arith.truncf %661 : vector<8x128xf32> to vector<8x128xbf16>
    %cst_237 = arith.constant dense<0.000000e+00> : vector<8x512xf32>
    %676 = tpu.matmul %675, %425, %cst_237 {dimension_numbers = #tpu.dot_dimension_numbers<[1], [0], [0], [1], [0, 0, 1, 1], [], []>} : vector<8x128xbf16>, vector<128x512xbf16>, vector<8x512xf32> -> vector<8x512xf32>
    %677 = arith.addf %674, %676 : vector<8x512xf32>
    %678 = vector.extract_strided_slice %677 {offsets = [0, 0], sizes = [8, 128], strides = [1, 1]} : vector<8x512xf32> to vector<8x128xf32>
    %cst_238 = arith.constant 5.000000e-01 : f32
    %679 = vector.broadcast %cst_238 : f32 to vector<8x128xf32>
    %680 = arith.mulf %679, %678 : vector<8x128xf32>
    %681 = math.tanh %680 : vector<8x128xf32>
    %cst_239 = arith.constant 5.000000e-01 : f32
    %682 = vector.broadcast %cst_239 : f32 to vector<8x128xf32>
    %683 = arith.mulf %682, %681 : vector<8x128xf32>
    %cst_240 = arith.constant 5.000000e-01 : f32
    %684 = vector.broadcast %cst_240 : f32 to vector<8x128xf32>
    %685 = arith.addf %683, %684 : vector<8x128xf32>
    %686 = vector.extract_strided_slice %677 {offsets = [0, 128], sizes = [8, 128], strides = [1, 1]} : vector<8x512xf32> to vector<8x128xf32>
    %cst_241 = arith.constant 5.000000e-01 : f32
    %687 = vector.broadcast %cst_241 : f32 to vector<8x128xf32>
    %688 = arith.mulf %687, %686 : vector<8x128xf32>
    %689 = math.tanh %688 : vector<8x128xf32>
    %cst_242 = arith.constant 5.000000e-01 : f32
    %690 = vector.broadcast %cst_242 : f32 to vector<8x128xf32>
    %691 = arith.mulf %690, %689 : vector<8x128xf32>
    %cst_243 = arith.constant 5.000000e-01 : f32
    %692 = vector.broadcast %cst_243 : f32 to vector<8x128xf32>
    %693 = arith.addf %691, %692 : vector<8x128xf32>
    %694 = vector.extract_strided_slice %677 {offsets = [0, 256], sizes = [8, 128], strides = [1, 1]} : vector<8x512xf32> to vector<8x128xf32>
    %695 = math.tanh %694 : vector<8x128xf32>
    %696 = vector.extract_strided_slice %677 {offsets = [0, 384], sizes = [8, 128], strides = [1, 1]} : vector<8x512xf32> to vector<8x128xf32>
    %cst_244 = arith.constant 5.000000e-01 : f32
    %697 = vector.broadcast %cst_244 : f32 to vector<8x128xf32>
    %698 = arith.mulf %697, %696 : vector<8x128xf32>
    %699 = math.tanh %698 : vector<8x128xf32>
    %cst_245 = arith.constant 5.000000e-01 : f32
    %700 = vector.broadcast %cst_245 : f32 to vector<8x128xf32>
    %701 = arith.mulf %700, %699 : vector<8x128xf32>
    %cst_246 = arith.constant 5.000000e-01 : f32
    %702 = vector.broadcast %cst_246 : f32 to vector<8x128xf32>
    %703 = arith.addf %701, %702 : vector<8x128xf32>
    %704 = arith.mulf %693, %659 : vector<8x128xf32>
    %705 = arith.mulf %685, %695 : vector<8x128xf32>
    %706 = arith.addf %704, %705 : vector<8x128xf32>
    %707 = math.tanh %706 : vector<8x128xf32>
    %708 = arith.mulf %703, %707 : vector<8x128xf32>
    %709 = vector.extract_strided_slice %708 {offsets = [0, 0], sizes = [8, 64], strides = [1, 1]} : vector<8x128xf32> to vector<8x64xf32>
    %c5_247 = arith.constant 5 : index
    %c0_248 = arith.constant 0 : index
    %c0_249 = arith.constant 0 : index
    %710 = vector.load %arg8[%c5_247, %c0_248, %c0_249] : memref<8x8x128xf32, #tpu.memory_space<vmem>>, vector<1x8x64xf32>
    %711 = vector.shape_cast %710 : vector<1x8x64xf32> to vector<8x64xf32>
    %712 = vector.shape_cast %709 : vector<8x64xf32> to vector<1x8x64xf32>
    tpu.vector_store %arg8[%c5_247, %c0_248, %c0_249], %712 {strides = array<i32>} : memref<8x8x128xf32, #tpu.memory_space<vmem>>, vector<1x8x64xf32>,
    %713 = vector.extract_strided_slice %708 {offsets = [0, 64], sizes = [8, 64], strides = [1, 1]} : vector<8x128xf32> to vector<8x64xf32>
    %c2_250 = arith.constant 2 : index
    %c0_251 = arith.constant 0 : index
    %c64_252 = arith.constant 64 : index
    %714 = vector.load %arg8[%c2_250, %c0_251, %c64_252] : memref<8x8x128xf32, #tpu.memory_space<vmem>>, vector<1x8x64xf32>
    %715 = vector.shape_cast %714 : vector<1x8x64xf32> to vector<8x64xf32>
    %716 = vector.shape_cast %713 : vector<8x64xf32> to vector<1x8x64xf32>
    tpu.vector_store %arg8[%c2_250, %c0_251, %c64_252], %716 {strides = array<i32>} : memref<8x8x128xf32, #tpu.memory_space<vmem>>, vector<1x8x64xf32>,
    %717 = vector.extract_strided_slice %432 {offsets = [6, 0, 0], sizes = [1, 8, 512], strides = [1, 1, 1]} : vector<8x8x512xf32> to vector<1x8x512xf32>
    %718 = vector.shape_cast %717 : vector<1x8x512xf32> to vector<8x512xf32>
    %719 = vector.extract_strided_slice %432 {offsets = [1, 0, 0], sizes = [1, 8, 512], strides = [1, 1, 1]} : vector<8x8x512xf32> to vector<1x8x512xf32>
    %720 = vector.shape_cast %719 : vector<1x8x512xf32> to vector<8x512xf32>
    %721 = arith.select %18, %718, %720 : vector<8x512xi1>, vector<8x512xf32>
    %722 = arith.truncf %708 : vector<8x128xf32> to vector<8x128xbf16>
    %cst_253 = arith.constant dense<0.000000e+00> : vector<8x512xf32>
    %723 = tpu.matmul %722, %425, %cst_253 {dimension_numbers = #tpu.dot_dimension_numbers<[1], [0], [0], [1], [0, 0, 1, 1], [], []>} : vector<8x128xbf16>, vector<128x512xbf16>, vector<8x512xf32> -> vector<8x512xf32>
    %724 = arith.addf %721, %723 : vector<8x512xf32>
    %725 = vector.extract_strided_slice %724 {offsets = [0, 0], sizes = [8, 128], strides = [1, 1]} : vector<8x512xf32> to vector<8x128xf32>
    %cst_254 = arith.constant 5.000000e-01 : f32
    %726 = vector.broadcast %cst_254 : f32 to vector<8x128xf32>
    %727 = arith.mulf %726, %725 : vector<8x128xf32>
    %728 = math.tanh %727 : vector<8x128xf32>
    %cst_255 = arith.constant 5.000000e-01 : f32
    %729 = vector.broadcast %cst_255 : f32 to vector<8x128xf32>
    %730 = arith.mulf %729, %728 : vector<8x128xf32>
    %cst_256 = arith.constant 5.000000e-01 : f32
    %731 = vector.broadcast %cst_256 : f32 to vector<8x128xf32>
    %732 = arith.addf %730, %731 : vector<8x128xf32>
    %733 = vector.extract_strided_slice %724 {offsets = [0, 128], sizes = [8, 128], strides = [1, 1]} : vector<8x512xf32> to vector<8x128xf32>
    %cst_257 = arith.constant 5.000000e-01 : f32
    %734 = vector.broadcast %cst_257 : f32 to vector<8x128xf32>
    %735 = arith.mulf %734, %733 : vector<8x128xf32>
    %736 = math.tanh %735 : vector<8x128xf32>
    %cst_258 = arith.constant 5.000000e-01 : f32
    %737 = vector.broadcast %cst_258 : f32 to vector<8x128xf32>
    %738 = arith.mulf %737, %736 : vector<8x128xf32>
    %cst_259 = arith.constant 5.000000e-01 : f32
    %739 = vector.broadcast %cst_259 : f32 to vector<8x128xf32>
    %740 = arith.addf %738, %739 : vector<8x128xf32>
    %741 = vector.extract_strided_slice %724 {offsets = [0, 256], sizes = [8, 128], strides = [1, 1]} : vector<8x512xf32> to vector<8x128xf32>
    %742 = math.tanh %741 : vector<8x128xf32>
    %743 = vector.extract_strided_slice %724 {offsets = [0, 384], sizes = [8, 128], strides = [1, 1]} : vector<8x512xf32> to vector<8x128xf32>
    %cst_260 = arith.constant 5.000000e-01 : f32
    %744 = vector.broadcast %cst_260 : f32 to vector<8x128xf32>
    %745 = arith.mulf %744, %743 : vector<8x128xf32>
    %746 = math.tanh %745 : vector<8x128xf32>
    %cst_261 = arith.constant 5.000000e-01 : f32
    %747 = vector.broadcast %cst_261 : f32 to vector<8x128xf32>
    %748 = arith.mulf %747, %746 : vector<8x128xf32>
    %cst_262 = arith.constant 5.000000e-01 : f32
    %749 = vector.broadcast %cst_262 : f32 to vector<8x128xf32>
    %750 = arith.addf %748, %749 : vector<8x128xf32>
    %751 = arith.mulf %740, %706 : vector<8x128xf32>
    %752 = arith.mulf %732, %742 : vector<8x128xf32>
    %753 = arith.addf %751, %752 : vector<8x128xf32>
    %754 = math.tanh %753 : vector<8x128xf32>
    %755 = arith.mulf %750, %754 : vector<8x128xf32>
    %756 = vector.extract_strided_slice %755 {offsets = [0, 0], sizes = [8, 64], strides = [1, 1]} : vector<8x128xf32> to vector<8x64xf32>
    %c6_263 = arith.constant 6 : index
    %c0_264 = arith.constant 0 : index
    %c0_265 = arith.constant 0 : index
    %757 = vector.load %arg8[%c6_263, %c0_264, %c0_265] : memref<8x8x128xf32, #tpu.memory_space<vmem>>, vector<1x8x64xf32>
    %758 = vector.shape_cast %757 : vector<1x8x64xf32> to vector<8x64xf32>
    %759 = vector.shape_cast %756 : vector<8x64xf32> to vector<1x8x64xf32>
    tpu.vector_store %arg8[%c6_263, %c0_264, %c0_265], %759 {strides = array<i32>} : memref<8x8x128xf32, #tpu.memory_space<vmem>>, vector<1x8x64xf32>,
    %760 = vector.extract_strided_slice %755 {offsets = [0, 64], sizes = [8, 64], strides = [1, 1]} : vector<8x128xf32> to vector<8x64xf32>
    %c1_266 = arith.constant 1 : index
    %c0_267 = arith.constant 0 : index
    %c64_268 = arith.constant 64 : index
    %761 = vector.load %arg8[%c1_266, %c0_267, %c64_268] : memref<8x8x128xf32, #tpu.memory_space<vmem>>, vector<1x8x64xf32>
    %762 = vector.shape_cast %761 : vector<1x8x64xf32> to vector<8x64xf32>
    %763 = vector.shape_cast %760 : vector<8x64xf32> to vector<1x8x64xf32>
    tpu.vector_store %arg8[%c1_266, %c0_267, %c64_268], %763 {strides = array<i32>} : memref<8x8x128xf32, #tpu.memory_space<vmem>>, vector<1x8x64xf32>,
    %764 = vector.extract_strided_slice %432 {offsets = [7, 0, 0], sizes = [1, 8, 512], strides = [1, 1, 1]} : vector<8x8x512xf32> to vector<1x8x512xf32>
    %765 = vector.shape_cast %764 : vector<1x8x512xf32> to vector<8x512xf32>
    %766 = vector.extract_strided_slice %432 {offsets = [0, 0, 0], sizes = [1, 8, 512], strides = [1, 1, 1]} : vector<8x8x512xf32> to vector<1x8x512xf32>
    %767 = vector.shape_cast %766 : vector<1x8x512xf32> to vector<8x512xf32>
    %768 = arith.select %18, %765, %767 : vector<8x512xi1>, vector<8x512xf32>
    %769 = arith.truncf %755 : vector<8x128xf32> to vector<8x128xbf16>
    %cst_269 = arith.constant dense<0.000000e+00> : vector<8x512xf32>
    %770 = tpu.matmul %769, %425, %cst_269 {dimension_numbers = #tpu.dot_dimension_numbers<[1], [0], [0], [1], [0, 0, 1, 1], [], []>} : vector<8x128xbf16>, vector<128x512xbf16>, vector<8x512xf32> -> vector<8x512xf32>
    %771 = arith.addf %768, %770 : vector<8x512xf32>
    %772 = vector.extract_strided_slice %771 {offsets = [0, 0], sizes = [8, 128], strides = [1, 1]} : vector<8x512xf32> to vector<8x128xf32>
    %cst_270 = arith.constant 5.000000e-01 : f32
    %773 = vector.broadcast %cst_270 : f32 to vector<8x128xf32>
    %774 = arith.mulf %773, %772 : vector<8x128xf32>
    %775 = math.tanh %774 : vector<8x128xf32>
    %cst_271 = arith.constant 5.000000e-01 : f32
    %776 = vector.broadcast %cst_271 : f32 to vector<8x128xf32>
    %777 = arith.mulf %776, %775 : vector<8x128xf32>
    %cst_272 = arith.constant 5.000000e-01 : f32
    %778 = vector.broadcast %cst_272 : f32 to vector<8x128xf32>
    %779 = arith.addf %777, %778 : vector<8x128xf32>
    %780 = vector.extract_strided_slice %771 {offsets = [0, 128], sizes = [8, 128], strides = [1, 1]} : vector<8x512xf32> to vector<8x128xf32>
    %cst_273 = arith.constant 5.000000e-01 : f32
    %781 = vector.broadcast %cst_273 : f32 to vector<8x128xf32>
    %782 = arith.mulf %781, %780 : vector<8x128xf32>
    %783 = math.tanh %782 : vector<8x128xf32>
    %cst_274 = arith.constant 5.000000e-01 : f32
    %784 = vector.broadcast %cst_274 : f32 to vector<8x128xf32>
    %785 = arith.mulf %784, %783 : vector<8x128xf32>
    %cst_275 = arith.constant 5.000000e-01 : f32
    %786 = vector.broadcast %cst_275 : f32 to vector<8x128xf32>
    %787 = arith.addf %785, %786 : vector<8x128xf32>
    %788 = vector.extract_strided_slice %771 {offsets = [0, 256], sizes = [8, 128], strides = [1, 1]} : vector<8x512xf32> to vector<8x128xf32>
    %789 = math.tanh %788 : vector<8x128xf32>
    %790 = vector.extract_strided_slice %771 {offsets = [0, 384], sizes = [8, 128], strides = [1, 1]} : vector<8x512xf32> to vector<8x128xf32>
    %cst_276 = arith.constant 5.000000e-01 : f32
    %791 = vector.broadcast %cst_276 : f32 to vector<8x128xf32>
    %792 = arith.mulf %791, %790 : vector<8x128xf32>
    %793 = math.tanh %792 : vector<8x128xf32>
    %cst_277 = arith.constant 5.000000e-01 : f32
    %794 = vector.broadcast %cst_277 : f32 to vector<8x128xf32>
    %795 = arith.mulf %794, %793 : vector<8x128xf32>
    %cst_278 = arith.constant 5.000000e-01 : f32
    %796 = vector.broadcast %cst_278 : f32 to vector<8x128xf32>
    %797 = arith.addf %795, %796 : vector<8x128xf32>
    %798 = arith.mulf %787, %753 : vector<8x128xf32>
    %799 = arith.mulf %779, %789 : vector<8x128xf32>
    %800 = arith.addf %798, %799 : vector<8x128xf32>
    %801 = math.tanh %800 : vector<8x128xf32>
    %802 = arith.mulf %797, %801 : vector<8x128xf32>
    %803 = vector.extract_strided_slice %802 {offsets = [0, 0], sizes = [8, 64], strides = [1, 1]} : vector<8x128xf32> to vector<8x64xf32>
    %c7_279 = arith.constant 7 : index
    %c0_280 = arith.constant 0 : index
    %c0_281 = arith.constant 0 : index
    %804 = vector.load %arg8[%c7_279, %c0_280, %c0_281] : memref<8x8x128xf32, #tpu.memory_space<vmem>>, vector<1x8x64xf32>
    %805 = vector.shape_cast %804 : vector<1x8x64xf32> to vector<8x64xf32>
    %806 = vector.shape_cast %803 : vector<8x64xf32> to vector<1x8x64xf32>
    tpu.vector_store %arg8[%c7_279, %c0_280, %c0_281], %806 {strides = array<i32>} : memref<8x8x128xf32, #tpu.memory_space<vmem>>, vector<1x8x64xf32>,
    %807 = vector.extract_strided_slice %802 {offsets = [0, 64], sizes = [8, 64], strides = [1, 1]} : vector<8x128xf32> to vector<8x64xf32>
    %c0_282 = arith.constant 0 : index
    %c0_283 = arith.constant 0 : index
    %c64_284 = arith.constant 64 : index
    %808 = vector.load %arg8[%c0_282, %c0_283, %c64_284] : memref<8x8x128xf32, #tpu.memory_space<vmem>>, vector<1x8x64xf32>
    %809 = vector.shape_cast %808 : vector<1x8x64xf32> to vector<8x64xf32>
    %810 = vector.shape_cast %807 : vector<8x64xf32> to vector<1x8x64xf32>
    tpu.vector_store %arg8[%c0_282, %c0_283, %c64_284], %810 {strides = array<i32>} : memref<8x8x128xf32, #tpu.memory_space<vmem>>, vector<1x8x64xf32>,
    %811 = vector.extract_strided_slice %802 {offsets = [0, 0], sizes = [8, 64], strides = [1, 1]} : vector<8x128xf32> to vector<8x64xf32>
    %c2_285 = arith.constant 2 : index
    %c0_286 = arith.constant 0 : index
    %c0_287 = arith.constant 0 : index
    %812 = vector.load %arg9[%c2_285, %c0_286, %c0_287] : memref<4x8x64xf32, #tpu.memory_space<vmem>>, vector<1x8x64xf32>
    %813 = vector.shape_cast %812 : vector<1x8x64xf32> to vector<8x64xf32>
    %814 = vector.shape_cast %811 : vector<8x64xf32> to vector<1x8x64xf32>
    tpu.vector_store %arg9[%c2_285, %c0_286, %c0_287], %814 {strides = array<i32>} : memref<4x8x64xf32, #tpu.memory_space<vmem>>, vector<1x8x64xf32>,
    %815 = vector.extract_strided_slice %800 {offsets = [0, 0], sizes = [8, 64], strides = [1, 1]} : vector<8x128xf32> to vector<8x64xf32>
    %c2_288 = arith.constant 2 : index
    %c0_289 = arith.constant 0 : index
    %c0_290 = arith.constant 0 : index
    %816 = vector.load %arg10[%c2_288, %c0_289, %c0_290] : memref<4x8x64xf32, #tpu.memory_space<vmem>>, vector<1x8x64xf32>
    %817 = vector.shape_cast %816 : vector<1x8x64xf32> to vector<8x64xf32>
    %818 = vector.shape_cast %815 : vector<8x64xf32> to vector<1x8x64xf32>
    tpu.vector_store %arg10[%c2_288, %c0_289, %c0_290], %818 {strides = array<i32>} : memref<4x8x64xf32, #tpu.memory_space<vmem>>, vector<1x8x64xf32>,
    %819 = vector.extract_strided_slice %802 {offsets = [0, 64], sizes = [8, 64], strides = [1, 1]} : vector<8x128xf32> to vector<8x64xf32>
    %c3_291 = arith.constant 3 : index
    %c0_292 = arith.constant 0 : index
    %c0_293 = arith.constant 0 : index
    %820 = vector.load %arg9[%c3_291, %c0_292, %c0_293] : memref<4x8x64xf32, #tpu.memory_space<vmem>>, vector<1x8x64xf32>
    %821 = vector.shape_cast %820 : vector<1x8x64xf32> to vector<8x64xf32>
    %822 = vector.shape_cast %819 : vector<8x64xf32> to vector<1x8x64xf32>
    tpu.vector_store %arg9[%c3_291, %c0_292, %c0_293], %822 {strides = array<i32>} : memref<4x8x64xf32, #tpu.memory_space<vmem>>, vector<1x8x64xf32>,
    %823 = vector.extract_strided_slice %800 {offsets = [0, 64], sizes = [8, 64], strides = [1, 1]} : vector<8x128xf32> to vector<8x64xf32>
    %c3_294 = arith.constant 3 : index
    %c0_295 = arith.constant 0 : index
    %c0_296 = arith.constant 0 : index
    %824 = vector.load %arg10[%c3_294, %c0_295, %c0_296] : memref<4x8x64xf32, #tpu.memory_space<vmem>>, vector<1x8x64xf32>
    %825 = vector.shape_cast %824 : vector<1x8x64xf32> to vector<8x64xf32>
    %826 = vector.shape_cast %823 : vector<8x64xf32> to vector<1x8x64xf32>
    tpu.vector_store %arg10[%c3_294, %c0_295, %c0_296], %826 {strides = array<i32>} : memref<4x8x64xf32, #tpu.memory_space<vmem>>, vector<1x8x64xf32>,
    return
  }
  func.func @transform_0(%arg0: i32) -> (i32, i32, i32) {
    %c0_i32 = arith.constant 0 : i32
    %c0_i32_0 = arith.constant 0 : i32
    %c0_i32_1 = arith.constant 0 : i32
    %c0_i32_2 = arith.constant 0 : i32
    return %c0_i32, %c0_i32_0, %c0_i32_1 : i32, i32, i32
  }
  func.func @transform_1(%arg0: i32) -> (i32, i32) {
    %c0_i32 = arith.constant 0 : i32
    %c0_i32_0 = arith.constant 0 : i32
    %c0_i32_1 = arith.constant 0 : i32
    return %c0_i32, %c0_i32_0 : i32, i32
  }
  func.func @transform_2(%arg0: i32) -> (i32, i32) {
    %c0_i32 = arith.constant 0 : i32
    %c0_i32_0 = arith.constant 0 : i32
    %c0_i32_1 = arith.constant 0 : i32
    return %c0_i32, %c0_i32_0 : i32, i32
  }
  func.func @transform_3(%arg0: i32) -> (i32, i32) {
    %c0_i32 = arith.constant 0 : i32
    %c0_i32_0 = arith.constant 0 : i32
    %c0_i32_1 = arith.constant 0 : i32
    return %c0_i32, %c0_i32_0 : i32, i32
  }
  func.func @transform_4(%arg0: i32) -> (i32, i32) {
    %c0_i32 = arith.constant 0 : i32
    %c0_i32_0 = arith.constant 0 : i32
    %c0_i32_1 = arith.constant 0 : i32
    return %c0_i32, %c0_i32_0 : i32, i32
  }
  func.func @transform_5(%arg0: i32) -> (i32, i32) {
    %c0_i32 = arith.constant 0 : i32
    %c0_i32_0 = arith.constant 0 : i32
    %c0_i32_1 = arith.constant 0 : i32
    return %c0_i32, %c0_i32_0 : i32, i32
  }
  func.func @transform_6(%arg0: i32) -> (i32, i32) {
    %c0_i32 = arith.constant 0 : i32
    %c0_i32_0 = arith.constant 0 : i32
    %c0_i32_1 = arith.constant 0 : i32
    return %c0_i32, %c0_i32_0 : i32, i32
  }
  func.func @transform_7(%arg0: i32) -> (i32, i32, i32) {
    %c0_i32 = arith.constant 0 : i32
    %c0_i32_0 = arith.constant 0 : i32
    %c0_i32_1 = arith.constant 0 : i32
    %c0_i32_2 = arith.constant 0 : i32
    return %c0_i32, %c0_i32_0, %c0_i32_1 : i32, i32, i32
  }
  func.func @transform_8(%arg0: i32) -> (i32, i32, i32) {
    %c0_i32 = arith.constant 0 : i32
    %c0_i32_0 = arith.constant 0 : i32
    %c0_i32_1 = arith.constant 0 : i32
    %c0_i32_2 = arith.constant 0 : i32
    return %c0_i32, %c0_i32_0, %c0_i32_1 : i32, i32, i32
  }
  func.func @transform_9(%arg0: i32) -> (i32, i32, i32) {
    %c0_i32 = arith.constant 0 : i32
    %c0_i32_0 = arith.constant 0 : i32
    %c0_i32_1 = arith.constant 0 : i32
    %c0_i32_2 = arith.constant 0 : i32
    return %c0_i32, %c0_i32_0, %c0_i32_1 : i32, i32, i32
  }
}

</mosaic_0001>

<bundles_post_ra>
// kernel: tpu_custom_call.1
= control target key start
LH: loop header
LB: loop body
LE: loop exit
PB: predicated region body
PF: predicated region fallthrough
CT: control target
= control target key end

     0   :  { %15 = vsyncpa [#allocation3], 0  ;;  %s5554_s0 = inlined_call_operand.hbm [shape: f32[8,8,32], index: 0, kind: input, shape index: {}]   ;;  %s5555_s1 = inlined_call_operand.hbm [shape: bf16[32,512], index: 1, kind: input, shape index: {}]   ;;  %s5556_s2 = inlined_call_operand.hbm [shape: bf16[128,512], index: 2, kind: input, shape index: {}]   ;;  %s5557_s3 = inlined_call_operand.vmem [shape: f32[1,512], index: 3, kind: input, shape index: {}]   ;;  %s5558_s4 = inlined_call_operand.hbm [shape: bf16[128,512], index: 4, kind: input, shape index: {}]   ;;  %s5559_s5 = inlined_call_operand.hbm [shape: bf16[128,512], index: 5, kind: input, shape index: {}]   ;;  %s5560_s6 = inlined_call_operand.vmem [shape: f32[1,512], index: 6, kind: input, shape index: {}]   ;;  %s5561_s7 = inlined_call_operand.hbm [shape: f32[8,8,128], index: 7, kind: output, shape index: {0}]   ;;  %s5562_s8 = inlined_call_operand.hbm [shape: f32[4,8,64], index: 8, kind: output, shape index: {1}]   ;;  %s5563_s9 = inlined_call_operand.hbm [shape: f32[4,8,64], index: 9, kind: output, shape index: {2}]  }
   0x1   :  { %16 = vsyncpa [#allocation6], 0 }
   0x2   :  { %17 = vsyncpa [#allocation9], 0 }
   0x3   :  { %18 = vsyncpa [#allocation4], 0 }
   0x4   :  { %19 = vsyncpa [#allocation13], 0  ;;  %s3709_s30 = smov [#allocation5]   ;;  %s3523_s13 = scalar_lea.hbm %s5555_s1, 1024 }
   0x5   :  { %s37_s10 = sshll.u32 %s3709_s30, 4  ;;  %p3524_p0 = scmp.ne.s32.totalorder %s5555_s1, %s3523_s13  ;;  %s38_s10 = int_to_ptr.vmem [resolvable:$true] %s37_s10 }
   0x6   :  { %p3527_p1 = scmp.lt.u32.totalorder %s3523_s13, %s5555_s1 }
   0x8   :  { %p3529_p2 = pnand %p3527_p1, %p3524_p0 }
   0xa   :  { %3532 = shalt.err (!%p3529_p2)
}
   0xb   :  { %s3533_s18 = scalar_lea.vmem %s38_s10, 1024  ;;  %p3538_p4 = scmp.lt.s32.totalorder %s38_s10, %s38_s10 }
   0xc   :  { %p3534_p3 = scmp.ne.s32.totalorder %s38_s10, %s3533_s18  ;;  %p3539_p5 = scmp.lt.s32.totalorder %s3533_s18, %s3533_s18 }
   0xe   :  { %p3540_p6 = por %p3539_p5, %p3538_p4 }
  0x10   :  { %p3541_p7 = pnand %p3540_p6, %p3534_p3 }
  0x12   :  { %3544 = shalt.err (!%p3541_p7)
}
  0x13   :  { %s3710_s19 = smov 256   ;;  %s3711_s20 = smov 16  }
  0x14   :  { %43 = dma.hbm_to_vmem [thread:$0]  %s5555_s1, 1024, %s38_s10, [#allocation6], %s3710_s19, %s3710_s19, %s3711_s20  }
  0x15   :  { %s3712_s23 = smov [#allocation8]   ;;  %s3713_s25 = smov [#allocation2]  }
  0x16   :  { %s63_s24 = sshll.u32 %s3712_s23, 4  ;;  %s25_s26 = sshll.u32 %s3713_s25, 4  ;;  %s64_s24 = int_to_ptr.vmem [resolvable:$true] %s63_s24  ;;  %s26_s26 = int_to_ptr.vmem [resolvable:$true] %s25_s26 }
  0x17   :  { %s3545_s29 = scalar_lea.hbm %s5558_s4, 4096 }
  0x18   :  { %p3546_p8 = scmp.ne.s32.totalorder %s5558_s4, %s3545_s29  ;;  %p3549_p9 = scmp.lt.u32.totalorder %s3545_s29, %s5558_s4 }
  0x1a   :  { %p3551_p10 = pnand %p3549_p9, %p3546_p8 }
  0x1c   :  { %3554 = shalt.err (!%p3551_p10)
}
  0x1d   :  { %s3555_s1 = scalar_lea.vmem %s64_s24, 4096  ;;  %p3560_p12 = scmp.lt.s32.totalorder %s64_s24, %s64_s24 }
  0x1e   :  { %p3556_p11 = scmp.ne.s32.totalorder %s64_s24, %s3555_s1  ;;  %p3561_p13 = scmp.lt.s32.totalorder %s3555_s1, %s3555_s1 }
  0x20   :  { %p3562_p0 = por %p3561_p13, %p3560_p12 }
  0x22   :  { %p3563_p1 = pnand %p3562_p0, %p3556_p11 }
  0x24   :  { %3566 = shalt.err (!%p3563_p1)
}
  0x25   :  { %69 = dma.hbm_to_vmem [thread:$0]  %s5558_s4, 4096, %s64_s24, [#allocation9], %s3710_s19, %s3710_s19, %s3711_s20  }
  0x26   :  { %s3567_s17 = scalar_lea.hbm %s5554_s0, 1024 }
  0x27   :  { %p3568_p2 = scmp.ne.s32.totalorder %s5554_s0, %s3567_s17  ;;  %p3571_p3 = scmp.lt.u32.totalorder %s3567_s17, %s5554_s0 }
  0x29   :  { %p3573_p4 = pnand %p3571_p3, %p3568_p2 }
  0x2b   :  { %3576 = shalt.err (!%p3573_p4)
}
  0x2c   :  { %s3577_s25 = scalar_lea.vmem %s26_s26, 1024  ;;  %p3582_p6 = scmp.lt.s32.totalorder %s26_s26, %s26_s26 }
  0x2d   :  { %p3578_p5 = scmp.ne.s32.totalorder %s26_s26, %s3577_s25  ;;  %p3583_p7 = scmp.lt.s32.totalorder %s3577_s25, %s3577_s25 }
  0x2f   :  { %p3584_p8 = por %p3583_p7, %p3582_p6 }
  0x31   :  { %p3585_p9 = pnand %p3584_p8, %p3578_p5 }
  0x33   :  { %3588 = shalt.err (!%p3585_p9)
}
  0x34   :  { %s3714_s4 = smov 128   ;;  %s3715_s24 = smov 8  }
  0x35   :  { %31 = dma.hbm_to_vmem [thread:$0]  %s5554_s0, 1024, %s26_s26, [#allocation3], %s3714_s4, %s3714_s4, %s3715_s24  }
  0x36   :  { %s3716_s29 = smov [#allocation7]   ;;  %s3717_s11 = smov [#allocation10]  }
  0x37   :  { %s49_s30 = sshll.u32 %s3716_s29, 4  ;;  %s75_s12 = sshll.u32 %s3717_s11, 4  ;;  %s50_s30 = int_to_ptr.vmem [resolvable:$true] %s49_s30  ;;  %s76_s12 = int_to_ptr.vmem [resolvable:$true] %s75_s12 }
  0x38   :  { %s3589_s10 = scalar_lea.hbm %s5556_s2, 4096 }
  0x39   :  { %p3590_p10 = scmp.ne.s32.totalorder %s5556_s2, %s3589_s10  ;;  %p3593_p11 = scmp.lt.u32.totalorder %s3589_s10, %s5556_s2 }
  0x3b   :  { %p3595_p12 = pnand %p3593_p11, %p3590_p10 }
  0x3d   :  { %3598 = shalt.err (!%p3595_p12)
}
  0x3e   :  { %s3599_s0 = scalar_lea.vmem %s50_s30, 4096  ;;  %p3604_p0 = scmp.lt.s32.totalorder %s50_s30, %s50_s30 }
  0x3f   :  { %p3600_p13 = scmp.ne.s32.totalorder %s50_s30, %s3599_s0  ;;  %p3605_p1 = scmp.lt.s32.totalorder %s3599_s0, %s3599_s0 }
  0x41   :  { %p3606_p2 = por %p3605_p1, %p3604_p0 }
  0x43   :  { %p3607_p3 = pnand %p3606_p2, %p3600_p13 }
  0x45   :  { %3610 = shalt.err (!%p3607_p3)
}
  0x46   :  { %55 = dma.hbm_to_vmem [thread:$0]  %s5556_s2, 4096, %s50_s30, [#allocation6], %s3710_s19, %s3710_s19, %s3711_s20  }
  0x47   :  { %s3611_s23 = scalar_lea.hbm %s5559_s5, 4096 }
  0x48   :  { %p3612_p4 = scmp.ne.s32.totalorder %s5559_s5, %s3611_s23  ;;  %p3615_p5 = scmp.lt.u32.totalorder %s3611_s23, %s5559_s5 }
  0x4a   :  { %p3617_p6 = pnand %p3615_p5, %p3612_p4 }
  0x4c   :  { %3620 = shalt.err (!%p3617_p6)
}
  0x4d   :  { %s3621_s11 = scalar_lea.vmem %s76_s12, 4096  ;;  %p3626_p8 = scmp.lt.s32.totalorder %s76_s12, %s76_s12 }
  0x4e   :  { %p3622_p7 = scmp.ne.s32.totalorder %s76_s12, %s3621_s11  ;;  %p3627_p9 = scmp.lt.s32.totalorder %s3621_s11, %s3621_s11 }
  0x50   :  { %p3628_p10 = por %p3627_p9, %p3626_p8 }
  0x52   :  { %p3629_p11 = pnand %p3628_p10, %p3622_p7 }
  0x54   :  { %3632 = shalt.err (!%p3629_p11)
}
  0x55   :  { %81 = dma.hbm_to_vmem [thread:$0]  %s5559_s5, 4096, %s76_s12, [#allocation9], %s3710_s19, %s3710_s19, %s3711_s20  }
  0x56   :  { %3699 = dma.done.wait [#allocation3], 1024  }
  0x57   :  { %3700 = vsyncadd [#allocation3], 4294966272 }
  0x58   :  { %3701 = dma.done.wait [#allocation6], 5120  }
  0x59   :  { %3702 = vsyncadd [#allocation6], 4294962176 }
  0x5a   :  { %3703 = dma.done.wait [#allocation9], 8192  }
  0x5b   :  { %3704 = vsyncadd [#allocation9], 4294959104  ;;  %v5568_v0 = vmov 0   ;;  %v3143_v1 = vld [vmem:[#allocation5 + $0x4] ss:$16 sps:$4 sm:$0xff]   ;;  %v158_v10 = vld [vmem:[#allocation2 + $0x8] sm:$0xff]  ;;  %v100_v53 = vlaneseq }
  0x5c   :  { %316 = vmatprep.mubr.bf16.mxu0 %v5568_v0  ;;  %389 = vmatprep.mubr.bf16.mxu1 %v5568_v0  ;;  %v3145_v2 = vld [vmem:[#allocation5 + $0xc] ss:$16 sps:$4 sm:$0xff]   ;;  %v3147_v3 = vld [vmem:[#allocation5] ss:$16 sps:$4 sm:$0xff]   ;;  %v3148_v4 = vld [vmem:[#allocation5 + $0x8] ss:$16 sps:$4 sm:$0xff]  }
  0x5d   :  { %284 = vmatprep.subr.bf16.mxu0 %v3143_v1  ;;  %357 = vmatprep.subr.bf16.mxu1 %v3145_v2  ;;  %v3149_v5 = vld [vmem:[#allocation5 + $0x24] ss:$16 sps:$4 sm:$0xff]   ;;  %v3151_v6 = vld [vmem:[#allocation5 + $0x2c] ss:$16 sps:$4 sm:$0xff]   ;;  %v3153_v7 = vld [vmem:[#allocation5 + $0x20] ss:$16 sps:$4 sm:$0xff]  }
  0x5e   :  { %285 = vmatpush1.bf16.msra.mxu0 %v3147_v3  ;;  %358 = vmatpush1.bf16.msra.mxu1 %v3148_v4  ;;  %v3154_v8 = vld [vmem:[#allocation5 + $0x28] ss:$16 sps:$4 sm:$0xff]   ;;  %v157_v9 = vld [vmem:[#allocation2] sm:$0xff]  ;;  %v3852_v13 = vld [vmem:[#allocation7 + $0xc] ss:$16 sps:$4 sm:$0xff]   ;;  %vm271_vm0 = vcmask 261120  }
  0x5f   :  { %286 = vmatprep.subr.bf16.mxu0 %v3149_v5  ;;  %359 = vmatprep.subr.bf16.mxu1 %v3151_v6  ;;  %v3850_v11 = vld [vmem:[#allocation7 + $0x4] ss:$16 sps:$4 sm:$0xff]   ;;  %v206_v12 = vpack.c.bf16 %v158_v10, %v157_v9  ;;  %5662 = vst [vmem:[#allocation21_spill] sm:$0xff] %v3852_v13  ;;  %v3854_v14 = vld [vmem:[#allocation7] ss:$16 sps:$4 sm:$0xff]   ;;  %v160_v21 = vld [vmem:[#allocation2 + $0x18] sm:$0xff] }
  0x60   :  { %5661 = vst [vmem:[#allocation20_spill] sm:$0xff] %v3850_v11  ;;  %v3856_v15 = vld [vmem:[#allocation7 + $0x8] ss:$16 sps:$4 sm:$0xff]   ;;  %v3860_v16 = vld [vmem:[#allocation7 + $0x24] ss:$16 sps:$4 sm:$0xff]   ;;  %v4000_v54 = vshrl.u32 %v100_v53, 7 }
  0x61   :  { %v3862_v17 = vld [vmem:[#allocation7 + $0x2c] ss:$16 sps:$4 sm:$0xff]   ;;  %v3864_v18 = vld [vmem:[#allocation7 + $0x20] ss:$16 sps:$4 sm:$0xff]   ;;  %v3868_v19 = vld [vmem:[#allocation7 + $0x28] ss:$16 sps:$4 sm:$0xff]  }
  0x62   :  { %287 = vmatpush1.bf16.msra.mxu0 %v3153_v7  ;;  %360 = vmatpush1.bf16.msra.mxu1 %v3154_v8  ;;  %v159_v20 = vld [vmem:[#allocation2 + $0x10] sm:$0xff]  ;;  %v3876_v23 = vld [vmem:[#allocation7 + $0x4c] ss:$16 sps:$4 sm:$0xff]   ;;  %v3884_v26 = vld [vmem:[#allocation7 + $0x48] ss:$16 sps:$4 sm:$0xff]   ;;  %5667 = vst [vmem:[#allocation26_spill] sm:$0xff] %v4000_v54 }
  0x63   :  { %594 = vmatprep.subr.bf16.mxu0 %v3850_v11  ;;  %635 = vmatprep.subr.bf16.mxu1 %v3852_v13  ;;  %v3872_v22 = vld [vmem:[#allocation7 + $0x44] ss:$16 sps:$4 sm:$0xff]   ;;  %v207_v24 = vpack.c.bf16 %v160_v21, %v159_v20  ;;  %v3882_v25 = vld [vmem:[#allocation7 + $0x40] ss:$16 sps:$4 sm:$0xff]   ;;  %v3890_v28 = vld [vmem:[#allocation7 + $0x6c] ss:$16 sps:$4 sm:$0xff]  }
  0x64   :  { %v3888_v27 = vld [vmem:[#allocation7 + $0x64] ss:$16 sps:$4 sm:$0xff]   ;;  %v3892_v29 = vld [vmem:[#allocation7 + $0x60] ss:$16 sps:$4 sm:$0xff]   ;;  %v3894_v30 = vld [vmem:[#allocation7 + $0x68] ss:$16 sps:$4 sm:$0xff]  }
  0x65   :  { %3025 = vmatmul.mubr.msk.bf16.vlgmr.msra.gmra.mrb[0].mxu0 %vm271_vm0, %v206_v12  ;;  %3029 = vmatmul.mubr.msk.bf16.vlgmr.msra.gmra.mrb[0].mxu1 %vm271_vm0, %v206_v12  ;;  %v161_v31 = vld [vmem:[#allocation2 + $0x20] sm:$0xff]  ;;  %v162_v32 = vld [vmem:[#allocation2 + $0x28] sm:$0xff]  ;;  %v163_v42 = vld [vmem:[#allocation2 + $0x30] sm:$0xff]  ;;  %v5566_v55 = vsub.s32 2, %v4000_v54  ;;  %v5564_v56 = vsub.s32 3, %v4000_v54  ;;  %v5567_v57 = vsub.s32 0, %v4000_v54 }
  0x66   :  { %595 = vmatpush1.bf16.msra.mxu0 %v3854_v14  ;;  %636 = vmatpush1.bf16.msra.mxu1 %v3856_v15  ;;  %v3900_v33 = vld [vmem:[#allocation7 + $0x84] ss:$16 sps:$4 sm:$0xff]   ;;  %v3904_v34 = vld [vmem:[#allocation7 + $0x8c] ss:$16 sps:$4 sm:$0xff]   ;;  %v208_v35 = vpack.c.bf16 %v162_v32, %v161_v31  ;;  %v3908_v36 = vld [vmem:[#allocation7 + $0x80] ss:$16 sps:$4 sm:$0xff]  }
  0x67   :  { %596 = vmatprep.subr.bf16.mxu0 %v3860_v16  ;;  %637 = vmatprep.subr.bf16.mxu1 %v3862_v17  ;;  %v3910_v37 = vld [vmem:[#allocation7 + $0x88] ss:$16 sps:$4 sm:$0xff]   ;;  %v3914_v38 = vld [vmem:[#allocation7 + $0xa4] ss:$16 sps:$4 sm:$0xff]   ;;  %v3918_v39 = vld [vmem:[#allocation7 + $0xac] ss:$16 sps:$4 sm:$0xff]  }
  0x68   :  { %326 = vmatprep.mubr.bf16.mxu0 %v5568_v0  ;;  %399 = vmatprep.mubr.bf16.mxu1 %v5568_v0  ;;  %v3920_v40 = vld [vmem:[#allocation7 + $0xa0] ss:$16 sps:$4 sm:$0xff]   ;;  %v3924_v41 = vld [vmem:[#allocation7 + $0xa8] ss:$16 sps:$4 sm:$0xff]   ;;  %v3930_v44 = vld [vmem:[#allocation7 + $0xc4] ss:$16 sps:$4 sm:$0xff]  }
  0x69   :  { %v164_v43 = vld [vmem:[#allocation2 + $0x38] sm:$0xff]  ;;  %v3936_v46 = vld [vmem:[#allocation7 + $0xc0] ss:$16 sps:$4 sm:$0xff]   ;;  %v3940_v49 = vld [vmem:[#allocation7 + $0xe4] ss:$16 sps:$4 sm:$0xff]   ;;  %v5565_v59 = vsub.s32 1, %v4000_v54 }
  0x6a   :  { %597 = vmatpush1.bf16.msra.mxu0 %v3864_v18  ;;  %638 = vmatpush1.bf16.msra.mxu1 %v3868_v19  ;;  %v3932_v45 = vld [vmem:[#allocation7 + $0xcc] ss:$16 sps:$4 sm:$0xff]   ;;  %v3938_v47 = vld [vmem:[#allocation7 + $0xc8] ss:$16 sps:$4 sm:$0xff]   ;;  %v209_v48 = vpack.c.bf16 %v164_v43, %v163_v42  ;;  %5663 = vst [vmem:[#allocation22_spill] sm:$0xff] %v3940_v49  ;;  %v4042_v20 = vand.u32 127, %v100_v53 }
  0x6b   :  { %598 = vmatprep.subr.bf16.mxu0 %v3872_v22  ;;  %639 = vmatprep.subr.bf16.mxu1 %v3876_v23  ;;  %v3942_v50 = vld [vmem:[#allocation7 + $0xec] ss:$16 sps:$4 sm:$0xff]   ;;  %v3948_v51 = vld [vmem:[#allocation7 + $0xe0] ss:$16 sps:$4 sm:$0xff]   ;;  %v3950_v52 = vld [vmem:[#allocation7 + $0xe8] ss:$16 sps:$4 sm:$0xff]  }
  0x6c   :  { %5664 = vst [vmem:[#allocation23_spill] sm:$0xff] %v3942_v50  ;;  %5665 = vst [vmem:[#allocation24_spill] sm:$0xff] %v3948_v51  ;;  %v205_v58 = vld [vmem:[%s5557_s3] sm:$0xf]  ;;  %v104_v42 = vadd.s32 384, %v4042_v20  ;;  %vm153_vm1 = vcmp.lt.s32.totalorder %v4042_v20, 64 }
  0x6d   :  { %3026 = vmatmul.mubr.msk.bf16.gmra.mrb[4].mxu0 %vm271_vm0, %v207_v24  ;;  %3030 = vmatmul.mubr.msk.bf16.gmra.mrb[4].mxu1 %vm271_vm0, %v207_v24  ;;  %5666 = vst [vmem:[#allocation25_spill] sm:$0xff] %v3950_v52  ;;  %v4011_v60 = vrot.slane %v205_v58, %v5566_v55  ;;  %v4019_v63 = vrot.slane %v205_v58, %v5564_v56  ;;  %5670 = vst [vmem:[#allocation29_spill] sm:$0xff] %v4042_v20  ;;  %v103_v24 = vadd.s32 256, %v4042_v20  ;;  %vm698_vm5 = vcmask 523264   ;;  %s3719_s3 = smov 64  }
  0x6e   :  { %599 = vmatpush1.bf16.msra.mxu0 %v3882_v25  ;;  %640 = vmatpush1.bf16.msra.mxu1 %v3884_v26  ;;  %v4023_v1 = vrot.slane %v205_v58, %v5567_v57  ;;  %v4031_v4 = vrot.slane %v205_v58, %v5565_v59  ;;  %v130_v54 = vand.u32 127, %v104_v42  ;;  %vm701_vm6 = vcmask 1048064  }
  0x6f   :  { %600 = vmatprep.subr.bf16.mxu0 %v3888_v27  ;;  %641 = vmatprep.subr.bf16.mxu1 %v3890_v28  ;;  %v123_v57 = vand.u32 127, %v103_v24 }
  0x70   :  { %336 = vmatprep.mubr.bf16.mxu0 %v5568_v0  ;;  %409 = vmatprep.mubr.bf16.mxu1 %v5568_v0  ;;  %vm4079_vm4 = vcmp.lt.s32.totalorder %v130_v54, 64 }
  0x71   :  { %vm4071_vm2 = vcmp.lt.s32.totalorder %v123_v57, 64 }
  0x72   :  { %601 = vmatpush1.bf16.msra.mxu0 %v3892_v29  ;;  %642 = vmatpush1.bf16.msra.mxu1 %v3894_v30 }
  0x73   :  { %602 = vmatprep.subr.bf16.mxu0 %v3900_v33  ;;  %643 = vmatprep.subr.bf16.mxu1 %v3904_v34 }
  0x75   :  { %3027 = vmatmul.mubr.msk.bf16.gmra.mrb[8].mxu0 %vm271_vm0, %v208_v35  ;;  %3031 = vmatmul.mubr.msk.bf16.gmra.mrb[8].mxu1 %vm271_vm0, %v208_v35  ;;  %v102_v35 = vadd.s32 128, %v4042_v20 }
  0x76   :  { %603 = vmatpush1.bf16.msra.mxu0 %v3908_v36  ;;  %644 = vmatpush1.bf16.msra.mxu1 %v3910_v37 }
  0x77   :  { %604 = vmatprep.subr.bf16.mxu0 %v3914_v38  ;;  %645 = vmatprep.subr.bf16.mxu1 %v3918_v39 }
  0x78   :  { %346 = vmatprep.mubr.bf16.mxu0 %v5568_v0  ;;  %419 = vmatprep.mubr.bf16.mxu1 %v5568_v0 }
  0x7a   :  { %605 = vmatpush1.bf16.msra.mxu0 %v3920_v40  ;;  %646 = vmatpush1.bf16.msra.mxu1 %v3924_v41 }
  0x7b   :  { %606 = vmatprep.subr.bf16.mxu0 %v3930_v44  ;;  %647 = vmatprep.subr.bf16.mxu1 %v3932_v45 }
  0x7d   :  { %3028 = vmatmul.mubr.msk.bf16.gmra.mrb[12].mxu0 %vm271_vm0, %v209_v48  ;;  %3032 = vmatmul.mubr.msk.bf16.gmra.mrb[12].mxu1 %vm271_vm0, %v209_v48 }
  0x7e   :  { %607 = vmatpush1.bf16.msra.mxu0 %v3936_v46  ;;  %648 = vmatpush1.bf16.msra.mxu1 %v3938_v47 }
  0x7f   :  { %608 = vmatprep.subr.bf16.mxu0 %v3940_v49  ;;  %649 = vmatprep.subr.bf16.mxu1 %v3942_v50 }
  0x80   :  { %626 = vmatprep.mubr.bf16.mxu0 %v5568_v0  ;;  %667 = vmatprep.mubr.bf16.mxu1 %v5568_v0 }
  0x82   :  { %609 = vmatpush1.bf16.msra.mxu0 %v3948_v51  ;;  %650 = vmatpush1.bf16.msra.mxu1 %v3950_v52 }
  0x83   :  { %708 = vmatprep.subr.bf16.mxu0 %v3850_v11  ;;  %749 = vmatprep.subr.bf16.mxu1 %v3852_v13 }
  0x85   :  { %627 = vmatmul.mubr.bf16.vlgmr.msra.gmra.mrb[16].mxu0 %v5568_v0  ;;  %668 = vmatmul.mubr.bf16.vlgmr.msra.gmra.mrb[16].mxu1 %v5568_v0 }
  0x86   :  { %709 = vmatpush1.bf16.msra.mxu0 %v3854_v14  ;;  %750 = vmatpush1.bf16.msra.mxu1 %v3856_v15 }
  0x87   :  { %710 = vmatprep.subr.bf16.mxu0 %v3860_v16  ;;  %751 = vmatprep.subr.bf16.mxu1 %v3862_v17 }
  0x88   :  { %740 = vmatprep.mubr.bf16.mxu0 %v5568_v0  ;;  %781 = vmatprep.mubr.bf16.mxu1 %v5568_v0 }
  0x8a   :  { %711 = vmatpush1.bf16.msra.mxu0 %v3864_v18  ;;  %752 = vmatpush1.bf16.msra.mxu1 %v3868_v19 }
  0x8b   :  { %712 = vmatprep.subr.bf16.mxu0 %v3872_v22  ;;  %753 = vmatprep.subr.bf16.mxu1 %v3876_v23 }
  0x8e   :  { %713 = vmatpush1.bf16.msra.mxu0 %v3882_v25  ;;  %754 = vmatpush1.bf16.msra.mxu1 %v3884_v26 }
  0x8f   :  { %714 = vmatprep.subr.bf16.mxu0 %v3888_v27  ;;  %755 = vmatprep.subr.bf16.mxu1 %v3890_v28 }
  0x92   :  { %715 = vmatpush1.bf16.msra.mxu0 %v3892_v29  ;;  %756 = vmatpush1.bf16.msra.mxu1 %v3894_v30 }
  0x93   :  { %716 = vmatprep.subr.bf16.mxu0 %v3900_v33  ;;  %757 = vmatprep.subr.bf16.mxu1 %v3904_v34 }
  0x96   :  { %717 = vmatpush1.bf16.msra.mxu0 %v3908_v36  ;;  %758 = vmatpush1.bf16.msra.mxu1 %v3910_v37 }
  0x97   :  { %718 = vmatprep.subr.bf16.mxu0 %v3914_v38  ;;  %759 = vmatprep.subr.bf16.mxu1 %v3918_v39 }
  0x9a   :  { %719 = vmatpush1.bf16.msra.mxu0 %v3920_v40  ;;  %760 = vmatpush1.bf16.msra.mxu1 %v3924_v41 }
  0x9b   :  { %720 = vmatprep.subr.bf16.mxu0 %v3930_v44  ;;  %761 = vmatprep.subr.bf16.mxu1 %v3932_v45 }
  0x9e   :  { %721 = vmatpush1.bf16.msra.mxu0 %v3936_v46  ;;  %762 = vmatpush1.bf16.msra.mxu1 %v3938_v47 }
  0x9f   :  { %722 = vmatprep.subr.bf16.mxu0 %v3940_v49  ;;  %763 = vmatprep.subr.bf16.mxu1 %v3942_v50 }
  0xa2   :  { %723 = vmatpush1.bf16.msra.mxu0 %v3948_v51  ;;  %764 = vmatpush1.bf16.msra.mxu1 %v3950_v52 }
  0xa3   :  { %821 = vmatprep.subr.bf16.mxu0 %v3850_v11  ;;  %862 = vmatprep.subr.bf16.mxu1 %v3852_v13 }
 0x138   :  { %v4013_v61 = vpop.f32.mrb[0].mxu0  ;;  %v4015_v62 = vpop.f32.mrb[0].mxu1 }
 0x139   :  { %v4025_v2 = vpop.f32.mrb[1].mxu0  ;;  %v4027_v3 = vpop.f32.mrb[1].mxu1 }
 0x13a   :  { %v322_v5 = vpop.f32.mrb[2].mxu0  ;;  %v395_v6 = vpop.f32.mrb[2].mxu1 }
 0x13b   :  { %v4034_v7 = vadd.f32 %v322_v5, %v4023_v1  ;;  %v324_v8 = vpop.f32.mrb[3].mxu0  ;;  %v4037_v9 = vadd.f32 %v395_v6, %v4011_v60  ;;  %v397_v10 = vpop.f32.mrb[3].mxu1 }
 0x13c   :  { %v4040_v12 = vadd.f32 %v324_v8, %v4031_v4  ;;  %v4045_v21 = vadd.f32 %v397_v10, %v4019_v63 }
 0x13d   :  { %5668 = vst [vmem:[#allocation27_spill] sm:$0xff] %v4037_v9 }
 0x13e   :  { %5669 = vst [vmem:[#allocation28_spill] sm:$0xff] %v4040_v12  ;;  %5671 = vst [vmem:[#allocation30_spill] sm:$0xff] %v4045_v21 }
 0x140   :  { %v328_v31 = vpop.f32.mrb[4].mxu0  ;;  %v401_v32 = vpop.f32.mrb[4].mxu1 }
 0x141   :  { %v329_v43 = vadd.f32 %v328_v31, %v4023_v1  ;;  %v330_v48 = vpop.f32.mrb[5].mxu0  ;;  %v4052_v58 = vadd.f32 %v401_v32, %v4011_v60  ;;  %v403_v5 = vpop.f32.mrb[5].mxu1 }
 0x142   :  { %v4055_v53 = vadd.f32 %v330_v48, %v4031_v4  ;;  %v332_v6 = vpop.f32.mrb[6].mxu0  ;;  %v4058_v8 = vadd.f32 %v403_v5, %v4019_v63  ;;  %v405_v10 = vpop.f32.mrb[6].mxu1  ;;  %v116_v48 = vand.u32 127, %v102_v35 }
 0x143   :  { %v333_v56 = vadd.f32 %v332_v6, %v4023_v1  ;;  %v334_v59 = vpop.f32.mrb[7].mxu0  ;;  %v4062_v55 = vadd.f32 %v405_v10, %v4011_v60  ;;  %v407_v31 = vpop.f32.mrb[7].mxu1 }
 0x144   :  { %5672 = vst [vmem:[#allocation31_spill] sm:$0xff] %v4058_v8  ;;  %v4065_v32 = vadd.f32 %v334_v59, %v4031_v4  ;;  %v4068_v0 = vadd.f32 %v407_v31, %v4019_v63  ;;  %vm4075_vm3 = vcmp.lt.s32.totalorder %v116_v48, 64 }
 0x145   :  { %5673 = vst [vmem:[#allocation32_spill] sm:$0xff] %v4062_v55 }
 0x146   :  { %5674 = vst [vmem:[#allocation33_spill] sm:$0xff] %v4065_v32  ;;  %5675 = vst [vmem:[#allocation34_spill] sm:$0xff] %v4068_v0 }
 0x148   :  { %v338_v6 = vpop.f32.mrb[8].mxu0  ;;  %v411_v13 = vpop.f32.mrb[8].mxu1 }
 0x149   :  { %v339_v24 = vadd.f32 %v338_v6, %v4023_v1  ;;  %v4085_v35 = vadd.f32 %v411_v13, %v4011_v60  ;;  %v340_v42 = vpop.f32.mrb[9].mxu0  ;;  %v413_v57 = vpop.f32.mrb[9].mxu1 }
 0x14a   :  { %v4088_v31 = vadd.f32 %v340_v42, %v4031_v4  ;;  %v4091_v11 = vadd.f32 %v413_v57, %v4019_v63  ;;  %v342_v48 = vpop.f32.mrb[10].mxu0  ;;  %v415_v52 = vpop.f32.mrb[10].mxu1 }
 0x14b   :  { %5682 = vst [vmem:[#allocation35_spill] sm:$0xff] %v4085_v35  ;;  %v343_v54 = vadd.f32 %v342_v48, %v4023_v1  ;;  %v4095_v51 = vadd.f32 %v415_v52, %v4011_v60  ;;  %v344_v50 = vpop.f32.mrb[11].mxu0  ;;  %v417_v6 = vpop.f32.mrb[11].mxu1  ;;  %v4099_v13 = vsel %vm153_vm1, %v333_v56, %v339_v24 }
 0x14c   :  { %5683 = vst [vmem:[#allocation36_spill] sm:$0xff] %v4088_v31  ;;  %5684 = vst [vmem:[#allocation37_spill] sm:$0xff] %v4091_v11  ;;  %v4106_v57 = vadd.f32 %v344_v50, %v4031_v4  ;;  %v4109_v49 = vadd.f32 %v417_v6, %v4019_v63  ;;  %v4129_v6 = vsel %vm153_vm1, %v339_v24, %v333_v56 }
 0x14d   :  { %5685 = vst [vmem:[#allocation38_spill] sm:$0xff] %v4099_v13  ;;  %v4121_v13 = vsel %vm153_vm1, %v329_v43, %v343_v54  ;;  %5688 = vst [vmem:[#allocation41_spill] sm:$0xff] %v4129_v6  ;;  %v4153_v52 = vsel %vm153_vm1, %v343_v54, %v329_v43  ;;  %v319_v43 = vadd.f32 %v4013_v61, %v4023_v1 }
 0x14e   :  { %5686 = vst [vmem:[#allocation39_spill] sm:$0xff] %v4106_v57  ;;  %5687 = vst [vmem:[#allocation40_spill] sm:$0xff] %v4109_v49  ;;  %v4171_v54 = vadd.f32 %v4015_v62, %v4011_v60  ;;  %v4179_v11 = vadd.f32 %v4025_v2, %v4031_v4  ;;  %v4183_v56 = vadd.f32 %v4027_v3, %v4019_v63 }
 0x14f   :  { %5689 = vst [vmem:[#allocation42_spill] sm:$0xff] %v4153_v52 }
 0x150   :  { %v348_v24 = vpop.f32.mrb[12].mxu0  ;;  %v421_v50 = vpop.f32.mrb[12].mxu1  ;;  %5690 = vst [vmem:[#allocation43_spill] sm:$0xff] %v4171_v54  ;;  %5692 = vst [vmem:[#allocation45_spill] sm:$0xff] %v4179_v11 }
 0x151   :  { %v349_v48 = vadd.f32 %v348_v24, %v4023_v1  ;;  %v4175_v52 = vadd.f32 %v421_v50, %v4011_v60  ;;  %v350_v42 = vpop.f32.mrb[13].mxu0  ;;  %v423_v6 = vpop.f32.mrb[13].mxu1  ;;  %5693 = vst [vmem:[#allocation46_spill] sm:$0xff] %v4183_v56 }
 0x152   :  { %v4186_v61 = vadd.f32 %v350_v42, %v4031_v4  ;;  %v4189_v62 = vadd.f32 %v423_v6, %v4019_v63  ;;  %v352_v24 = vpop.f32.mrb[14].mxu0  ;;  %v425_v0 = vpop.f32.mrb[14].mxu1 }
 0x153   :  { %5691 = vst [vmem:[#allocation44_spill] sm:$0xff] %v4175_v52  ;;  %v353_v50 = vadd.f32 %v352_v24, %v4023_v1  ;;  %v4193_v31 = vadd.f32 %v425_v0, %v4011_v60  ;;  %v354_v32 = vpop.f32.mrb[15].mxu0  ;;  %v427_v2 = vpop.f32.mrb[15].mxu1  ;;  %v4198_v3 = vsel %vm153_vm1, %v4034_v7, %v349_v48 }
 0x154   :  { %5694 = vst [vmem:[#allocation47_spill] sm:$0xff] %v4186_v61  ;;  %5695 = vst [vmem:[#allocation48_spill] sm:$0xff] %v4189_v62  ;;  %v4205_v6 = vadd.f32 %v354_v32, %v4031_v4  ;;  %v4208_v1 = vadd.f32 %v427_v2, %v4019_v63  ;;  %v4227_v63 = vsel %vm153_vm1, %v349_v48, %v4034_v7 }
 0x155   :  { %5696 = vst [vmem:[#allocation49_spill] sm:$0xff] %v4193_v31  ;;  %v430_v24 = vsel %vm153_vm1, %v319_v43, %v353_v50  ;;  %v432_v4 = vsel %vm4071_vm2, %v4171_v54, %v4193_v31  ;;  %5699 = vst [vmem:[#allocation52_spill] sm:$0xff] %v4227_v63  ;;  %v4251_v32 = vsel %vm153_vm1, %v353_v50, %v319_v43 }
 0x156   :  { %5697 = vst [vmem:[#allocation50_spill] sm:$0xff] %v4205_v6  ;;  %5698 = vst [vmem:[#allocation51_spill] sm:$0xff] %v4208_v1  ;;  %v431_v2 = vsel %vm4075_vm3, %v4179_v11, %v4205_v6  ;;  %v433_v60 = vsel %vm4079_vm4, %v4183_v56, %v4208_v1 }
 0x157   :  { %5700 = vst [vmem:[#allocation53_spill] sm:$0xff] %v4251_v32 }
 0x158   :  { %v628_v48 = vpop.f32.mrb[16].mxu0  ;;  %v669_v63 = vpop.f32.mrb[16].mxu1 }
 0x159   :  { %v676_v20 = vadd.f32 %v628_v48, %v430_v24  ;;  %v678_v43 = vadd.f32 %v669_v63, %v432_v4  ;;  %v630_v50 = vpop.f32.mrb[17].mxu0  ;;  %v671_v32 = vpop.f32.mrb[17].mxu1 }
 0x15a   :  { %v677_v35 = vadd.f32 %v630_v50, %v431_v2  ;;  %v679_v55 = vadd.f32 %v671_v32, %v433_v60  ;;  %v632_v49 = vpop.f32.mrb[18].mxu0  ;;  %v673_v0 = vpop.f32.mrb[18].mxu1  ;;  %v5707_v32 = vld [vmem:[#allocation21_spill] sm:$0xff]  ;;  %v5708_v50 = vsel %vm4071_vm2, %v4037_v9, %v4175_v52 }
 0x15b   :  { %v680_v54 = vmul.f32 0.5, %v676_v20  ;;  %v633_v31 = vpop.f32.mrb[19].mxu0  ;;  %v674_v8 = vpop.f32.mrb[19].mxu1  ;;  %v5706_v0 = vld [vmem:[#allocation20_spill] sm:$0xff] }
 0x15c   :  { %v684_v57 = vmul.f32 0.5, %v677_v35  ;;  %v689_v42 = vmul.f32 0.5, %v679_v55 }
 0x15d   :  { %3299 = vtanh.f32 %v680_v54  ;;  %v5703_v54 = vld [vmem:[#allocation23_spill] sm:$0xff] }
 0x15e   :  { %3301 = vtanh.f32 %v684_v57  ;;  %v5701_v57 = vmov 0  }
 0x15f   :  { %3303 = vtanh.f32 %v678_v43 }
 0x160   :  { %3305 = vtanh.f32 %v689_v42  ;;  %v5704_v42 = vld [vmem:[#allocation24_spill] sm:$0xff] }
 0x167   :  { %v3300_v11 = vpop.eup %3299 }
 0x168   :  { %v3302_v7 = vpop.eup %3301  ;;  %v682_v56 = vmul.f32 0.5, %v3300_v11 }
 0x169   :  { %v686_v1 = vmul.f32 0.5, %v3302_v7  ;;  %v3304_v4 = vpop.eup %3303 }
 0x16a   :  { %v683_v24 = vadd.f32 0.5, %v682_v56  ;;  %v3306_v20 = vpop.eup %3305  ;;  %v5702_v56 = vld [vmem:[#allocation22_spill] sm:$0xff] }
 0x16b   :  { %v687_v63 = vadd.f32 0.5, %v686_v1  ;;  %v691_v8 = vmul.f32 0.5, %v3306_v20  ;;  %v5705_v1 = vld [vmem:[#allocation25_spill] sm:$0xff]  ;;  %v5710_v20 = vsel %vm4079_vm4, %v4045_v21, %v4189_v62 }
 0x16c   :  { %v694_v2 = vmul.f32 %v3304_v4, %v683_v24 }
 0x16d   :  { %v693_v60 = vmul.f32 0.0, %v687_v63  ;;  %v692_v35 = vadd.f32 0.5, %v691_v8 }
 0x16f   :  { %v4265_v49 = vadd.f32 %v694_v2, %v693_v60  ;;  %v5709_v2 = vsel %vm4075_vm3, %v4040_v12, %v4186_v61 }
 0x171   :  { %3307 = vtanh.f32 %v4265_v49 }
 0x17b   :  { %v3308_v31 = vpop.eup %3307 }
 0x17c   :  { %v697_v55 = vmul.f32 %v3308_v31, %v692_v35 }
 0x17e   :  { %699 = vst.msk [vmem:[#allocation11] sm:$0xff] %vm698_vm5, %v697_v55  ;;  %v707_v11 = vpack.c.bf16 %v697_v55, %v697_v55 }
 0x17f   :  { %702 = vst.msk [vmem:[#allocation11 + $0x38] sm:$0xff] %vm701_vm6, %v697_v55 }
 0x180   :  { %741 = vmatmul.mubr.bf16.vlgmr.msra.gmra.mrb[20].mxu0 %v707_v11  ;;  %782 = vmatmul.mubr.bf16.vlgmr.msra.gmra.mrb[20].mxu1 %v707_v11 }
 0x181   :  { %822 = vmatpush1.bf16.msra.mxu0 %v3854_v14  ;;  %863 = vmatpush1.bf16.msra.mxu1 %v3856_v15 }
 0x182   :  { %823 = vmatprep.subr.bf16.mxu0 %v3860_v16  ;;  %864 = vmatprep.subr.bf16.mxu1 %v3862_v17 }
 0x183   :  { %853 = vmatprep.mubr.bf16.mxu0 %v5701_v57  ;;  %894 = vmatprep.mubr.bf16.mxu1 %v5701_v57 }
 0x185   :  { %824 = vmatpush1.bf16.msra.mxu0 %v3864_v18  ;;  %865 = vmatpush1.bf16.msra.mxu1 %v3868_v19 }
 0x186   :  { %825 = vmatprep.subr.bf16.mxu0 %v3872_v22  ;;  %866 = vmatprep.subr.bf16.mxu1 %v3876_v23 }
 0x189   :  { %826 = vmatpush1.bf16.msra.mxu0 %v3882_v25  ;;  %867 = vmatpush1.bf16.msra.mxu1 %v3884_v26 }
 0x18a   :  { %827 = vmatprep.subr.bf16.mxu0 %v3888_v27  ;;  %868 = vmatprep.subr.bf16.mxu1 %v3890_v28 }
 0x18d   :  { %828 = vmatpush1.bf16.msra.mxu0 %v3892_v29  ;;  %869 = vmatpush1.bf16.msra.mxu1 %v3894_v30 }
 0x18e   :  { %829 = vmatprep.subr.bf16.mxu0 %v3900_v33  ;;  %870 = vmatprep.subr.bf16.mxu1 %v3904_v34 }
 0x191   :  { %830 = vmatpush1.bf16.msra.mxu0 %v3908_v36  ;;  %871 = vmatpush1.bf16.msra.mxu1 %v3910_v37 }
 0x192   :  { %831 = vmatprep.subr.bf16.mxu0 %v3914_v38  ;;  %872 = vmatprep.subr.bf16.mxu1 %v3918_v39 }
 0x195   :  { %832 = vmatpush1.bf16.msra.mxu0 %v3920_v40  ;;  %873 = vmatpush1.bf16.msra.mxu1 %v3924_v41 }
 0x196   :  { %833 = vmatprep.subr.bf16.mxu0 %v3930_v44  ;;  %874 = vmatprep.subr.bf16.mxu1 %v3932_v45 }
 0x199   :  { %834 = vmatpush1.bf16.msra.mxu0 %v3936_v46  ;;  %875 = vmatpush1.bf16.msra.mxu1 %v3938_v47 }
 0x19a   :  { %835 = vmatprep.subr.bf16.mxu0 %v5702_v56  ;;  %876 = vmatprep.subr.bf16.mxu1 %v5703_v54 }
 0x19d   :  { %836 = vmatpush1.bf16.msra.mxu0 %v5704_v42  ;;  %877 = vmatpush1.bf16.msra.mxu1 %v5705_v1 }
 0x19e   :  { %934 = vmatprep.subr.bf16.mxu0 %v5706_v0  ;;  %975 = vmatprep.subr.bf16.mxu1 %v5707_v32 }
 0x253   :  { %v742_v7 = vpop.f32.mrb[20].mxu0  ;;  %v783_v48 = vpop.f32.mrb[20].mxu1 }
 0x254   :  { %v790_v43 = vadd.f32 %v742_v7, %v4198_v3  ;;  %v792_v24 = vadd.f32 %v783_v48, %v5708_v50  ;;  %v744_v4 = vpop.f32.mrb[21].mxu0  ;;  %v785_v63 = vpop.f32.mrb[21].mxu1 }
 0x255   :  { %v791_v60 = vadd.f32 %v744_v4, %v5709_v2  ;;  %v793_v3 = vadd.f32 %v785_v63, %v5710_v20  ;;  %v746_v8 = vpop.f32.mrb[22].mxu0  ;;  %v787_v35 = vpop.f32.mrb[22].mxu1 }
 0x256   :  { %v794_v31 = vmul.f32 0.5, %v790_v43  ;;  %v747_v55 = vpop.f32.mrb[23].mxu0  ;;  %v788_v11 = vpop.f32.mrb[23].mxu1 }
 0x257   :  { %v798_v7 = vmul.f32 0.5, %v791_v60  ;;  %v803_v48 = vmul.f32 0.5, %v793_v3 }
 0x258   :  { %3309 = vtanh.f32 %v794_v31 }
 0x259   :  { %3311 = vtanh.f32 %v798_v7 }
 0x25a   :  { %3313 = vtanh.f32 %v792_v24 }
 0x25b   :  { %3315 = vtanh.f32 %v803_v48 }
 0x262   :  { %v3310_v50 = vpop.eup %3309 }
 0x263   :  { %v3312_v6 = vpop.eup %3311  ;;  %v796_v12 = vmul.f32 0.5, %v3310_v50 }
 0x264   :  { %v800_v4 = vmul.f32 0.5, %v3312_v6  ;;  %v3314_v61 = vpop.eup %3313 }
 0x265   :  { %v797_v2 = vadd.f32 0.5, %v796_v12  ;;  %v3316_v43 = vpop.eup %3315 }
 0x266   :  { %v801_v9 = vadd.f32 0.5, %v800_v4  ;;  %v805_v60 = vmul.f32 0.5, %v3316_v43 }
 0x267   :  { %v808_v21 = vmul.f32 %v3314_v61, %v797_v2  ;;  %v5714_v61 = vld [vmem:[#allocation31_spill] sm:$0xff] }
 0x268   :  { %v807_v63 = vmul.f32 %v801_v9, %v4265_v49  ;;  %v806_v8 = vadd.f32 0.5, %v805_v60  ;;  %v5712_v9 = vld [vmem:[#allocation39_spill] sm:$0xff]  ;;  %v5715_v49 = vld [vmem:[#allocation40_spill] sm:$0xff] }
 0x269   :  { %v5713_v12 = vsel %vm4075_vm3, %v4055_v53, %v5712_v9 }
 0x26a   :  { %v4321_v20 = vadd.f32 %v808_v21, %v807_v63 }
 0x26c   :  { %3317 = vtanh.f32 %v4321_v20 }
 0x276   :  { %v3318_v24 = vpop.eup %3317 }
 0x277   :  { %v811_v3 = vmul.f32 %v3318_v24, %v806_v8 }
 0x279   :  { %813 = vst.msk [vmem:[#allocation11 + $0x8] sm:$0xff] %vm698_vm5, %v811_v3  ;;  %v820_v6 = vpack.c.bf16 %v811_v3, %v811_v3 }
 0x27a   :  { %815 = vst.msk [vmem:[#allocation11 + $0x30] sm:$0xff] %vm701_vm6, %v811_v3 }
 0x27b   :  { %854 = vmatmul.mubr.bf16.vlgmr.msra.gmra.mrb[24].mxu0 %v820_v6  ;;  %895 = vmatmul.mubr.bf16.vlgmr.msra.gmra.mrb[24].mxu1 %v820_v6 }
 0x27c   :  { %935 = vmatpush1.bf16.msra.mxu0 %v3854_v14  ;;  %976 = vmatpush1.bf16.msra.mxu1 %v3856_v15 }
 0x27d   :  { %936 = vmatprep.subr.bf16.mxu0 %v3860_v16  ;;  %977 = vmatprep.subr.bf16.mxu1 %v3862_v17  ;;  %v5711_v17 = vsel %vm4071_vm2, %v4052_v58, %v4095_v51 }
 0x27e   :  { %966 = vmatprep.mubr.bf16.mxu0 %v5701_v57  ;;  %1007 = vmatprep.mubr.bf16.mxu1 %v5701_v57 }
 0x280   :  { %937 = vmatpush1.bf16.msra.mxu0 %v3864_v18  ;;  %978 = vmatpush1.bf16.msra.mxu1 %v3868_v19 }
 0x281   :  { %938 = vmatprep.subr.bf16.mxu0 %v3872_v22  ;;  %979 = vmatprep.subr.bf16.mxu1 %v3876_v23 }
 0x284   :  { %939 = vmatpush1.bf16.msra.mxu0 %v3882_v25  ;;  %980 = vmatpush1.bf16.msra.mxu1 %v3884_v26 }
 0x285   :  { %940 = vmatprep.subr.bf16.mxu0 %v3888_v27  ;;  %981 = vmatprep.subr.bf16.mxu1 %v3890_v28 }
 0x288   :  { %941 = vmatpush1.bf16.msra.mxu0 %v3892_v29  ;;  %982 = vmatpush1.bf16.msra.mxu1 %v3894_v30 }
 0x289   :  { %942 = vmatprep.subr.bf16.mxu0 %v3900_v33  ;;  %983 = vmatprep.subr.bf16.mxu1 %v3904_v34 }
 0x28c   :  { %943 = vmatpush1.bf16.msra.mxu0 %v3908_v36  ;;  %984 = vmatpush1.bf16.msra.mxu1 %v3910_v37 }
 0x28d   :  { %944 = vmatprep.subr.bf16.mxu0 %v3914_v38  ;;  %985 = vmatprep.subr.bf16.mxu1 %v3918_v39 }
 0x290   :  { %945 = vmatpush1.bf16.msra.mxu0 %v3920_v40  ;;  %986 = vmatpush1.bf16.msra.mxu1 %v3924_v41 }
 0x291   :  { %946 = vmatprep.subr.bf16.mxu0 %v3930_v44  ;;  %987 = vmatprep.subr.bf16.mxu1 %v3932_v45 }
 0x294   :  { %947 = vmatpush1.bf16.msra.mxu0 %v3936_v46  ;;  %988 = vmatpush1.bf16.msra.mxu1 %v3938_v47 }
 0x295   :  { %948 = vmatprep.subr.bf16.mxu0 %v5702_v56  ;;  %989 = vmatprep.subr.bf16.mxu1 %v5703_v54 }
 0x298   :  { %949 = vmatpush1.bf16.msra.mxu0 %v5704_v42  ;;  %990 = vmatpush1.bf16.msra.mxu1 %v5705_v1 }
 0x299   :  { %1047 = vmatprep.subr.bf16.mxu0 %v5706_v0  ;;  %1088 = vmatprep.subr.bf16.mxu1 %v5707_v32  ;;  %v5716_v0 = vsel %vm4079_vm4, %v5714_v61, %v5715_v49 }
 0x34e   :  { %v855_v14 = vpop.f32.mrb[24].mxu0  ;;  %v896_v15 = vpop.f32.mrb[24].mxu1 }
 0x34f   :  { %v903_v16 = vadd.f32 %v855_v14, %v4121_v13  ;;  %v905_v18 = vadd.f32 %v896_v15, %v5711_v17  ;;  %v857_v19 = vpop.f32.mrb[25].mxu0  ;;  %v898_v22 = vpop.f32.mrb[25].mxu1 }
 0x350   :  { %v904_v21 = vadd.f32 %v857_v19, %v5713_v12  ;;  %v906_v13 = vadd.f32 %v898_v22, %v5716_v0  ;;  %v859_v32 = vpop.f32.mrb[26].mxu0  ;;  %v900_v35 = vpop.f32.mrb[26].mxu1  ;;  %v4382_v22 = vld [vmem:[#allocation7] ss:$16 sps:$4 sm:$0xff]   ;;  %v4388_v12 = vld [vmem:[#allocation7 + $0x24] ss:$16 sps:$4 sm:$0xff]  }
 0x351   :  { %v907_v31 = vmul.f32 0.5, %v903_v16  ;;  %v860_v55 = vpop.f32.mrb[27].mxu0  ;;  %v901_v11 = vpop.f32.mrb[27].mxu1  ;;  %v4396_v0 = vld [vmem:[#allocation7 + $0x20] ss:$16 sps:$4 sm:$0xff]  }
 0x352   :  { %v911_v7 = vmul.f32 0.5, %v904_v21  ;;  %v916_v48 = vmul.f32 0.5, %v906_v13  ;;  %v4391_v21 = vld [vmem:[#allocation7 + $0x2c] ss:$16 sps:$4 sm:$0xff]   ;;  %v4399_v13 = vld [vmem:[#allocation7 + $0x28] ss:$16 sps:$4 sm:$0xff]  }
 0x353   :  { %3319 = vtanh.f32 %v907_v31  ;;  %v4402_v32 = vld [vmem:[#allocation7 + $0x44] ss:$16 sps:$4 sm:$0xff]  }
 0x354   :  { %3321 = vtanh.f32 %v911_v7 }
 0x355   :  { %3323 = vtanh.f32 %v905_v18 }
 0x356   :  { %3325 = vtanh.f32 %v916_v48 }
 0x35d   :  { %v3320_v50 = vpop.eup %3319 }
 0x35e   :  { %v3322_v4 = vpop.eup %3321  ;;  %v909_v2 = vmul.f32 0.5, %v3320_v50 }
 0x35f   :  { %v913_v63 = vmul.f32 0.5, %v3322_v4  ;;  %v3324_v60 = vpop.eup %3323 }
 0x360   :  { %v910_v43 = vadd.f32 0.5, %v909_v2  ;;  %v3326_v14 = vpop.eup %3325 }
 0x361   :  { %v914_v8 = vadd.f32 0.5, %v913_v63  ;;  %v918_v15 = vmul.f32 0.5, %v3326_v14 }
 0x362   :  { %v921_v24 = vmul.f32 %v3324_v60, %v910_v43 }
 0x363   :  { %v920_v3 = vmul.f32 %v914_v8, %v4321_v20  ;;  %v919_v16 = vadd.f32 0.5, %v918_v15  ;;  %v4385_v20 = vld [vmem:[#allocation7 + $0x8] ss:$16 sps:$4 sm:$0xff]  }
 0x365   :  { %v4377_v6 = vadd.f32 %v921_v24, %v920_v3 }
 0x367   :  { %3327 = vtanh.f32 %v4377_v6 }
 0x371   :  { %v3328_v17 = vpop.eup %3327 }
 0x372   :  { %v924_v18 = vmul.f32 %v3328_v17, %v919_v16 }
 0x374   :  { %926 = vst.msk [vmem:[#allocation11 + $0x10] sm:$0xff] %vm698_vm5, %v924_v18  ;;  %v933_v19 = vpack.c.bf16 %v924_v18, %v924_v18 }
 0x375   :  { %928 = vst.msk [vmem:[#allocation11 + $0x28] sm:$0xff] %vm701_vm6, %v924_v18 }
 0x376   :  { %967 = vmatmul.mubr.bf16.vlgmr.msra.gmra.mrb[28].mxu0 %v933_v19  ;;  %1008 = vmatmul.mubr.bf16.vlgmr.msra.gmra.mrb[28].mxu1 %v933_v19  ;;  %v4468_v19 = vld [vmem:[#allocation7 + $0x40] ss:$16 sps:$4 sm:$0xff]  }
 0x377   :  { %1048 = vmatpush1.bf16.msra.mxu0 %v4382_v22  ;;  %1089 = vmatpush1.bf16.msra.mxu1 %v4385_v20 }
 0x378   :  { %1049 = vmatprep.subr.bf16.mxu0 %v4388_v12  ;;  %1090 = vmatprep.subr.bf16.mxu1 %v4391_v21 }
 0x379   :  { %1079 = vmatprep.mubr.bf16.mxu0 %v5701_v57  ;;  %1120 = vmatprep.mubr.bf16.mxu1 %v5701_v57 }
 0x37b   :  { %1050 = vmatpush1.bf16.msra.mxu0 %v4396_v0  ;;  %1091 = vmatpush1.bf16.msra.mxu1 %v4399_v13 }
 0x37c   :  { %1051 = vmatprep.subr.bf16.mxu0 %v4402_v32  ;;  %1092 = vmatprep.subr.bf16.mxu1 %v3876_v23  ;;  %v4428_v23 = vld [vmem:[#allocation7 + $0x4] ss:$16 sps:$4 sm:$0xff]  }
 0x37f   :  { %1052 = vmatpush1.bf16.msra.mxu0 %v3882_v25  ;;  %1093 = vmatpush1.bf16.msra.mxu1 %v3884_v26  ;;  %v4431_v25 = vld [vmem:[#allocation7 + $0xc] ss:$16 sps:$4 sm:$0xff]  }
 0x380   :  { %1053 = vmatprep.subr.bf16.mxu0 %v3888_v27  ;;  %1094 = vmatprep.subr.bf16.mxu1 %v3890_v28  ;;  %v5717_v28 = vld [vmem:[#allocation38_spill] sm:$0xff] }
 0x383   :  { %1054 = vmatpush1.bf16.msra.mxu0 %v3892_v29  ;;  %1095 = vmatpush1.bf16.msra.mxu1 %v3894_v30  ;;  %v5718_v30 = vld [vmem:[#allocation32_spill] sm:$0xff] }
 0x384   :  { %1055 = vmatprep.subr.bf16.mxu0 %v3900_v33  ;;  %1096 = vmatprep.subr.bf16.mxu1 %v3904_v34  ;;  %v5719_v33 = vld [vmem:[#allocation35_spill] sm:$0xff] }
 0x385   :  { %v5720_v34 = vsel %vm4071_vm2, %v5718_v30, %v5719_v33 }
 0x387   :  { %1056 = vmatpush1.bf16.msra.mxu0 %v3908_v36  ;;  %1097 = vmatpush1.bf16.msra.mxu1 %v3910_v37 }
 0x388   :  { %1057 = vmatprep.subr.bf16.mxu0 %v3914_v38  ;;  %1098 = vmatprep.subr.bf16.mxu1 %v3918_v39  ;;  %v5721_v39 = vld [vmem:[#allocation33_spill] sm:$0xff] }
 0x38b   :  { %1058 = vmatpush1.bf16.msra.mxu0 %v3920_v40  ;;  %1099 = vmatpush1.bf16.msra.mxu1 %v3924_v41  ;;  %v5722_v40 = vld [vmem:[#allocation36_spill] sm:$0xff] }
 0x38c   :  { %1059 = vmatprep.subr.bf16.mxu0 %v3930_v44  ;;  %1100 = vmatprep.subr.bf16.mxu1 %v3932_v45  ;;  %v5723_v41 = vsel %vm4075_vm3, %v5721_v39, %v5722_v40  ;;  %v5724_v45 = vld [vmem:[#allocation34_spill] sm:$0xff] }
 0x38f   :  { %1060 = vmatpush1.bf16.msra.mxu0 %v3936_v46  ;;  %1101 = vmatpush1.bf16.msra.mxu1 %v3938_v47  ;;  %v5725_v46 = vld [vmem:[#allocation37_spill] sm:$0xff] }
 0x390   :  { %1061 = vmatprep.subr.bf16.mxu0 %v5702_v56  ;;  %1102 = vmatprep.subr.bf16.mxu1 %v5703_v54  ;;  %v5726_v47 = vsel %vm4079_vm4, %v5724_v45, %v5725_v46 }
 0x393   :  { %1062 = vmatpush1.bf16.msra.mxu0 %v5704_v42  ;;  %1103 = vmatpush1.bf16.msra.mxu1 %v5705_v1 }
 0x394   :  { %1158 = vmatprep.subr.bf16.mxu0 %v4428_v23  ;;  %1199 = vmatprep.subr.bf16.mxu1 %v4431_v25 }
 0x449   :  { %v968_v26 = vpop.f32.mrb[28].mxu0  ;;  %v1009_v27 = vpop.f32.mrb[28].mxu1 }
 0x44a   :  { %v1016_v29 = vadd.f32 %v968_v26, %v5717_v28  ;;  %v1018_v36 = vadd.f32 %v1009_v27, %v5720_v34  ;;  %v970_v37 = vpop.f32.mrb[29].mxu0  ;;  %v1011_v38 = vpop.f32.mrb[29].mxu1  ;;  %v4471_v26 = vld [vmem:[#allocation7 + $0x48] ss:$16 sps:$4 sm:$0xff]   ;;  %v4474_v27 = vld [vmem:[#allocation7 + $0x64] ss:$16 sps:$4 sm:$0xff]  }
 0x44b   :  { %v1017_v44 = vadd.f32 %v970_v37, %v5723_v41  ;;  %v1019_v56 = vadd.f32 %v1011_v38, %v5726_v47  ;;  %v972_v54 = vpop.f32.mrb[30].mxu0  ;;  %v1013_v42 = vpop.f32.mrb[30].mxu1  ;;  %v4477_v28 = vld [vmem:[#allocation7 + $0x6c] ss:$16 sps:$4 sm:$0xff]   ;;  %v4483_v34 = vld [vmem:[#allocation7 + $0x68] ss:$16 sps:$4 sm:$0xff]  }
 0x44c   :  { %v1020_v1 = vmul.f32 0.5, %v1016_v29  ;;  %v973_v35 = vpop.f32.mrb[31].mxu0  ;;  %v1014_v31 = vpop.f32.mrb[31].mxu1  ;;  %v4480_v29 = vld [vmem:[#allocation7 + $0x60] ss:$16 sps:$4 sm:$0xff]  }
 0x44d   :  { %v1024_v55 = vmul.f32 0.5, %v1017_v44  ;;  %v1029_v11 = vmul.f32 0.5, %v1019_v56  ;;  %v4489_v37 = vld [vmem:[#allocation7 + $0x8c] ss:$16 sps:$4 sm:$0xff]   ;;  %v4492_v38 = vld [vmem:[#allocation7 + $0x80] ss:$16 sps:$4 sm:$0xff]  }
 0x44e   :  { %3329 = vtanh.f32 %v1020_v1  ;;  %v4495_v41 = vld [vmem:[#allocation7 + $0x88] ss:$16 sps:$4 sm:$0xff]   ;;  %v4498_v44 = vld [vmem:[#allocation7 + $0xa4] ss:$16 sps:$4 sm:$0xff]   ;;  %v4501_v47 = vld [vmem:[#allocation7 + $0xac] ss:$16 sps:$4 sm:$0xff]  }
 0x44f   :  { %3331 = vtanh.f32 %v1024_v55  ;;  %v4504_v56 = vld [vmem:[#allocation7 + $0xa0] ss:$16 sps:$4 sm:$0xff]   ;;  %v4507_v54 = vld [vmem:[#allocation7 + $0xa8] ss:$16 sps:$4 sm:$0xff]   ;;  %v4510_v42 = vld [vmem:[#allocation7 + $0xc4] ss:$16 sps:$4 sm:$0xff]  }
 0x450   :  { %3333 = vtanh.f32 %v1018_v36  ;;  %v4486_v36 = vld [vmem:[#allocation7 + $0x84] ss:$16 sps:$4 sm:$0xff]   ;;  %v4513_v1 = vld [vmem:[#allocation7 + $0xcc] ss:$16 sps:$4 sm:$0xff]   ;;  %v4516_v35 = vld [vmem:[#allocation7 + $0xc0] ss:$16 sps:$4 sm:$0xff]  }
 0x451   :  { %3335 = vtanh.f32 %v1029_v11  ;;  %v4519_v31 = vld [vmem:[#allocation7 + $0xc8] ss:$16 sps:$4 sm:$0xff]   ;;  %v4522_v55 = vld [vmem:[#allocation7 + $0xe4] ss:$16 sps:$4 sm:$0xff]   ;;  %v4525_v11 = vld [vmem:[#allocation7 + $0xec] ss:$16 sps:$4 sm:$0xff]  }
 0x458   :  { %v3330_v7 = vpop.eup %3329 }
 0x459   :  { %v3332_v48 = vpop.eup %3331  ;;  %v1022_v50 = vmul.f32 0.5, %v3330_v7  ;;  %v4528_v7 = vld [vmem:[#allocation7 + $0xe0] ss:$16 sps:$4 sm:$0xff]  }
 0x45a   :  { %v1026_v4 = vmul.f32 0.5, %v3332_v48  ;;  %v3334_v63 = vpop.eup %3333  ;;  %v4531_v48 = vld [vmem:[#allocation7 + $0xe8] ss:$16 sps:$4 sm:$0xff]  }
 0x45b   :  { %v1023_v2 = vadd.f32 0.5, %v1022_v50  ;;  %v3336_v3 = vpop.eup %3335 }
 0x45c   :  { %v1027_v43 = vadd.f32 0.5, %v1026_v4  ;;  %v1031_v14 = vmul.f32 0.5, %v3336_v3 }
 0x45d   :  { %v1034_v60 = vmul.f32 %v3334_v63, %v1023_v2  ;;  %v5727_v2 = vld [vmem:[#allocation41_spill] sm:$0xff] }
 0x45e   :  { %v1033_v8 = vmul.f32 %v1027_v43, %v4377_v6  ;;  %v1032_v15 = vadd.f32 0.5, %v1031_v14  ;;  %v4465_v6 = vld [vmem:[#allocation7 + $0x4c] ss:$16 sps:$4 sm:$0xff]   ;;  %v5728_v43 = vsel %vm4071_vm2, %v5719_v33, %v5718_v30  ;;  %v5729_v14 = vsel %vm4075_vm3, %v5722_v40, %v5721_v39 }
 0x460   :  { %v4451_v24 = vadd.f32 %v1034_v60, %v1033_v8 }
 0x462   :  { %3337 = vtanh.f32 %v4451_v24 }
 0x46c   :  { %v3338_v16 = vpop.eup %3337 }
 0x46d   :  { %v1037_v17 = vmul.f32 %v3338_v16, %v1032_v15  ;;  %v5730_v16 = vsel %vm4079_vm4, %v5725_v46, %v5724_v45 }
 0x46f   :  { %1039 = vst.msk [vmem:[#allocation11 + $0x18] sm:$0xff] %vm698_vm5, %v1037_v17  ;;  %v1046_v18 = vpack.c.bf16 %v1037_v17, %v1037_v17 }
 0x470   :  { %1041 = vst.msk [vmem:[#allocation11 + $0x20] sm:$0xff] %vm701_vm6, %v1037_v17 }
 0x471   :  { %1080 = vmatmul.mubr.bf16.vlgmr.msra.gmra.mrb[32].mxu0 %v1046_v18  ;;  %1121 = vmatmul.mubr.bf16.vlgmr.msra.gmra.mrb[32].mxu1 %v1046_v18 }
 0x472   :  { %1159 = vmatpush1.bf16.msra.mxu0 %v4382_v22  ;;  %1200 = vmatpush1.bf16.msra.mxu1 %v4385_v20 }
 0x473   :  { %1160 = vmatprep.subr.bf16.mxu0 %v4388_v12  ;;  %1201 = vmatprep.subr.bf16.mxu1 %v4391_v21 }
 0x474   :  { %1190 = vmatprep.mubr.bf16.mxu0 %v5701_v57  ;;  %1231 = vmatprep.mubr.bf16.mxu1 %v5701_v57 }
 0x476   :  { %1161 = vmatpush1.bf16.msra.mxu0 %v4396_v0  ;;  %1202 = vmatpush1.bf16.msra.mxu1 %v4399_v13 }
 0x477   :  { %1162 = vmatprep.subr.bf16.mxu0 %v4402_v32  ;;  %1203 = vmatprep.subr.bf16.mxu1 %v4465_v6 }
 0x47a   :  { %1163 = vmatpush1.bf16.msra.mxu0 %v4468_v19  ;;  %1204 = vmatpush1.bf16.msra.mxu1 %v4471_v26 }
 0x47b   :  { %1164 = vmatprep.subr.bf16.mxu0 %v4474_v27  ;;  %1205 = vmatprep.subr.bf16.mxu1 %v4477_v28 }
 0x47e   :  { %1165 = vmatpush1.bf16.msra.mxu0 %v4480_v29  ;;  %1206 = vmatpush1.bf16.msra.mxu1 %v4483_v34 }
 0x47f   :  { %1166 = vmatprep.subr.bf16.mxu0 %v4486_v36  ;;  %1207 = vmatprep.subr.bf16.mxu1 %v4489_v37 }
 0x482   :  { %1167 = vmatpush1.bf16.msra.mxu0 %v4492_v38  ;;  %1208 = vmatpush1.bf16.msra.mxu1 %v4495_v41 }
 0x483   :  { %1168 = vmatprep.subr.bf16.mxu0 %v4498_v44  ;;  %1209 = vmatprep.subr.bf16.mxu1 %v4501_v47 }
 0x486   :  { %1169 = vmatpush1.bf16.msra.mxu0 %v4504_v56  ;;  %1210 = vmatpush1.bf16.msra.mxu1 %v4507_v54 }
 0x487   :  { %1170 = vmatprep.subr.bf16.mxu0 %v4510_v42  ;;  %1211 = vmatprep.subr.bf16.mxu1 %v4513_v1 }
 0x48a   :  { %1171 = vmatpush1.bf16.msra.mxu0 %v4516_v35  ;;  %1212 = vmatpush1.bf16.msra.mxu1 %v4519_v31 }
 0x48b   :  { %1172 = vmatprep.subr.bf16.mxu0 %v4522_v55  ;;  %1213 = vmatprep.subr.bf16.mxu1 %v4525_v11 }
 0x48e   :  { %1173 = vmatpush1.bf16.msra.mxu0 %v4528_v7  ;;  %1214 = vmatpush1.bf16.msra.mxu1 %v4531_v48 }
 0x48f   :  { %1269 = vmatprep.subr.bf16.mxu0 %v4428_v23  ;;  %1310 = vmatprep.subr.bf16.mxu1 %v4431_v25 }
 0x544   :  { %v1081_v50 = vpop.f32.mrb[32].mxu0  ;;  %v1122_v4 = vpop.f32.mrb[32].mxu1 }
 0x545   :  { %v1129_v63 = vadd.f32 %v1081_v50, %v5727_v2  ;;  %v1131_v60 = vadd.f32 %v1122_v4, %v5728_v43  ;;  %v1083_v8 = vpop.f32.mrb[33].mxu0  ;;  %v1124_v3 = vpop.f32.mrb[33].mxu1 }
 0x546   :  { %v1130_v15 = vadd.f32 %v1083_v8, %v5729_v14  ;;  %v1132_v17 = vadd.f32 %v1124_v3, %v5730_v16  ;;  %v1085_v18 = vpop.f32.mrb[34].mxu0  ;;  %v1126_v50 = vpop.f32.mrb[34].mxu1 }
 0x547   :  { %v1133_v2 = vmul.f32 0.5, %v1129_v63  ;;  %v1086_v62 = vpop.f32.mrb[35].mxu0  ;;  %v1127_v30 = vpop.f32.mrb[35].mxu1  ;;  %v5732_v50 = vsel %vm4071_vm2, %v4095_v51, %v4052_v58 }
 0x548   :  { %v1137_v33 = vmul.f32 0.5, %v1130_v15  ;;  %v1142_v4 = vmul.f32 0.5, %v1132_v17  ;;  %v5731_v17 = vld [vmem:[#allocation42_spill] sm:$0xff] }
 0x549   :  { %3339 = vtanh.f32 %v1133_v2 }
 0x54a   :  { %3341 = vtanh.f32 %v1137_v33 }
 0x54b   :  { %3343 = vtanh.f32 %v1131_v60 }
 0x54c   :  { %3345 = vtanh.f32 %v1142_v4  ;;  %v5733_v4 = vsel %vm4075_vm3, %v5712_v9, %v4055_v53 }
 0x553   :  { %v3340_v43 = vpop.eup %3339 }
 0x554   :  { %v3342_v52 = vpop.eup %3341  ;;  %v1135_v39 = vmul.f32 0.5, %v3340_v43 }
 0x555   :  { %v1139_v40 = vmul.f32 0.5, %v3342_v52  ;;  %v3344_v14 = vpop.eup %3343 }
 0x556   :  { %v1136_v8 = vadd.f32 0.5, %v1135_v39  ;;  %v3346_v62 = vpop.eup %3345 }
 0x557   :  { %v1140_v61 = vadd.f32 0.5, %v1139_v40  ;;  %v1144_v63 = vmul.f32 0.5, %v3346_v62 }
 0x558   :  { %v1147_v45 = vmul.f32 %v3344_v14, %v1136_v8 }
 0x559   :  { %v1146_v46 = vmul.f32 %v1140_v61, %v4451_v24  ;;  %v1145_v15 = vadd.f32 0.5, %v1144_v63 }
 0x55b   :  { %v4553_v3 = vadd.f32 %v1147_v45, %v1146_v46 }
 0x55d   :  { %3347 = vtanh.f32 %v4553_v3 }
 0x567   :  { %v3348_v60 = vpop.eup %3347 }
 0x568   :  { %v1150_v16 = vmul.f32 %v3348_v60, %v1145_v15 }
 0x56a   :  { %1151 = vst.msk [vmem:[#allocation11 + $0x20] sm:$0xff] %vm698_vm5, %v1150_v16  ;;  %v1157_v52 = vpack.c.bf16 %v1150_v16, %v1150_v16 }
 0x56b   :  { %1152 = vst.msk [vmem:[#allocation11 + $0x18] sm:$0xff] %vm701_vm6, %v1150_v16 }
 0x56c   :  { %1191 = vmatmul.mubr.bf16.vlgmr.msra.gmra.mrb[36].mxu0 %v1157_v52  ;;  %1232 = vmatmul.mubr.bf16.vlgmr.msra.gmra.mrb[36].mxu1 %v1157_v52 }
 0x56d   :  { %1270 = vmatpush1.bf16.msra.mxu0 %v4382_v22  ;;  %1311 = vmatpush1.bf16.msra.mxu1 %v4385_v20 }
 0x56e   :  { %1271 = vmatprep.subr.bf16.mxu0 %v4388_v12  ;;  %1312 = vmatprep.subr.bf16.mxu1 %v4391_v21 }
 0x56f   :  { %1301 = vmatprep.mubr.bf16.mxu0 %v5701_v57  ;;  %1342 = vmatprep.mubr.bf16.mxu1 %v5701_v57 }
 0x571   :  { %1272 = vmatpush1.bf16.msra.mxu0 %v4396_v0  ;;  %1313 = vmatpush1.bf16.msra.mxu1 %v4399_v13 }
 0x572   :  { %1273 = vmatprep.subr.bf16.mxu0 %v4402_v32  ;;  %1314 = vmatprep.subr.bf16.mxu1 %v4465_v6 }
 0x575   :  { %1274 = vmatpush1.bf16.msra.mxu0 %v4468_v19  ;;  %1315 = vmatpush1.bf16.msra.mxu1 %v4471_v26 }
 0x576   :  { %1275 = vmatprep.subr.bf16.mxu0 %v4474_v27  ;;  %1316 = vmatprep.subr.bf16.mxu1 %v4477_v28 }
 0x579   :  { %1276 = vmatpush1.bf16.msra.mxu0 %v4480_v29  ;;  %1317 = vmatpush1.bf16.msra.mxu1 %v4483_v34 }
 0x57a   :  { %1277 = vmatprep.subr.bf16.mxu0 %v4486_v36  ;;  %1318 = vmatprep.subr.bf16.mxu1 %v4489_v37 }
 0x57d   :  { %1278 = vmatpush1.bf16.msra.mxu0 %v4492_v38  ;;  %1319 = vmatpush1.bf16.msra.mxu1 %v4495_v41 }
 0x57e   :  { %1279 = vmatprep.subr.bf16.mxu0 %v4498_v44  ;;  %1320 = vmatprep.subr.bf16.mxu1 %v4501_v47 }
 0x581   :  { %1280 = vmatpush1.bf16.msra.mxu0 %v4504_v56  ;;  %1321 = vmatpush1.bf16.msra.mxu1 %v4507_v54 }
 0x582   :  { %1281 = vmatprep.subr.bf16.mxu0 %v4510_v42  ;;  %1322 = vmatprep.subr.bf16.mxu1 %v4513_v1 }
 0x585   :  { %1282 = vmatpush1.bf16.msra.mxu0 %v4516_v35  ;;  %1323 = vmatpush1.bf16.msra.mxu1 %v4519_v31 }
 0x586   :  { %1283 = vmatprep.subr.bf16.mxu0 %v4522_v55  ;;  %1324 = vmatprep.subr.bf16.mxu1 %v4525_v11 }
 0x589   :  { %1284 = vmatpush1.bf16.msra.mxu0 %v4528_v7  ;;  %1325 = vmatpush1.bf16.msra.mxu1 %v4531_v48 }
 0x58a   :  { %1380 = vmatprep.subr.bf16.mxu0 %v4428_v23  ;;  %1421 = vmatprep.subr.bf16.mxu1 %v4431_v25  ;;  %v5734_v25 = vld [vmem:[#allocation31_spill] sm:$0xff] }
 0x58b   :  { %v5735_v43 = vsel %vm4079_vm4, %v5715_v49, %v5734_v25 }
 0x63f   :  { %v1192_v61 = vpop.f32.mrb[36].mxu0  ;;  %v1233_v24 = vpop.f32.mrb[36].mxu1 }
 0x640   :  { %v1240_v18 = vadd.f32 %v1192_v61, %v5731_v17  ;;  %v1242_v2 = vadd.f32 %v1233_v24, %v5732_v50  ;;  %v1194_v30 = vpop.f32.mrb[37].mxu0  ;;  %v1235_v33 = vpop.f32.mrb[37].mxu1 }
 0x641   :  { %v1241_v23 = vadd.f32 %v1194_v30, %v5733_v4  ;;  %v1243_v39 = vadd.f32 %v1235_v33, %v5735_v43  ;;  %v1196_v40 = vpop.f32.mrb[38].mxu0  ;;  %v1237_v8 = vpop.f32.mrb[38].mxu1 }
 0x642   :  { %v1244_v14 = vmul.f32 0.5, %v1240_v18  ;;  %v1197_v45 = vpop.f32.mrb[39].mxu0  ;;  %v1238_v51 = vpop.f32.mrb[39].mxu1 }
 0x643   :  { %v1248_v58 = vmul.f32 0.5, %v1241_v23  ;;  %v1253_v46 = vmul.f32 0.5, %v1243_v39  ;;  %v3205_v51 = vld [vmem:[#allocation8 + $0x4] ss:$16 sps:$4 sm:$0xff]  }
 0x644   :  { %3349 = vtanh.f32 %v1244_v14 }
 0x645   :  { %3351 = vtanh.f32 %v1248_v58  ;;  %v3208_v58 = vld [vmem:[#allocation8 + $0xc] ss:$16 sps:$4 sm:$0xff]  }
 0x646   :  { %3353 = vtanh.f32 %v1242_v2 }
 0x647   :  { %3355 = vtanh.f32 %v1253_v46  ;;  %v3203_v46 = vld [vmem:[#allocation8] ss:$16 sps:$4 sm:$0xff]  }
 0x64e   :  { %v3350_v62 = vpop.eup %3349 }
 0x64f   :  { %v3352_v63 = vpop.eup %3351  ;;  %v1246_v53 = vmul.f32 0.5, %v3350_v62  ;;  %v3206_v62 = vld [vmem:[#allocation8 + $0x8] ss:$16 sps:$4 sm:$0xff]  }
 0x650   :  { %v1250_v9 = vmul.f32 0.5, %v3352_v63  ;;  %v3354_v60 = vpop.eup %3353  ;;  %v3209_v63 = vld [vmem:[#allocation8 + $0x20] ss:$16 sps:$4 sm:$0xff]  }
 0x651   :  { %v1247_v15 = vadd.f32 0.5, %v1246_v53  ;;  %v3356_v24 = vpop.eup %3355  ;;  %v3211_v53 = vld [vmem:[#allocation8 + $0x24] ss:$16 sps:$4 sm:$0xff]  }
 0x652   :  { %v1251_v16 = vadd.f32 0.5, %v1250_v9  ;;  %v1255_v17 = vmul.f32 0.5, %v3356_v24  ;;  %v3212_v9 = vld [vmem:[#allocation8 + $0x28] ss:$16 sps:$4 sm:$0xff]   ;;  %v3226_v24 = vld [vmem:[#allocation8 + $0x6c] ss:$16 sps:$4 sm:$0xff]  }
 0x653   :  { %v1258_v49 = vmul.f32 %v3354_v60, %v1247_v15  ;;  %v3214_v15 = vld [vmem:[#allocation8 + $0x2c] ss:$16 sps:$4 sm:$0xff]   ;;  %v3217_v60 = vld [vmem:[#allocation8 + $0x44] ss:$16 sps:$4 sm:$0xff]  }
 0x654   :  { %v1257_v52 = vmul.f32 %v1251_v16, %v4553_v3  ;;  %v1256_v18 = vadd.f32 0.5, %v1255_v17  ;;  %v3220_v16 = vld [vmem:[#allocation8 + $0x4c] ss:$16 sps:$4 sm:$0xff]   ;;  %v3221_v17 = vld [vmem:[#allocation8 + $0x60] ss:$16 sps:$4 sm:$0xff]  }
 0x656   :  { %v4609_v61 = vadd.f32 %v1258_v49, %v1257_v52  ;;  %v3215_v49 = vld [vmem:[#allocation8 + $0x40] ss:$16 sps:$4 sm:$0xff]   ;;  %v3218_v52 = vld [vmem:[#allocation8 + $0x48] ss:$16 sps:$4 sm:$0xff]  }
 0x658   :  { %3357 = vtanh.f32 %v4609_v61 }
 0x662   :  { %v3358_v50 = vpop.eup %3357 }
 0x663   :  { %v1261_v2 = vmul.f32 %v3358_v50, %v1256_v18  ;;  %v3224_v18 = vld [vmem:[#allocation8 + $0x68] ss:$16 sps:$4 sm:$0xff]   ;;  %v3229_v50 = vld [vmem:[#allocation8 + $0x84] ss:$16 sps:$4 sm:$0xff]  }
 0x665   :  { %1262 = vst.msk [vmem:[#allocation11 + $0x28] sm:$0xff] %vm698_vm5, %v1261_v2  ;;  %v1268_v30 = vpack.c.bf16 %v1261_v2, %v1261_v2 }
 0x666   :  { %1263 = vst.msk [vmem:[#allocation11 + $0x10] sm:$0xff] %vm701_vm6, %v1261_v2  ;;  %v3232_v2 = vld [vmem:[#allocation8 + $0x8c] ss:$16 sps:$4 sm:$0xff]  }
 0x667   :  { %1302 = vmatmul.mubr.bf16.vlgmr.msra.gmra.mrb[40].mxu0 %v1268_v30  ;;  %1343 = vmatmul.mubr.bf16.vlgmr.msra.gmra.mrb[40].mxu1 %v1268_v30  ;;  %v3227_v30 = vld [vmem:[#allocation8 + $0x80] ss:$16 sps:$4 sm:$0xff]  }
 0x668   :  { %1381 = vmatpush1.bf16.msra.mxu0 %v4382_v22  ;;  %1422 = vmatpush1.bf16.msra.mxu1 %v4385_v20 }
 0x669   :  { %1382 = vmatprep.subr.bf16.mxu0 %v4388_v12  ;;  %1423 = vmatprep.subr.bf16.mxu1 %v4391_v21  ;;  %v5736_v12 = vld [vmem:[#allocation52_spill] sm:$0xff] }
 0x66a   :  { %1412 = vmatprep.mubr.bf16.mxu0 %v5701_v57  ;;  %1453 = vmatprep.mubr.bf16.mxu1 %v5701_v57 }
 0x66c   :  { %1383 = vmatpush1.bf16.msra.mxu0 %v4396_v0  ;;  %1424 = vmatpush1.bf16.msra.mxu1 %v4399_v13  ;;  %v5737_v0 = vld [vmem:[#allocation44_spill] sm:$0xff]  ;;  %v5738_v13 = vld [vmem:[#allocation27_spill] sm:$0xff] }
 0x66d   :  { %1384 = vmatprep.subr.bf16.mxu0 %v4402_v32  ;;  %1425 = vmatprep.subr.bf16.mxu1 %v4465_v6  ;;  %v5739_v32 = vsel %vm4071_vm2, %v5737_v0, %v5738_v13  ;;  %v3236_v0 = vld [vmem:[#allocation8 + $0xa8] ss:$16 sps:$4 sm:$0xff]   ;;  %v3241_v13 = vld [vmem:[#allocation8 + $0xc4] ss:$16 sps:$4 sm:$0xff]  }
 0x670   :  { %1385 = vmatpush1.bf16.msra.mxu0 %v4468_v19  ;;  %1426 = vmatpush1.bf16.msra.mxu1 %v4471_v26 }
 0x671   :  { %1386 = vmatprep.subr.bf16.mxu0 %v4474_v27  ;;  %1427 = vmatprep.subr.bf16.mxu1 %v4477_v28  ;;  %v5740_v27 = vld [vmem:[#allocation47_spill] sm:$0xff]  ;;  %v5741_v28 = vld [vmem:[#allocation28_spill] sm:$0xff] }
 0x674   :  { %1387 = vmatpush1.bf16.msra.mxu0 %v4480_v29  ;;  %1428 = vmatpush1.bf16.msra.mxu1 %v4483_v34  ;;  %v5742_v29 = vsel %vm4075_vm3, %v5740_v27, %v5741_v28  ;;  %v3250_v27 = vld [vmem:[#allocation8 + $0xec] ss:$16 sps:$4 sm:$0xff]   ;;  %v3245_v28 = vld [vmem:[#allocation8 + $0xe0] ss:$16 sps:$4 sm:$0xff]  }
 0x675   :  { %1388 = vmatprep.subr.bf16.mxu0 %v4486_v36  ;;  %1429 = vmatprep.subr.bf16.mxu1 %v4489_v37  ;;  %v5743_v36 = vld [vmem:[#allocation48_spill] sm:$0xff]  ;;  %v5744_v37 = vld [vmem:[#allocation30_spill] sm:$0xff] }
 0x678   :  { %1389 = vmatpush1.bf16.msra.mxu0 %v4492_v38  ;;  %1430 = vmatpush1.bf16.msra.mxu1 %v4495_v41  ;;  %v5745_v38 = vsel %vm4079_vm4, %v5743_v36, %v5744_v37  ;;  %v4672_v36 = vld [vmem:[#allocation10 + $0xc] ss:$16 sps:$4 sm:$0xff]  }
 0x679   :  { %1390 = vmatprep.subr.bf16.mxu0 %v4498_v44  ;;  %1431 = vmatprep.subr.bf16.mxu1 %v4501_v47  ;;  %5747 = vst [vmem:[#allocation23_spill] sm:$0xff] %v4672_v36 }
 0x67c   :  { %1391 = vmatpush1.bf16.msra.mxu0 %v4504_v56  ;;  %1432 = vmatpush1.bf16.msra.mxu1 %v4507_v54 }
 0x67d   :  { %1392 = vmatprep.subr.bf16.mxu0 %v4510_v42  ;;  %1433 = vmatprep.subr.bf16.mxu1 %v4513_v1 }
 0x680   :  { %1393 = vmatpush1.bf16.msra.mxu0 %v4516_v35  ;;  %1434 = vmatpush1.bf16.msra.mxu1 %v4519_v31 }
 0x681   :  { %1394 = vmatprep.subr.bf16.mxu0 %v4522_v55  ;;  %1435 = vmatprep.subr.bf16.mxu1 %v4525_v11 }
 0x684   :  { %1395 = vmatpush1.bf16.msra.mxu0 %v4528_v7  ;;  %1436 = vmatpush1.bf16.msra.mxu1 %v4531_v48 }
 0x685   :  { %1758 = vmatprep.subr.bf16.mxu0 %v3205_v51  ;;  %1831 = vmatprep.subr.bf16.mxu1 %v3208_v58 }
 0x73a   :  { %v1303_v22 = vpop.f32.mrb[40].mxu0  ;;  %v1344_v20 = vpop.f32.mrb[40].mxu1 }
 0x73b   :  { %v1351_v21 = vadd.f32 %v1303_v22, %v5736_v12  ;;  %v1353_v6 = vadd.f32 %v1344_v20, %v5739_v32  ;;  %v1305_v19 = vpop.f32.mrb[41].mxu0  ;;  %v1346_v26 = vpop.f32.mrb[41].mxu1  ;;  %v3230_v22 = vld [vmem:[#allocation8 + $0x88] ss:$16 sps:$4 sm:$0xff]   ;;  %v3235_v20 = vld [vmem:[#allocation8 + $0xa4] ss:$16 sps:$4 sm:$0xff]  }
 0x73c   :  { %v1352_v34 = vadd.f32 %v1305_v19, %v5742_v29  ;;  %v1354_v41 = vadd.f32 %v1346_v26, %v5745_v38  ;;  %v1307_v44 = vpop.f32.mrb[42].mxu0  ;;  %v1348_v47 = vpop.f32.mrb[42].mxu1  ;;  %v3238_v12 = vld [vmem:[#allocation8 + $0xac] ss:$16 sps:$4 sm:$0xff]   ;;  %v3239_v32 = vld [vmem:[#allocation8 + $0xc0] ss:$16 sps:$4 sm:$0xff]  }
 0x73d   :  { %v1355_v56 = vmul.f32 0.5, %v1351_v21  ;;  %v1308_v54 = vpop.f32.mrb[43].mxu0  ;;  %v1349_v42 = vpop.f32.mrb[43].mxu1  ;;  %v3233_v21 = vld [vmem:[#allocation8 + $0xa0] ss:$16 sps:$4 sm:$0xff]   ;;  %v5749_v47 = vld [vmem:[#allocation49_spill] sm:$0xff] }
 0x73e   :  { %v1359_v1 = vmul.f32 0.5, %v1352_v34  ;;  %v1364_v35 = vmul.f32 0.5, %v1354_v41  ;;  %v3242_v19 = vld [vmem:[#allocation8 + $0xc8] ss:$16 sps:$4 sm:$0xff]   ;;  %v3247_v26 = vld [vmem:[#allocation8 + $0xe4] ss:$16 sps:$4 sm:$0xff]  }
 0x73f   :  { %3359 = vtanh.f32 %v1355_v56  ;;  %v3248_v29 = vld [vmem:[#allocation8 + $0xe8] ss:$16 sps:$4 sm:$0xff]   ;;  %v4670_v34 = vld [vmem:[#allocation10 + $0x4] ss:$16 sps:$4 sm:$0xff]  }
 0x740   :  { %3361 = vtanh.f32 %v1359_v1  ;;  %5746 = vst [vmem:[#allocation22_spill] sm:$0xff] %v4670_v34  ;;  %v5748_v41 = vld [vmem:[#allocation53_spill] sm:$0xff]  ;;  %v5750_v56 = vld [vmem:[#allocation43_spill] sm:$0xff] }
 0x741   :  { %3363 = vtanh.f32 %v1353_v6  ;;  %v3244_v6 = vld [vmem:[#allocation8 + $0xcc] ss:$16 sps:$4 sm:$0xff]   ;;  %v5751_v54 = vsel %vm4071_vm2, %v5749_v47, %v5750_v56  ;;  %v1504_v56 = vld [vmem:[#allocation11 + $0x20] sm:$0xff] }
 0x742   :  { %3365 = vtanh.f32 %v1364_v35  ;;  %v1505_v47 = vld [vmem:[#allocation11 + $0x28] sm:$0xff] }
 0x749   :  { %v3360_v31 = vpop.eup %3359 }
 0x74a   :  { %v3362_v55 = vpop.eup %3361  ;;  %v1357_v11 = vmul.f32 0.5, %v3360_v31  ;;  %v5752_v31 = vld [vmem:[#allocation50_spill] sm:$0xff] }
 0x74b   :  { %v1361_v7 = vmul.f32 0.5, %v3362_v55  ;;  %v3364_v3 = vpop.eup %3363  ;;  %v5753_v55 = vld [vmem:[#allocation45_spill] sm:$0xff] }
 0x74c   :  { %v1358_v48 = vadd.f32 0.5, %v1357_v11  ;;  %v3366_v43 = vpop.eup %3365  ;;  %v5754_v11 = vsel %vm4075_vm3, %v5752_v31, %v5753_v55  ;;  %v4757_v31 = vld [vmem:[#allocation10 + $0xac] ss:$16 sps:$4 sm:$0xff]   ;;  %v4761_v55 = vld [vmem:[#allocation10 + $0xa0] ss:$16 sps:$4 sm:$0xff]  }
 0x74d   :  { %v1362_v33 = vadd.f32 0.5, %v1361_v7  ;;  %v1366_v39 = vmul.f32 0.5, %v3366_v43 }
 0x74e   :  { %v1369_v4 = vmul.f32 %v3364_v3, %v1358_v48  ;;  %v5755_v48 = vld [vmem:[#allocation51_spill] sm:$0xff]  ;;  %v5756_v3 = vld [vmem:[#allocation46_spill] sm:$0xff] }
 0x74f   :  { %v1368_v23 = vmul.f32 %v1362_v33, %v4609_v61  ;;  %v1367_v40 = vadd.f32 0.5, %v1366_v39  ;;  %v3223_v61 = vld [vmem:[#allocation8 + $0x64] ss:$16 sps:$4 sm:$0xff]   ;;  %v5757_v33 = vsel %vm4079_vm4, %v5755_v48, %v5756_v3  ;;  %v4769_v48 = vld [vmem:[#allocation10 + $0xcc] ss:$16 sps:$4 sm:$0xff]  }
 0x751   :  { %v4663_v25 = vadd.f32 %v1369_v4, %v1368_v23 }
 0x753   :  { %3367 = vtanh.f32 %v4663_v25 }
 0x75d   :  { %v3368_v8 = vpop.eup %3367 }
 0x75e   :  { %v1372_v14 = vmul.f32 %v3368_v8, %v1367_v40 }
 0x760   :  { %1373 = vst.msk [vmem:[#allocation11 + $0x30] sm:$0xff] %vm698_vm5, %v1372_v14  ;;  %v1379_v45 = vpack.c.bf16 %v1372_v14, %v1372_v14 }
 0x761   :  { %1374 = vst.msk [vmem:[#allocation11 + $0x8] sm:$0xff] %vm701_vm6, %v1372_v14 }
 0x762   :  { %1413 = vmatmul.mubr.bf16.vlgmr.msra.gmra.mrb[44].mxu0 %v1379_v45  ;;  %1454 = vmatmul.mubr.bf16.vlgmr.msra.gmra.mrb[44].mxu1 %v1379_v45 }
 0x763   :  { %1790 = vmatprep.mubr.bf16.mxu0 %v5701_v57  ;;  %1863 = vmatprep.mubr.bf16.mxu1 %v5701_v57 }
 0x764   :  { %1759 = vmatpush1.bf16.msra.mxu0 %v3203_v46  ;;  %1832 = vmatpush1.bf16.msra.mxu1 %v3206_v62 }
 0x765   :  { %1760 = vmatprep.subr.bf16.mxu0 %v3211_v53  ;;  %1833 = vmatprep.subr.bf16.mxu1 %v3214_v15 }
 0x768   :  { %1761 = vmatpush1.bf16.msra.mxu0 %v3209_v63  ;;  %1834 = vmatpush1.bf16.msra.mxu1 %v3212_v9 }
 0x769   :  { %1762 = vmatprep.subr.bf16.mxu0 %v3217_v60  ;;  %1835 = vmatprep.subr.bf16.mxu1 %v3220_v16 }
 0x76c   :  { %1763 = vmatpush1.bf16.msra.mxu0 %v3215_v49  ;;  %1836 = vmatpush1.bf16.msra.mxu1 %v3218_v52 }
 0x76d   :  { %1764 = vmatprep.subr.bf16.mxu0 %v3223_v61  ;;  %1837 = vmatprep.subr.bf16.mxu1 %v3226_v24 }
 0x770   :  { %1765 = vmatpush1.bf16.msra.mxu0 %v3221_v17  ;;  %1838 = vmatpush1.bf16.msra.mxu1 %v3224_v18 }
 0x771   :  { %1766 = vmatprep.subr.bf16.mxu0 %v3229_v50  ;;  %1839 = vmatprep.subr.bf16.mxu1 %v3232_v2  ;;  %v4699_v50 = vld [vmem:[#allocation10] ss:$16 sps:$4 sm:$0xff]   ;;  %v4701_v2 = vld [vmem:[#allocation10 + $0x8] ss:$16 sps:$4 sm:$0xff]  }
 0x774   :  { %1767 = vmatpush1.bf16.msra.mxu0 %v3227_v30  ;;  %1840 = vmatpush1.bf16.msra.mxu1 %v3230_v22  ;;  %v4703_v22 = vld [vmem:[#allocation10 + $0x24] ss:$16 sps:$4 sm:$0xff]  }
 0x775   :  { %1768 = vmatprep.subr.bf16.mxu0 %v3235_v20  ;;  %1841 = vmatprep.subr.bf16.mxu1 %v3238_v12  ;;  %v4705_v20 = vld [vmem:[#allocation10 + $0x2c] ss:$16 sps:$4 sm:$0xff]   ;;  %v4709_v12 = vld [vmem:[#allocation10 + $0x20] ss:$16 sps:$4 sm:$0xff]  }
 0x778   :  { %1769 = vmatpush1.bf16.msra.mxu0 %v3233_v21  ;;  %1842 = vmatpush1.bf16.msra.mxu1 %v3236_v0  ;;  %v4711_v21 = vld [vmem:[#allocation10 + $0x28] ss:$16 sps:$4 sm:$0xff]   ;;  %v4715_v0 = vld [vmem:[#allocation10 + $0x44] ss:$16 sps:$4 sm:$0xff]  }
 0x779   :  { %1770 = vmatprep.subr.bf16.mxu0 %v3241_v13  ;;  %1843 = vmatprep.subr.bf16.mxu1 %v3244_v6  ;;  %v4717_v13 = vld [vmem:[#allocation10 + $0x4c] ss:$16 sps:$4 sm:$0xff]  }
 0x77a   :  { %v1503_v6 = vld [vmem:[#allocation11 + $0x18] sm:$0xff] }
 0x77c   :  { %1771 = vmatpush1.bf16.msra.mxu0 %v3239_v32  ;;  %1844 = vmatpush1.bf16.msra.mxu1 %v3242_v19  ;;  %v1502_v32 = vld [vmem:[#allocation11 + $0x10] sm:$0xff] }
 0x77d   :  { %1772 = vmatprep.subr.bf16.mxu0 %v3247_v26  ;;  %1845 = vmatprep.subr.bf16.mxu1 %v3250_v27  ;;  %v4723_v19 = vld [vmem:[#allocation10 + $0x40] ss:$16 sps:$4 sm:$0xff]   ;;  %v4725_v26 = vld [vmem:[#allocation10 + $0x48] ss:$16 sps:$4 sm:$0xff]   ;;  %v1574_v27 = vpack.c.bf16 %v1503_v6, %v1502_v32 }
 0x780   :  { %1773 = vmatpush1.bf16.msra.mxu0 %v3245_v28  ;;  %1846 = vmatpush1.bf16.msra.mxu1 %v3248_v29  ;;  %v4729_v28 = vld [vmem:[#allocation10 + $0x64] ss:$16 sps:$4 sm:$0xff]   ;;  %v4731_v29 = vld [vmem:[#allocation10 + $0x6c] ss:$16 sps:$4 sm:$0xff]  }
 0x781   :  { %2068 = vmatprep.subr.bf16.mxu0 %v4670_v34  ;;  %2109 = vmatprep.subr.bf16.mxu1 %v4672_v36 }
 0x835   :  { %v1414_v37 = vpop.f32.mrb[44].mxu0  ;;  %v1455_v38 = vpop.f32.mrb[44].mxu1 }
 0x836   :  { %v1462_v44 = vadd.f32 %v1414_v37, %v5748_v41  ;;  %v1464_v42 = vadd.f32 %v1455_v38, %v5751_v54  ;;  %v1416_v1 = vpop.f32.mrb[45].mxu0  ;;  %v1457_v35 = vpop.f32.mrb[45].mxu1  ;;  %v4735_v37 = vld [vmem:[#allocation10 + $0x60] ss:$16 sps:$4 sm:$0xff]   ;;  %v4737_v38 = vld [vmem:[#allocation10 + $0x68] ss:$16 sps:$4 sm:$0xff]  }
 0x837   :  { %v1463_v7 = vadd.f32 %v1416_v1, %v5754_v11  ;;  %v1465_v4 = vadd.f32 %v1457_v35, %v5757_v33  ;;  %v1418_v23 = vpop.f32.mrb[46].mxu0  ;;  %v1459_v43 = vpop.f32.mrb[46].mxu1  ;;  %v4741_v41 = vld [vmem:[#allocation10 + $0x84] ss:$16 sps:$4 sm:$0xff]   ;;  %v4749_v54 = vld [vmem:[#allocation10 + $0x80] ss:$16 sps:$4 sm:$0xff]   ;;  %v1575_v1 = vpack.c.bf16 %v1505_v47, %v1504_v56 }
 0x838   :  { %v1466_v39 = vmul.f32 0.5, %v1462_v44  ;;  %v1419_v40 = vpop.f32.mrb[47].mxu0  ;;  %v1460_v8 = vpop.f32.mrb[47].mxu1  ;;  %v4743_v44 = vld [vmem:[#allocation10 + $0x8c] ss:$16 sps:$4 sm:$0xff]   ;;  %v1506_v33 = vld [vmem:[#allocation11 + $0x30] sm:$0xff] }
 0x839   :  { %v1470_v14 = vmul.f32 0.5, %v1463_v7  ;;  %v1475_v45 = vmul.f32 0.5, %v1465_v4  ;;  %v4755_v35 = vld [vmem:[#allocation10 + $0xa4] ss:$16 sps:$4 sm:$0xff]   ;;  %v4763_v11 = vld [vmem:[#allocation10 + $0xa8] ss:$16 sps:$4 sm:$0xff]  }
 0x83a   :  { %3369 = vtanh.f32 %v1466_v39  ;;  %v4767_v7 = vld [vmem:[#allocation10 + $0xc4] ss:$16 sps:$4 sm:$0xff]   ;;  %v4775_v4 = vld [vmem:[#allocation10 + $0xc0] ss:$16 sps:$4 sm:$0xff]   ;;  %v4777_v23 = vld [vmem:[#allocation10 + $0xc8] ss:$16 sps:$4 sm:$0xff]  }
 0x83b   :  { %3371 = vtanh.f32 %v1470_v14  ;;  %5758 = vst [vmem:[#allocation24_spill] sm:$0xff] %v4777_v23  ;;  %v4781_v39 = vld [vmem:[#allocation10 + $0xe4] ss:$16 sps:$4 sm:$0xff]   ;;  %v4783_v40 = vld [vmem:[#allocation10 + $0xec] ss:$16 sps:$4 sm:$0xff]  }
 0x83c   :  { %3373 = vtanh.f32 %v1464_v42  ;;  %v4751_v42 = vld [vmem:[#allocation10 + $0x88] ss:$16 sps:$4 sm:$0xff]   ;;  %5759 = vst [vmem:[#allocation25_spill] sm:$0xff] %v4781_v39  ;;  %5760 = vst [vmem:[#allocation20_spill] sm:$0xff] %v4783_v40  ;;  %v4787_v8 = vld [vmem:[#allocation10 + $0xe0] ss:$16 sps:$4 sm:$0xff]  }
 0x83d   :  { %3375 = vtanh.f32 %v1475_v45  ;;  %5761 = vst [vmem:[#allocation21_spill] sm:$0xff] %v4787_v8  ;;  %v4789_v14 = vld [vmem:[#allocation10 + $0xe8] ss:$16 sps:$4 sm:$0xff]  }
 0x83e   :  { %5762 = vst [vmem:[#allocation39_spill] sm:$0xff] %v4789_v14 }
 0x844   :  { %v3370_v51 = vpop.eup %3369 }
 0x845   :  { %v3372_v58 = vpop.eup %3371  ;;  %v1468_v46 = vmul.f32 0.5, %v3370_v51 }
 0x846   :  { %v1472_v62 = vmul.f32 0.5, %v3372_v58  ;;  %v3374_v53 = vpop.eup %3373  ;;  %v1572_v58 = vld [vmem:[%s5560_s6] sm:$0xf]  ;;  %s3720_s6 = smov [#allocation11]  }
 0x847   :  { %v1469_v63 = vadd.f32 0.5, %v1468_v46  ;;  %v3376_v49 = vpop.eup %3375  ;;  %s2972_s13 = sshll.u32 %s3720_s6, 4  ;;  %s2973_s13 = int_to_ptr.vmem [resolvable:$true] %s2972_s13 }
 0x848   :  { %v1473_v9 = vadd.f32 0.5, %v1472_v62  ;;  %v1477_v52 = vmul.f32 0.5, %v3376_v49  ;;  %s3633_s1 = scalar_lea.vmem %s2973_s13, 1024  ;;  %p3638_p13 = scmp.lt.s32.totalorder %s2973_s13, %s2973_s13 }
 0x849   :  { %v1480_v15 = vmul.f32 %v3374_v53, %v1469_v63  ;;  %v5763_v63 = vld [vmem:[#allocation26_spill] sm:$0xff]  ;;  %p3634_p12 = scmp.ne.s32.totalorder %s2973_s13, %s3633_s1  ;;  %p3639_p0 = scmp.lt.s32.totalorder %s3633_s1, %s3633_s1 }
 0x84a   :  { %v1479_v60 = vmul.f32 %v1473_v9, %v4663_v25  ;;  %v1478_v61 = vadd.f32 0.5, %v1477_v52  ;;  %v1501_v25 = vld [vmem:[#allocation11 + $0x8] sm:$0xff]  ;;  %v5764_v53 = vsub.s32 0, %v5763_v63  ;;  %v5766_v52 = vsub.s32 1, %v5763_v63 }
 0x84b   :  { %p3640_p1 = por %p3639_p0, %p3638_p13 }
 0x84c   :  { %v1481_v16 = vadd.f32 %v1480_v15, %v1479_v60  ;;  %v4846_v9 = vrot.slane %v1572_v58, %v5764_v53  ;;  %v5765_v15 = vsub.s32 2, %v5763_v63 }
 0x84d   :  { %p3641_p2 = pnand %p3640_p1, %p3634_p12 }
 0x84e   :  { %1495 = vrot.lane.b32.xlu1 %v1481_v16, %s3719_s3  ;;  %3377 = vtanh.f32 %v1481_v16  ;;  %1487 = vst.msk [vmem:[#allocation14] sm:$0xff] %vm698_vm5, %v1481_v16  ;;  %v4850_v60 = vrot.slane %v1572_v58, %v5765_v15 }
 0x858   :  { %v3378_v24 = vpop.eup %3377 }
 0x859   :  { %v1483_v17 = vmul.f32 %v3378_v24, %v1478_v61  ;;  %v4858_v61 = vrot.slane %v1572_v58, %v5766_v52  ;;  %v5767_v24 = vsub.s32 3, %v5763_v63 }
 0x85b   :  { %1489 = vrot.lane.b32.xlu0 %v1483_v17, %s3719_s3  ;;  %1484 = vst.msk [vmem:[#allocation11 + $0x38] sm:$0xff] %vm698_vm5, %v1483_v17  ;;  %1486 = vst.msk [vmem:[#allocation12] sm:$0xff] %vm698_vm5, %v1483_v17 }
 0x85c   :  { %1485 = vst.msk [vmem:[#allocation11] sm:$0xff] %vm701_vm6, %v1483_v17  ;;  %v4862_v17 = vrot.slane %v1572_v58, %v5767_v24 }
 0x862   :  { %v1507_v3 = vld [vmem:[#allocation11 + $0x38] sm:$0xff] }
 0x863   :  { %v1500_v18 = vld [vmem:[#allocation11] sm:$0xff]  ;;  %v1576_v43 = vpack.c.bf16 %v1507_v3, %v1506_v33 }
 0x864   :  { %v1573_v30 = vpack.c.bf16 %v1501_v25, %v1500_v18 }
 0x866   :  { %1791 = vmatmul.mubr.bf16.vlgmr.msra.gmra.mrb[48].mxu0 %v1573_v30  ;;  %1864 = vmatmul.mubr.bf16.vlgmr.msra.gmra.mrb[48].mxu1 %v1573_v30 }
 0x867   :  { %2069 = vmatpush1.bf16.msra.mxu0 %v4699_v50  ;;  %2110 = vmatpush1.bf16.msra.mxu1 %v4701_v2 }
 0x868   :  { %2070 = vmatprep.subr.bf16.mxu0 %v4703_v22  ;;  %2111 = vmatprep.subr.bf16.mxu1 %v4705_v20 }
 0x869   :  { %1800 = vmatprep.mubr.bf16.mxu0 %v5701_v57  ;;  %1873 = vmatprep.mubr.bf16.mxu1 %v5701_v57 }
 0x86b   :  { %2071 = vmatpush1.bf16.msra.mxu0 %v4709_v12  ;;  %2112 = vmatpush1.bf16.msra.mxu1 %v4711_v21 }
 0x86c   :  { %2072 = vmatprep.subr.bf16.mxu0 %v4715_v0  ;;  %2113 = vmatprep.subr.bf16.mxu1 %v4717_v13 }
 0x86e   :  { %1801 = vmatmul.mubr.bf16.gmra.mrb[52].mxu0 %v1574_v27  ;;  %1874 = vmatmul.mubr.bf16.gmra.mrb[52].mxu1 %v1574_v27 }
 0x86f   :  { %2073 = vmatpush1.bf16.msra.mxu0 %v4723_v19  ;;  %2114 = vmatpush1.bf16.msra.mxu1 %v4725_v26 }
 0x870   :  { %2074 = vmatprep.subr.bf16.mxu0 %v4729_v28  ;;  %2115 = vmatprep.subr.bf16.mxu1 %v4731_v29 }
 0x871   :  { %1810 = vmatprep.mubr.bf16.mxu0 %v5701_v57  ;;  %1883 = vmatprep.mubr.bf16.mxu1 %v5701_v57 }
 0x873   :  { %2075 = vmatpush1.bf16.msra.mxu0 %v4735_v37  ;;  %2116 = vmatpush1.bf16.msra.mxu1 %v4737_v38 }
 0x874   :  { %2076 = vmatprep.subr.bf16.mxu0 %v4741_v41  ;;  %2117 = vmatprep.subr.bf16.mxu1 %v4743_v44 }
 0x876   :  { %1811 = vmatmul.mubr.bf16.gmra.mrb[56].mxu0 %v1575_v1  ;;  %1884 = vmatmul.mubr.bf16.gmra.mrb[56].mxu1 %v1575_v1 }
 0x877   :  { %2077 = vmatpush1.bf16.msra.mxu0 %v4749_v54  ;;  %2118 = vmatpush1.bf16.msra.mxu1 %v4751_v42 }
 0x878   :  { %2078 = vmatprep.subr.bf16.mxu0 %v4755_v35  ;;  %2119 = vmatprep.subr.bf16.mxu1 %v4757_v31 }
 0x879   :  { %1820 = vmatprep.mubr.bf16.mxu0 %v5701_v57  ;;  %1893 = vmatprep.mubr.bf16.mxu1 %v5701_v57 }
 0x87b   :  { %2079 = vmatpush1.bf16.msra.mxu0 %v4761_v55  ;;  %2120 = vmatpush1.bf16.msra.mxu1 %v4763_v11 }
 0x87c   :  { %2080 = vmatprep.subr.bf16.mxu0 %v4767_v7  ;;  %2121 = vmatprep.subr.bf16.mxu1 %v4769_v48 }
 0x87e   :  { %1821 = vmatmul.mubr.bf16.gmra.mrb[60].mxu0 %v1576_v43  ;;  %1894 = vmatmul.mubr.bf16.gmra.mrb[60].mxu1 %v1576_v43 }
 0x87f   :  { %2081 = vmatpush1.bf16.msra.mxu0 %v4775_v4  ;;  %2122 = vmatpush1.bf16.msra.mxu1 %v4777_v23 }
 0x880   :  { %2082 = vmatprep.subr.bf16.mxu0 %v4781_v39  ;;  %2123 = vmatprep.subr.bf16.mxu1 %v4783_v40 }
 0x881   :  { %2100 = vmatprep.mubr.bf16.mxu0 %v5701_v57  ;;  %2141 = vmatprep.mubr.bf16.mxu1 %v5701_v57 }
 0x883   :  { %2083 = vmatpush1.bf16.msra.mxu0 %v4787_v8  ;;  %2124 = vmatpush1.bf16.msra.mxu1 %v4789_v14 }
 0x884   :  { %2179 = vmatprep.subr.bf16.mxu0 %v4670_v34  ;;  %2220 = vmatprep.subr.bf16.mxu1 %v4672_v36 }
 0x886   :  { %2101 = vmatmul.mubr.bf16.vlgmr.msra.gmra.mrb[64].mxu0 %v5701_v57  ;;  %2142 = vmatmul.mubr.bf16.vlgmr.msra.gmra.mrb[64].mxu1 %v5701_v57 }
 0x887   :  { %2180 = vmatpush1.bf16.msra.mxu0 %v4699_v50  ;;  %2221 = vmatpush1.bf16.msra.mxu1 %v4701_v2 }
 0x888   :  { %2181 = vmatprep.subr.bf16.mxu0 %v4703_v22  ;;  %2222 = vmatprep.subr.bf16.mxu1 %v4705_v20 }
 0x889   :  { %2211 = vmatprep.mubr.bf16.mxu0 %v5701_v57  ;;  %2252 = vmatprep.mubr.bf16.mxu1 %v5701_v57 }
 0x88b   :  { %2182 = vmatpush1.bf16.msra.mxu0 %v4709_v12  ;;  %2223 = vmatpush1.bf16.msra.mxu1 %v4711_v21 }
 0x88c   :  { %2183 = vmatprep.subr.bf16.mxu0 %v4715_v0  ;;  %2224 = vmatprep.subr.bf16.mxu1 %v4717_v13 }
 0x88f   :  { %2184 = vmatpush1.bf16.msra.mxu0 %v4723_v19  ;;  %2225 = vmatpush1.bf16.msra.mxu1 %v4725_v26 }
 0x890   :  { %2185 = vmatprep.subr.bf16.mxu0 %v4729_v28  ;;  %2226 = vmatprep.subr.bf16.mxu1 %v4731_v29 }
 0x893   :  { %2186 = vmatpush1.bf16.msra.mxu0 %v4735_v37  ;;  %2227 = vmatpush1.bf16.msra.mxu1 %v4737_v38 }
 0x894   :  { %2187 = vmatprep.subr.bf16.mxu0 %v4741_v41  ;;  %2228 = vmatprep.subr.bf16.mxu1 %v4743_v44 }
 0x897   :  { %2188 = vmatpush1.bf16.msra.mxu0 %v4749_v54  ;;  %2229 = vmatpush1.bf16.msra.mxu1 %v4751_v42 }
 0x898   :  { %2189 = vmatprep.subr.bf16.mxu0 %v4755_v35  ;;  %2230 = vmatprep.subr.bf16.mxu1 %v4757_v31 }
 0x89b   :  { %2190 = vmatpush1.bf16.msra.mxu0 %v4761_v55  ;;  %2231 = vmatpush1.bf16.msra.mxu1 %v4763_v11 }
 0x89c   :  { %2191 = vmatprep.subr.bf16.mxu0 %v4767_v7  ;;  %2232 = vmatprep.subr.bf16.mxu1 %v4769_v48 }
 0x89f   :  { %2192 = vmatpush1.bf16.msra.mxu0 %v4775_v4  ;;  %2233 = vmatpush1.bf16.msra.mxu1 %v4777_v23 }
 0x8a0   :  { %2193 = vmatprep.subr.bf16.mxu0 %v4781_v39  ;;  %2234 = vmatprep.subr.bf16.mxu1 %v4783_v40 }
 0x8a3   :  { %2194 = vmatpush1.bf16.msra.mxu0 %v4787_v8  ;;  %2235 = vmatpush1.bf16.msra.mxu1 %v4789_v14 }
 0x8a4   :  { %2290 = vmatprep.subr.bf16.mxu0 %v4670_v34  ;;  %2331 = vmatprep.subr.bf16.mxu1 %v4672_v36 }
 0x8c0   :  { %v1496_v45 = vpop.permute.xlu1 %1495 }
 0x8c1   :  { %1499 = vst.msk [vmem:[#allocation14 + $0x8] sm:$0xff] %vm698_vm5, %v1496_v45 }
 0x8cd   :  { %v1490_v51 = vpop.permute.xlu0 %1489 }
 0x8ce   :  { %1493 = vst.msk [vmem:[#allocation12 + $0x8] sm:$0xff] %vm698_vm5, %v1490_v51 }
 0x939   :  { %v4840_v46 = vpop.f32.mrb[48].mxu0  ;;  %v4842_v62 = vpop.f32.mrb[48].mxu1 }
 0x93a   :  { %v4852_v16 = vpop.f32.mrb[49].mxu0  ;;  %v4854_v49 = vpop.f32.mrb[49].mxu1 }
 0x93b   :  { %v1796_v25 = vpop.f32.mrb[50].mxu0  ;;  %v1869_v18 = vpop.f32.mrb[50].mxu1 }
 0x93c   :  { %v4865_v30 = vadd.f32 %v1796_v25, %v4846_v9  ;;  %v4868_v32 = vadd.f32 %v1869_v18, %v4850_v60  ;;  %v1798_v6 = vpop.f32.mrb[51].mxu0  ;;  %v1871_v27 = vpop.f32.mrb[51].mxu1 }
 0x93d   :  { %v4871_v47 = vadd.f32 %v1798_v6, %v4858_v61  ;;  %v4874_v56 = vadd.f32 %v1871_v27, %v4862_v17 }
 0x93e   :  { %5768 = vst [vmem:[#allocation40_spill] sm:$0xff] %v4868_v32 }
 0x93f   :  { %5769 = vst [vmem:[#allocation38_spill] sm:$0xff] %v4871_v47  ;;  %5770 = vst [vmem:[#allocation32_spill] sm:$0xff] %v4874_v56 }
 0x941   :  { %v1802_v1 = vpop.f32.mrb[52].mxu0  ;;  %v1875_v3 = vpop.f32.mrb[52].mxu1 }
 0x942   :  { %v1803_v33 = vadd.f32 %v1802_v1, %v4846_v9  ;;  %v4878_v43 = vadd.f32 %v1875_v3, %v4850_v60  ;;  %v1804_v45 = vpop.f32.mrb[53].mxu0  ;;  %v1877_v51 = vpop.f32.mrb[53].mxu1 }
 0x943   :  { %v4881_v58 = vadd.f32 %v1804_v45, %v4858_v61  ;;  %v4884_v63 = vadd.f32 %v1877_v51, %v4862_v17  ;;  %v1806_v53 = vpop.f32.mrb[54].mxu0  ;;  %v1879_v15 = vpop.f32.mrb[54].mxu1 }
 0x944   :  { %v1807_v52 = vadd.f32 %v1806_v53, %v4846_v9  ;;  %v4888_v24 = vadd.f32 %v1879_v15, %v4850_v60  ;;  %v1808_v25 = vpop.f32.mrb[55].mxu0  ;;  %v1881_v18 = vpop.f32.mrb[55].mxu1 }
 0x945   :  { %5771 = vst [vmem:[#allocation35_spill] sm:$0xff] %v4881_v58  ;;  %5772 = vst [vmem:[#allocation33_spill] sm:$0xff] %v4884_v63  ;;  %v4891_v6 = vadd.f32 %v1808_v25, %v4858_v61  ;;  %v4894_v27 = vadd.f32 %v1881_v18, %v4862_v17 }
 0x946   :  { %5773 = vst [vmem:[#allocation36_spill] sm:$0xff] %v4888_v24 }
 0x947   :  { %5774 = vst [vmem:[#allocation34_spill] sm:$0xff] %v4891_v6  ;;  %5775 = vst [vmem:[#allocation37_spill] sm:$0xff] %v4894_v27 }
 0x949   :  { %v1812_v1 = vpop.f32.mrb[56].mxu0  ;;  %v1885_v3 = vpop.f32.mrb[56].mxu1 }
 0x94a   :  { %v1813_v45 = vadd.f32 %v1812_v1, %v4846_v9  ;;  %v4898_v51 = vadd.f32 %v1885_v3, %v4850_v60  ;;  %v1814_v36 = vpop.f32.mrb[57].mxu0  ;;  %v1887_v53 = vpop.f32.mrb[57].mxu1 }
 0x94b   :  { %v4901_v15 = vadd.f32 %v1814_v36, %v4858_v61  ;;  %v4904_v34 = vadd.f32 %v1887_v53, %v4862_v17  ;;  %v1816_v25 = vpop.f32.mrb[58].mxu0  ;;  %v1889_v14 = vpop.f32.mrb[58].mxu1 }
 0x94c   :  { %5776 = vst [vmem:[#allocation41_spill] sm:$0xff] %v4898_v51  ;;  %v1817_v18 = vadd.f32 %v1816_v25, %v4846_v9  ;;  %v4908_v8 = vadd.f32 %v1889_v14, %v4850_v60  ;;  %v1818_v40 = vpop.f32.mrb[59].mxu0  ;;  %v1891_v1 = vpop.f32.mrb[59].mxu1  ;;  %v4912_v3 = vsel %vm153_vm1, %v1807_v52, %v1813_v45 }
 0x94d   :  { %5777 = vst [vmem:[#allocation42_spill] sm:$0xff] %v4901_v15  ;;  %5778 = vst [vmem:[#allocation31_spill] sm:$0xff] %v4904_v34  ;;  %v4919_v53 = vadd.f32 %v1818_v40, %v4858_v61  ;;  %v4922_v23 = vadd.f32 %v1891_v1, %v4862_v17  ;;  %v4942_v1 = vsel %vm153_vm1, %v1813_v45, %v1807_v52 }
 0x94e   :  { %5780 = vst [vmem:[#allocation52_spill] sm:$0xff] %v4912_v3  ;;  %v4934_v3 = vsel %vm153_vm1, %v1803_v33, %v1817_v18  ;;  %5783 = vst [vmem:[#allocation47_spill] sm:$0xff] %v4942_v1  ;;  %v4966_v14 = vsel %vm153_vm1, %v1817_v18, %v1803_v33  ;;  %v1793_v33 = vadd.f32 %v4840_v46, %v4846_v9 }
 0x94f   :  { %5781 = vst [vmem:[#allocation44_spill] sm:$0xff] %v4919_v53  ;;  %5782 = vst [vmem:[#allocation27_spill] sm:$0xff] %v4922_v23  ;;  %v4984_v18 = vadd.f32 %v4842_v62, %v4850_v60  ;;  %v4992_v34 = vadd.f32 %v4852_v16, %v4858_v61  ;;  %v4996_v52 = vadd.f32 %v4854_v49, %v4862_v17 }
 0x950   :  { %5784 = vst [vmem:[#allocation28_spill] sm:$0xff] %v4966_v14 }
 0x951   :  { %v1822_v45 = vpop.f32.mrb[60].mxu0  ;;  %v1895_v40 = vpop.f32.mrb[60].mxu1  ;;  %5785 = vst [vmem:[#allocation48_spill] sm:$0xff] %v4984_v18  ;;  %5787 = vst [vmem:[#allocation53_spill] sm:$0xff] %v4992_v34 }
 0x952   :  { %v1823_v25 = vadd.f32 %v1822_v45, %v4846_v9  ;;  %v4988_v14 = vadd.f32 %v1895_v40, %v4850_v60  ;;  %v1824_v36 = vpop.f32.mrb[61].mxu0  ;;  %v1897_v1 = vpop.f32.mrb[61].mxu1  ;;  %5788 = vst [vmem:[#allocation49_spill] sm:$0xff] %v4996_v52 }
 0x953   :  { %v4999_v46 = vadd.f32 %v1824_v36, %v4858_v61  ;;  %v5002_v62 = vadd.f32 %v1897_v1, %v4862_v17  ;;  %v1826_v45 = vpop.f32.mrb[62].mxu0  ;;  %v1899_v27 = vpop.f32.mrb[62].mxu1 }
 0x954   :  { %5786 = vst [vmem:[#allocation30_spill] sm:$0xff] %v4988_v14  ;;  %v1827_v40 = vadd.f32 %v1826_v45, %v4846_v9  ;;  %v5006_v15 = vadd.f32 %v1899_v27, %v4850_v60  ;;  %v1828_v6 = vpop.f32.mrb[63].mxu0  ;;  %v1901_v16 = vpop.f32.mrb[63].mxu1  ;;  %v5011_v49 = vsel %vm153_vm1, %v4865_v30, %v1823_v25 }
 0x955   :  { %5789 = vst [vmem:[#allocation43_spill] sm:$0xff] %v4999_v46  ;;  %5790 = vst [vmem:[#allocation50_spill] sm:$0xff] %v5002_v62  ;;  %v5018_v1 = vadd.f32 %v1828_v6, %v4858_v61  ;;  %v5021_v9 = vadd.f32 %v1901_v16, %v4862_v17  ;;  %v5040_v17 = vsel %vm153_vm1, %v1823_v25, %v4865_v30 }
 0x956   :  { %5791 = vst [vmem:[#allocation45_spill] sm:$0xff] %v5006_v15  ;;  %v1904_v45 = vsel %vm153_vm1, %v1793_v33, %v1827_v40  ;;  %v1906_v61 = vsel %vm4071_vm2, %v4984_v18, %v5006_v15  ;;  %5794 = vst [vmem:[#allocation26_spill] sm:$0xff] %v5040_v17  ;;  %v5064_v6 = vsel %vm153_vm1, %v1827_v40, %v1793_v33 }
 0x957   :  { %5792 = vst [vmem:[#allocation51_spill] sm:$0xff] %v5018_v1  ;;  %5793 = vst [vmem:[#allocation46_spill] sm:$0xff] %v5021_v9  ;;  %v1905_v16 = vsel %vm4075_vm3, %v4992_v34, %v5018_v1  ;;  %v1907_v27 = vsel %vm4079_vm4, %v4996_v52, %v5021_v9 }
 0x958   :  { %5795 = vst [vmem:[#allocation29_spill] sm:$0xff] %v5064_v6 }
 0x959   :  { %v2102_v25 = vpop.f32.mrb[64].mxu0  ;;  %v2143_v17 = vpop.f32.mrb[64].mxu1 }
 0x95a   :  { %v2150_v39 = vadd.f32 %v2102_v25, %v1904_v45  ;;  %v2152_v33 = vadd.f32 %v2143_v17, %v1906_v61  ;;  %v2104_v40 = vpop.f32.mrb[65].mxu0  ;;  %v2145_v6 = vpop.f32.mrb[65].mxu1 }
 0x95b   :  { %v2151_v51 = vadd.f32 %v2104_v40, %v1905_v16  ;;  %v2153_v24 = vadd.f32 %v2145_v6, %v1907_v27  ;;  %v2106_v23 = vpop.f32.mrb[66].mxu0  ;;  %v2147_v60 = vpop.f32.mrb[66].mxu1  ;;  %v5801_v6 = vld [vmem:[#allocation22_spill] sm:$0xff]  ;;  %v5803_v40 = vsel %vm4071_vm2, %v4868_v32, %v4988_v14 }
 0x95c   :  { %v2154_v18 = vmul.f32 0.5, %v2150_v39  ;;  %v2107_v15 = vpop.f32.mrb[67].mxu0  ;;  %v2148_v63 = vpop.f32.mrb[67].mxu1  ;;  %v5800_v60 = vld [vmem:[#allocation39_spill] sm:$0xff] }
 0x95d   :  { %v2158_v53 = vmul.f32 0.5, %v2151_v51  ;;  %v2163_v36 = vmul.f32 0.5, %v2153_v24  ;;  %v5796_v24 = vld [vmem:[#allocation24_spill] sm:$0xff] }
 0x95e   :  { %3379 = vtanh.f32 %v2154_v18 }
 0x95f   :  { %3381 = vtanh.f32 %v2158_v53 }
 0x960   :  { %3383 = vtanh.f32 %v2152_v33 }
 0x961   :  { %3385 = vtanh.f32 %v2163_v36  ;;  %v5798_v36 = vld [vmem:[#allocation20_spill] sm:$0xff] }
 0x968   :  { %v3380_v34 = vpop.eup %3379 }
 0x969   :  { %v3382_v30 = vpop.eup %3381  ;;  %v2156_v52 = vmul.f32 0.5, %v3380_v34 }
 0x96a   :  { %v2160_v9 = vmul.f32 0.5, %v3382_v30  ;;  %v3384_v61 = vpop.eup %3383  ;;  %v5802_v30 = vld [vmem:[#allocation23_spill] sm:$0xff] }
 0x96b   :  { %v2157_v45 = vadd.f32 0.5, %v2156_v52  ;;  %v3386_v63 = vpop.eup %3385  ;;  %v5797_v52 = vld [vmem:[#allocation25_spill] sm:$0xff] }
 0x96c   :  { %v2161_v17 = vadd.f32 0.5, %v2160_v9  ;;  %v2165_v51 = vmul.f32 0.5, %v3386_v63  ;;  %v5799_v9 = vld [vmem:[#allocation21_spill] sm:$0xff]  ;;  %v5805_v63 = vsel %vm4079_vm4, %v4874_v56, %v5002_v62 }
 0x96d   :  { %v2168_v16 = vmul.f32 %v3384_v61, %v2157_v45 }
 0x96e   :  { %v2167_v27 = vmul.f32 0.0, %v2161_v17  ;;  %v2166_v15 = vadd.f32 0.5, %v2165_v51 }
 0x970   :  { %v5078_v23 = vadd.f32 %v2168_v16, %v2167_v27  ;;  %v5804_v16 = vsel %vm4075_vm3, %v4871_v47, %v4999_v46 }
 0x972   :  { %3387 = vtanh.f32 %v5078_v23 }
 0x97c   :  { %v3388_v53 = vpop.eup %3387 }
 0x97d   :  { %v2171_v18 = vmul.f32 %v3388_v53, %v2166_v15 }
 0x97f   :  { %2172 = vst.msk [vmem:[#allocation11] sm:$0xff] %vm698_vm5, %v2171_v18  ;;  %v2178_v34 = vpack.c.bf16 %v2171_v18, %v2171_v18 }
 0x980   :  { %2173 = vst.msk [vmem:[#allocation11 + $0x38] sm:$0xff] %vm701_vm6, %v2171_v18 }
 0x981   :  { %2212 = vmatmul.mubr.bf16.vlgmr.msra.gmra.mrb[68].mxu0 %v2178_v34  ;;  %2253 = vmatmul.mubr.bf16.vlgmr.msra.gmra.mrb[68].mxu1 %v2178_v34 }
 0x982   :  { %2291 = vmatpush1.bf16.msra.mxu0 %v4699_v50  ;;  %2332 = vmatpush1.bf16.msra.mxu1 %v4701_v2 }
 0x983   :  { %2292 = vmatprep.subr.bf16.mxu0 %v4703_v22  ;;  %2333 = vmatprep.subr.bf16.mxu1 %v4705_v20 }
 0x984   :  { %2322 = vmatprep.mubr.bf16.mxu0 %v5701_v57  ;;  %2363 = vmatprep.mubr.bf16.mxu1 %v5701_v57 }
 0x986   :  { %2293 = vmatpush1.bf16.msra.mxu0 %v4709_v12  ;;  %2334 = vmatpush1.bf16.msra.mxu1 %v4711_v21 }
 0x987   :  { %2294 = vmatprep.subr.bf16.mxu0 %v4715_v0  ;;  %2335 = vmatprep.subr.bf16.mxu1 %v4717_v13 }
 0x98a   :  { %2295 = vmatpush1.bf16.msra.mxu0 %v4723_v19  ;;  %2336 = vmatpush1.bf16.msra.mxu1 %v4725_v26 }
 0x98b   :  { %2296 = vmatprep.subr.bf16.mxu0 %v4729_v28  ;;  %2337 = vmatprep.subr.bf16.mxu1 %v4731_v29 }
 0x98e   :  { %2297 = vmatpush1.bf16.msra.mxu0 %v4735_v37  ;;  %2338 = vmatpush1.bf16.msra.mxu1 %v4737_v38 }
 0x98f   :  { %2298 = vmatprep.subr.bf16.mxu0 %v4741_v41  ;;  %2339 = vmatprep.subr.bf16.mxu1 %v4743_v44 }
 0x992   :  { %2299 = vmatpush1.bf16.msra.mxu0 %v4749_v54  ;;  %2340 = vmatpush1.bf16.msra.mxu1 %v4751_v42 }
 0x993   :  { %2300 = vmatprep.subr.bf16.mxu0 %v4755_v35  ;;  %2341 = vmatprep.subr.bf16.mxu1 %v4757_v31 }
 0x996   :  { %2301 = vmatpush1.bf16.msra.mxu0 %v4761_v55  ;;  %2342 = vmatpush1.bf16.msra.mxu1 %v4763_v11 }
 0x997   :  { %2302 = vmatprep.subr.bf16.mxu0 %v4767_v7  ;;  %2343 = vmatprep.subr.bf16.mxu1 %v4769_v48 }
 0x99a   :  { %2303 = vmatpush1.bf16.msra.mxu0 %v4775_v4  ;;  %2344 = vmatpush1.bf16.msra.mxu1 %v5796_v24 }
 0x99b   :  { %2304 = vmatprep.subr.bf16.mxu0 %v5797_v52  ;;  %2345 = vmatprep.subr.bf16.mxu1 %v5798_v36 }
 0x99e   :  { %2305 = vmatpush1.bf16.msra.mxu0 %v5799_v9  ;;  %2346 = vmatpush1.bf16.msra.mxu1 %v5800_v60 }
 0x99f   :  { %2401 = vmatprep.subr.bf16.mxu0 %v5801_v6  ;;  %2442 = vmatprep.subr.bf16.mxu1 %v5802_v30 }
 0xa54   :  { %v2213_v25 = vpop.f32.mrb[68].mxu0  ;;  %v2254_v39 = vpop.f32.mrb[68].mxu1 }
 0xa55   :  { %v2261_v33 = vadd.f32 %v2213_v25, %v5011_v49  ;;  %v2263_v45 = vadd.f32 %v2254_v39, %v5803_v40  ;;  %v2215_v61 = vpop.f32.mrb[69].mxu0  ;;  %v2256_v17 = vpop.f32.mrb[69].mxu1 }
 0xa56   :  { %v2262_v27 = vadd.f32 %v2215_v61, %v5804_v16  ;;  %v2264_v49 = vadd.f32 %v2256_v17, %v5805_v63  ;;  %v2217_v51 = vpop.f32.mrb[70].mxu0  ;;  %v2258_v15 = vpop.f32.mrb[70].mxu1 }
 0xa57   :  { %v2265_v53 = vmul.f32 0.5, %v2261_v33  ;;  %v2218_v18 = vpop.f32.mrb[71].mxu0  ;;  %v2259_v34 = vpop.f32.mrb[71].mxu1 }
 0xa58   :  { %v2269_v25 = vmul.f32 0.5, %v2262_v27  ;;  %v2274_v39 = vmul.f32 0.5, %v2264_v49  ;;  %v5807_v18 = vld [vmem:[#allocation44_spill] sm:$0xff] }
 0xa59   :  { %3389 = vtanh.f32 %v2265_v53  ;;  %v5808_v34 = vsel %vm4075_vm3, %v4881_v58, %v5807_v18 }
 0xa5a   :  { %3391 = vtanh.f32 %v2269_v25 }
 0xa5b   :  { %3393 = vtanh.f32 %v2263_v45 }
 0xa5c   :  { %3395 = vtanh.f32 %v2274_v39  ;;  %v5809_v39 = vld [vmem:[#allocation33_spill] sm:$0xff] }
 0xa63   :  { %v3390_v40 = vpop.eup %3389 }
 0xa64   :  { %v3392_v1 = vpop.eup %3391  ;;  %v2267_v47 = vmul.f32 0.5, %v3390_v40  ;;  %v5810_v40 = vld [vmem:[#allocation27_spill] sm:$0xff] }
 0xa65   :  { %v2271_v61 = vmul.f32 0.5, %v3392_v1  ;;  %v3394_v46 = vpop.eup %3393 }
 0xa66   :  { %v2268_v16 = vadd.f32 0.5, %v2267_v47  ;;  %v3396_v33 = vpop.eup %3395 }
 0xa67   :  { %v2272_v32 = vadd.f32 0.5, %v2271_v61  ;;  %v2276_v27 = vmul.f32 0.5, %v3396_v33  ;;  %v5811_v61 = vsel %vm4079_vm4, %v5809_v39, %v5810_v40 }
 0xa68   :  { %v2279_v56 = vmul.f32 %v3394_v46, %v2268_v16  ;;  %v5806_v46 = vsel %vm4071_vm2, %v4878_v43, %v4908_v8 }
 0xa69   :  { %v2278_v17 = vmul.f32 %v2272_v32, %v5078_v23  ;;  %v2277_v51 = vadd.f32 0.5, %v2276_v27 }
 0xa6b   :  { %v5134_v63 = vadd.f32 %v2279_v56, %v2278_v17 }
 0xa6d   :  { %3397 = vtanh.f32 %v5134_v63 }
 0xa77   :  { %v3398_v45 = vpop.eup %3397 }
 0xa78   :  { %v2282_v49 = vmul.f32 %v3398_v45, %v2277_v51 }
 0xa7a   :  { %2283 = vst.msk [vmem:[#allocation11 + $0x8] sm:$0xff] %vm698_vm5, %v2282_v49  ;;  %v2289_v1 = vpack.c.bf16 %v2282_v49, %v2282_v49 }
 0xa7b   :  { %2284 = vst.msk [vmem:[#allocation11 + $0x30] sm:$0xff] %vm701_vm6, %v2282_v49 }
 0xa7c   :  { %2323 = vmatmul.mubr.bf16.vlgmr.msra.gmra.mrb[72].mxu0 %v2289_v1  ;;  %2364 = vmatmul.mubr.bf16.vlgmr.msra.gmra.mrb[72].mxu1 %v2289_v1 }
 0xa7d   :  { %2402 = vmatpush1.bf16.msra.mxu0 %v4699_v50  ;;  %2443 = vmatpush1.bf16.msra.mxu1 %v4701_v2 }
 0xa7e   :  { %2403 = vmatprep.subr.bf16.mxu0 %v4703_v22  ;;  %2444 = vmatprep.subr.bf16.mxu1 %v4705_v20 }
 0xa7f   :  { %2433 = vmatprep.mubr.bf16.mxu0 %v5701_v57  ;;  %2474 = vmatprep.mubr.bf16.mxu1 %v5701_v57 }
 0xa81   :  { %2404 = vmatpush1.bf16.msra.mxu0 %v4709_v12  ;;  %2445 = vmatpush1.bf16.msra.mxu1 %v4711_v21 }
 0xa82   :  { %2405 = vmatprep.subr.bf16.mxu0 %v4715_v0  ;;  %2446 = vmatprep.subr.bf16.mxu1 %v4717_v13 }
 0xa85   :  { %2406 = vmatpush1.bf16.msra.mxu0 %v4723_v19  ;;  %2447 = vmatpush1.bf16.msra.mxu1 %v4725_v26 }
 0xa86   :  { %2407 = vmatprep.subr.bf16.mxu0 %v4729_v28  ;;  %2448 = vmatprep.subr.bf16.mxu1 %v4731_v29 }
 0xa89   :  { %2408 = vmatpush1.bf16.msra.mxu0 %v4735_v37  ;;  %2449 = vmatpush1.bf16.msra.mxu1 %v4737_v38 }
 0xa8a   :  { %2409 = vmatprep.subr.bf16.mxu0 %v4741_v41  ;;  %2450 = vmatprep.subr.bf16.mxu1 %v4743_v44 }
 0xa8d   :  { %2410 = vmatpush1.bf16.msra.mxu0 %v4749_v54  ;;  %2451 = vmatpush1.bf16.msra.mxu1 %v4751_v42 }
 0xa8e   :  { %2411 = vmatprep.subr.bf16.mxu0 %v4755_v35  ;;  %2452 = vmatprep.subr.bf16.mxu1 %v4757_v31 }
 0xa91   :  { %2412 = vmatpush1.bf16.msra.mxu0 %v4761_v55  ;;  %2453 = vmatpush1.bf16.msra.mxu1 %v4763_v11 }
 0xa92   :  { %2413 = vmatprep.subr.bf16.mxu0 %v4767_v7  ;;  %2454 = vmatprep.subr.bf16.mxu1 %v4769_v48 }
 0xa95   :  { %2414 = vmatpush1.bf16.msra.mxu0 %v4775_v4  ;;  %2455 = vmatpush1.bf16.msra.mxu1 %v5796_v24 }
 0xa96   :  { %2415 = vmatprep.subr.bf16.mxu0 %v5797_v52  ;;  %2456 = vmatprep.subr.bf16.mxu1 %v5798_v36 }
 0xa99   :  { %2416 = vmatpush1.bf16.msra.mxu0 %v5799_v9  ;;  %2457 = vmatpush1.bf16.msra.mxu1 %v5800_v60 }
 0xa9a   :  { %2512 = vmatprep.subr.bf16.mxu0 %v5801_v6  ;;  %2553 = vmatprep.subr.bf16.mxu1 %v5802_v30 }
 0xb4f   :  { %v2324_v32 = vpop.f32.mrb[72].mxu0  ;;  %v2365_v47 = vpop.f32.mrb[72].mxu1 }
 0xb50   :  { %v2372_v56 = vadd.f32 %v2324_v32, %v4934_v3  ;;  %v2374_v23 = vadd.f32 %v2365_v47, %v5806_v46  ;;  %v2326_v15 = vpop.f32.mrb[73].mxu0  ;;  %v2367_v53 = vpop.f32.mrb[73].mxu1 }
 0xb51   :  { %v2373_v25 = vadd.f32 %v2326_v15, %v5808_v34  ;;  %v2375_v3 = vadd.f32 %v2367_v53, %v5811_v61  ;;  %v2328_v16 = vpop.f32.mrb[74].mxu0  ;;  %v2369_v17 = vpop.f32.mrb[74].mxu1 }
 0xb52   :  { %v2376_v33 = vmul.f32 0.5, %v2372_v56  ;;  %v2329_v27 = vpop.f32.mrb[75].mxu0  ;;  %v2370_v51 = vpop.f32.mrb[75].mxu1 }
 0xb53   :  { %v2380_v45 = vmul.f32 0.5, %v2373_v25  ;;  %v2385_v49 = vmul.f32 0.5, %v2375_v3  ;;  %v5813_v27 = vld [vmem:[#allocation36_spill] sm:$0xff]  ;;  %v5814_v51 = vld [vmem:[#allocation41_spill] sm:$0xff] }
 0xb54   :  { %3399 = vtanh.f32 %v2376_v33 }
 0xb55   :  { %3401 = vtanh.f32 %v2380_v45  ;;  %v5815_v45 = vsel %vm4071_vm2, %v5813_v27, %v5814_v51 }
 0xb56   :  { %3403 = vtanh.f32 %v2374_v23 }
 0xb57   :  { %3405 = vtanh.f32 %v2385_v49 }
 0xb5e   :  { %v3400_v1 = vpop.eup %3399 }
 0xb5f   :  { %v3402_v32 = vpop.eup %3401  ;;  %v2378_v47 = vmul.f32 0.5, %v3400_v1 }
 0xb60   :  { %v2382_v46 = vmul.f32 0.5, %v3402_v32  ;;  %v3404_v34 = vpop.eup %3403 }
 0xb61   :  { %v2379_v15 = vadd.f32 0.5, %v2378_v47  ;;  %v3406_v56 = vpop.eup %3405  ;;  %v5816_v47 = vld [vmem:[#allocation34_spill] sm:$0xff] }
 0xb62   :  { %v2383_v62 = vadd.f32 0.5, %v2382_v46  ;;  %v2387_v25 = vmul.f32 0.5, %v3406_v56  ;;  %v5817_v46 = vld [vmem:[#allocation42_spill] sm:$0xff] }
 0xb63   :  { %v2390_v14 = vmul.f32 %v3404_v34, %v2379_v15  ;;  %v5818_v15 = vsel %vm4075_vm3, %v5816_v47, %v5817_v46  ;;  %v5820_v34 = vld [vmem:[#allocation31_spill] sm:$0xff] }
 0xb64   :  { %v2389_v53 = vmul.f32 %v2383_v62, %v5134_v63  ;;  %v2388_v16 = vadd.f32 0.5, %v2387_v25  ;;  %v5812_v63 = vld [vmem:[#allocation52_spill] sm:$0xff] }
 0xb66   :  { %v5190_v61 = vadd.f32 %v2390_v14, %v2389_v53 }
 0xb68   :  { %3407 = vtanh.f32 %v5190_v61 }
 0xb72   :  { %v3408_v23 = vpop.eup %3407 }
 0xb73   :  { %v2393_v3 = vmul.f32 %v3408_v23, %v2388_v16 }
 0xb75   :  { %2394 = vst.msk [vmem:[#allocation11 + $0x10] sm:$0xff] %vm698_vm5, %v2393_v3  ;;  %v2400_v17 = vpack.c.bf16 %v2393_v3, %v2393_v3 }
 0xb76   :  { %2395 = vst.msk [vmem:[#allocation11 + $0x28] sm:$0xff] %vm701_vm6, %v2393_v3 }
 0xb77   :  { %2434 = vmatmul.mubr.bf16.vlgmr.msra.gmra.mrb[76].mxu0 %v2400_v17  ;;  %2475 = vmatmul.mubr.bf16.vlgmr.msra.gmra.mrb[76].mxu1 %v2400_v17 }
 0xb78   :  { %2513 = vmatpush1.bf16.msra.mxu0 %v4699_v50  ;;  %2554 = vmatpush1.bf16.msra.mxu1 %v4701_v2 }
 0xb79   :  { %2514 = vmatprep.subr.bf16.mxu0 %v4703_v22  ;;  %2555 = vmatprep.subr.bf16.mxu1 %v4705_v20 }
 0xb7a   :  { %2544 = vmatprep.mubr.bf16.mxu0 %v5701_v57  ;;  %2585 = vmatprep.mubr.bf16.mxu1 %v5701_v57 }
 0xb7c   :  { %2515 = vmatpush1.bf16.msra.mxu0 %v4709_v12  ;;  %2556 = vmatpush1.bf16.msra.mxu1 %v4711_v21 }
 0xb7d   :  { %2516 = vmatprep.subr.bf16.mxu0 %v4715_v0  ;;  %2557 = vmatprep.subr.bf16.mxu1 %v4717_v13 }
 0xb80   :  { %2517 = vmatpush1.bf16.msra.mxu0 %v4723_v19  ;;  %2558 = vmatpush1.bf16.msra.mxu1 %v4725_v26 }
 0xb81   :  { %2518 = vmatprep.subr.bf16.mxu0 %v4729_v28  ;;  %2559 = vmatprep.subr.bf16.mxu1 %v4731_v29 }
 0xb84   :  { %2519 = vmatpush1.bf16.msra.mxu0 %v4735_v37  ;;  %2560 = vmatpush1.bf16.msra.mxu1 %v4737_v38 }
 0xb85   :  { %2520 = vmatprep.subr.bf16.mxu0 %v4741_v41  ;;  %2561 = vmatprep.subr.bf16.mxu1 %v4743_v44 }
 0xb88   :  { %2521 = vmatpush1.bf16.msra.mxu0 %v4749_v54  ;;  %2562 = vmatpush1.bf16.msra.mxu1 %v4751_v42 }
 0xb89   :  { %2522 = vmatprep.subr.bf16.mxu0 %v4755_v35  ;;  %2563 = vmatprep.subr.bf16.mxu1 %v4757_v31 }
 0xb8c   :  { %2523 = vmatpush1.bf16.msra.mxu0 %v4761_v55  ;;  %2564 = vmatpush1.bf16.msra.mxu1 %v4763_v11 }
 0xb8d   :  { %2524 = vmatprep.subr.bf16.mxu0 %v4767_v7  ;;  %2565 = vmatprep.subr.bf16.mxu1 %v4769_v48 }
 0xb90   :  { %2525 = vmatpush1.bf16.msra.mxu0 %v4775_v4  ;;  %2566 = vmatpush1.bf16.msra.mxu1 %v5796_v24 }
 0xb91   :  { %2526 = vmatprep.subr.bf16.mxu0 %v5797_v52  ;;  %2567 = vmatprep.subr.bf16.mxu1 %v5798_v36 }
 0xb94   :  { %2527 = vmatpush1.bf16.msra.mxu0 %v5799_v9  ;;  %2568 = vmatpush1.bf16.msra.mxu1 %v5800_v60 }
 0xb95   :  { %2623 = vmatprep.subr.bf16.mxu0 %v5801_v6  ;;  %2664 = vmatprep.subr.bf16.mxu1 %v5802_v30  ;;  %v5819_v30 = vld [vmem:[#allocation37_spill] sm:$0xff] }
 0xb96   :  { %v5821_v53 = vsel %vm4079_vm4, %v5819_v30, %v5820_v34 }
 0xc4a   :  { %v2435_v14 = vpop.f32.mrb[76].mxu0  ;;  %v2476_v62 = vpop.f32.mrb[76].mxu1 }
 0xc4b   :  { %v2483_v33 = vadd.f32 %v2435_v14, %v5812_v63  ;;  %v2485_v49 = vadd.f32 %v2476_v62, %v5815_v45  ;;  %v2437_v1 = vpop.f32.mrb[77].mxu0  ;;  %v2478_v32 = vpop.f32.mrb[77].mxu1 }
 0xc4c   :  { %v2484_v6 = vadd.f32 %v2437_v1, %v5818_v15  ;;  %v2486_v56 = vadd.f32 %v2478_v32, %v5821_v53  ;;  %v2439_v25 = vpop.f32.mrb[78].mxu0  ;;  %v2480_v16 = vpop.f32.mrb[78].mxu1 }
 0xc4d   :  { %v2487_v23 = vmul.f32 0.5, %v2483_v33  ;;  %v2440_v3 = vpop.f32.mrb[79].mxu0  ;;  %v2481_v17 = vpop.f32.mrb[79].mxu1 }
 0xc4e   :  { %v2491_v14 = vmul.f32 0.5, %v2484_v6  ;;  %v2496_v62 = vmul.f32 0.5, %v2486_v56  ;;  %v5328_v3 = vld [vmem:[#allocation10 + $0x28] ss:$16 sps:$4 sm:$0xff]   ;;  %v5331_v17 = vld [vmem:[#allocation10 + $0x44] ss:$16 sps:$4 sm:$0xff]  }
 0xc4f   :  { %3409 = vtanh.f32 %v2487_v23  ;;  %v5325_v23 = vld [vmem:[#allocation10 + $0x20] ss:$16 sps:$4 sm:$0xff]  }
 0xc50   :  { %3411 = vtanh.f32 %v2491_v14  ;;  %v5334_v14 = vld [vmem:[#allocation10 + $0x4c] ss:$16 sps:$4 sm:$0xff]  }
 0xc51   :  { %3413 = vtanh.f32 %v2485_v49 }
 0xc52   :  { %3415 = vtanh.f32 %v2496_v62  ;;  %v5337_v62 = vld [vmem:[#allocation10 + $0x40] ss:$16 sps:$4 sm:$0xff]  }
 0xc59   :  { %v3410_v63 = vpop.eup %3409 }
 0xc5a   :  { %v3412_v45 = vpop.eup %3411  ;;  %v2489_v39 = vmul.f32 0.5, %v3410_v63  ;;  %v5340_v63 = vld [vmem:[#allocation10 + $0x48] ss:$16 sps:$4 sm:$0xff]  }
 0xc5b   :  { %v2493_v1 = vmul.f32 0.5, %v3412_v45  ;;  %v3414_v40 = vpop.eup %3413  ;;  %v5343_v45 = vld [vmem:[#allocation10 + $0x64] ss:$16 sps:$4 sm:$0xff]  }
 0xc5c   :  { %v2490_v15 = vadd.f32 0.5, %v2489_v39  ;;  %v3416_v33 = vpop.eup %3415 }
 0xc5d   :  { %v2494_v58 = vadd.f32 0.5, %v2493_v1  ;;  %v2498_v6 = vmul.f32 0.5, %v3416_v33  ;;  %v5346_v1 = vld [vmem:[#allocation10 + $0x6c] ss:$16 sps:$4 sm:$0xff]  }
 0xc5e   :  { %v2501_v18 = vmul.f32 %v3414_v40, %v2490_v15  ;;  %v5349_v15 = vld [vmem:[#allocation10 + $0x60] ss:$16 sps:$4 sm:$0xff]   ;;  %v5358_v33 = vld [vmem:[#allocation10 + $0x8c] ss:$16 sps:$4 sm:$0xff]  }
 0xc5f   :  { %v2500_v32 = vmul.f32 %v2494_v58, %v5190_v61  ;;  %v2499_v25 = vadd.f32 0.5, %v2498_v6  ;;  %v5361_v6 = vld [vmem:[#allocation10 + $0x80] ss:$16 sps:$4 sm:$0xff]  }
 0xc61   :  { %v5246_v53 = vadd.f32 %v2501_v18, %v2500_v32  ;;  %v5352_v32 = vld [vmem:[#allocation10 + $0x68] ss:$16 sps:$4 sm:$0xff]  }
 0xc63   :  { %3417 = vtanh.f32 %v5246_v53 }
 0xc6d   :  { %v3418_v49 = vpop.eup %3417 }
 0xc6e   :  { %v2504_v56 = vmul.f32 %v3418_v49, %v2499_v25  ;;  %v5364_v25 = vld [vmem:[#allocation10 + $0x88] ss:$16 sps:$4 sm:$0xff]   ;;  %v5367_v49 = vld [vmem:[#allocation10 + $0xa4] ss:$16 sps:$4 sm:$0xff]  }
 0xc70   :  { %2505 = vst.msk [vmem:[#allocation11 + $0x18] sm:$0xff] %vm698_vm5, %v2504_v56  ;;  %v2511_v16 = vpack.c.bf16 %v2504_v56, %v2504_v56 }
 0xc71   :  { %2506 = vst.msk [vmem:[#allocation11 + $0x20] sm:$0xff] %vm701_vm6, %v2504_v56  ;;  %v5370_v56 = vld [vmem:[#allocation10 + $0xac] ss:$16 sps:$4 sm:$0xff]  }
 0xc72   :  { %2545 = vmatmul.mubr.bf16.vlgmr.msra.gmra.mrb[80].mxu0 %v2511_v16  ;;  %2586 = vmatmul.mubr.bf16.vlgmr.msra.gmra.mrb[80].mxu1 %v2511_v16  ;;  %v5373_v16 = vld [vmem:[#allocation10 + $0xa0] ss:$16 sps:$4 sm:$0xff]  }
 0xc73   :  { %2624 = vmatpush1.bf16.msra.mxu0 %v4699_v50  ;;  %2665 = vmatpush1.bf16.msra.mxu1 %v4701_v2  ;;  %v5283_v50 = vld [vmem:[#allocation10 + $0x4] ss:$16 sps:$4 sm:$0xff]   ;;  %v5286_v2 = vld [vmem:[#allocation10 + $0xc] ss:$16 sps:$4 sm:$0xff]  }
 0xc74   :  { %2625 = vmatprep.subr.bf16.mxu0 %v4703_v22  ;;  %2666 = vmatprep.subr.bf16.mxu1 %v4705_v20 }
 0xc75   :  { %2655 = vmatprep.mubr.bf16.mxu0 %v5701_v57  ;;  %2696 = vmatprep.mubr.bf16.mxu1 %v5701_v57 }
 0xc77   :  { %2626 = vmatpush1.bf16.msra.mxu0 %v4709_v12  ;;  %2667 = vmatpush1.bf16.msra.mxu1 %v4711_v21  ;;  %v5822_v12 = vld [vmem:[#allocation47_spill] sm:$0xff] }
 0xc78   :  { %2627 = vmatprep.subr.bf16.mxu0 %v4715_v0  ;;  %2668 = vmatprep.subr.bf16.mxu1 %v4717_v13  ;;  %v5823_v0 = vsel %vm4071_vm2, %v5814_v51, %v5813_v27 }
 0xc7b   :  { %2628 = vmatpush1.bf16.msra.mxu0 %v4723_v19  ;;  %2669 = vmatpush1.bf16.msra.mxu1 %v4725_v26 }
 0xc7c   :  { %2629 = vmatprep.subr.bf16.mxu0 %v4729_v28  ;;  %2670 = vmatprep.subr.bf16.mxu1 %v4731_v29  ;;  %v5824_v28 = vsel %vm4075_vm3, %v5817_v46, %v5816_v47  ;;  %v5311_v47 = vld [vmem:[#allocation10] ss:$16 sps:$4 sm:$0xff]   ;;  %v5314_v46 = vld [vmem:[#allocation10 + $0x8] ss:$16 sps:$4 sm:$0xff]  }
 0xc7f   :  { %2630 = vmatpush1.bf16.msra.mxu0 %v4735_v37  ;;  %2671 = vmatpush1.bf16.msra.mxu1 %v4737_v38  ;;  %v5825_v37 = vsel %vm4079_vm4, %v5820_v34, %v5819_v30  ;;  %v5317_v30 = vld [vmem:[#allocation10 + $0x24] ss:$16 sps:$4 sm:$0xff]   ;;  %v5320_v34 = vld [vmem:[#allocation10 + $0x2c] ss:$16 sps:$4 sm:$0xff]  }
 0xc80   :  { %2631 = vmatprep.subr.bf16.mxu0 %v4741_v41  ;;  %2672 = vmatprep.subr.bf16.mxu1 %v4743_v44 }
 0xc83   :  { %2632 = vmatpush1.bf16.msra.mxu0 %v4749_v54  ;;  %2673 = vmatpush1.bf16.msra.mxu1 %v4751_v42 }
 0xc84   :  { %2633 = vmatprep.subr.bf16.mxu0 %v4755_v35  ;;  %2674 = vmatprep.subr.bf16.mxu1 %v4757_v31 }
 0xc87   :  { %2634 = vmatpush1.bf16.msra.mxu0 %v4761_v55  ;;  %2675 = vmatpush1.bf16.msra.mxu1 %v4763_v11 }
 0xc88   :  { %2635 = vmatprep.subr.bf16.mxu0 %v4767_v7  ;;  %2676 = vmatprep.subr.bf16.mxu1 %v4769_v48 }
 0xc8b   :  { %2636 = vmatpush1.bf16.msra.mxu0 %v4775_v4  ;;  %2677 = vmatpush1.bf16.msra.mxu1 %v5796_v24 }
 0xc8c   :  { %2637 = vmatprep.subr.bf16.mxu0 %v5797_v52  ;;  %2678 = vmatprep.subr.bf16.mxu1 %v5798_v36 }
 0xc8f   :  { %2638 = vmatpush1.bf16.msra.mxu0 %v5799_v9  ;;  %2679 = vmatpush1.bf16.msra.mxu1 %v5800_v60 }
 0xc90   :  { %2734 = vmatprep.subr.bf16.mxu0 %v5283_v50  ;;  %2775 = vmatprep.subr.bf16.mxu1 %v5286_v2 }
 0xd45   :  { %v2546_v22 = vpop.f32.mrb[80].mxu0  ;;  %v2587_v20 = vpop.f32.mrb[80].mxu1 }
 0xd46   :  { %v2594_v21 = vadd.f32 %v2546_v22, %v5822_v12  ;;  %v2596_v13 = vadd.f32 %v2587_v20, %v5823_v0  ;;  %v2548_v19 = vpop.f32.mrb[81].mxu0  ;;  %v2589_v26 = vpop.f32.mrb[81].mxu1  ;;  %v5376_v22 = vld [vmem:[#allocation10 + $0xa8] ss:$16 sps:$4 sm:$0xff]   ;;  %v5379_v20 = vld [vmem:[#allocation10 + $0xc4] ss:$16 sps:$4 sm:$0xff]  }
 0xd47   :  { %v2595_v29 = vadd.f32 %v2548_v19, %v5824_v28  ;;  %v2597_v38 = vadd.f32 %v2589_v26, %v5825_v37  ;;  %v2550_v41 = vpop.f32.mrb[82].mxu0  ;;  %v2591_v44 = vpop.f32.mrb[82].mxu1  ;;  %v5382_v12 = vld [vmem:[#allocation10 + $0xcc] ss:$16 sps:$4 sm:$0xff]   ;;  %v5388_v0 = vld [vmem:[#allocation10 + $0xc8] ss:$16 sps:$4 sm:$0xff]  }
 0xd48   :  { %v2598_v54 = vmul.f32 0.5, %v2594_v21  ;;  %v2551_v42 = vpop.f32.mrb[83].mxu0  ;;  %v2592_v35 = vpop.f32.mrb[83].mxu1  ;;  %v5385_v21 = vld [vmem:[#allocation10 + $0xc0] ss:$16 sps:$4 sm:$0xff]   ;;  %v5827_v44 = vsel %vm4071_vm2, %v4908_v8, %v4878_v43 }
 0xd49   :  { %v2602_v31 = vmul.f32 0.5, %v2595_v29  ;;  %v2607_v55 = vmul.f32 0.5, %v2597_v38  ;;  %v5394_v19 = vld [vmem:[#allocation10 + $0xec] ss:$16 sps:$4 sm:$0xff]   ;;  %v5397_v26 = vld [vmem:[#allocation10 + $0xe0] ss:$16 sps:$4 sm:$0xff]  }
 0xd4a   :  { %3419 = vtanh.f32 %v2598_v54  ;;  %v5400_v28 = vld [vmem:[#allocation10 + $0xe8] ss:$16 sps:$4 sm:$0xff]   ;;  %v5826_v38 = vld [vmem:[#allocation28_spill] sm:$0xff] }
 0xd4b   :  { %3421 = vtanh.f32 %v2602_v31  ;;  %v5828_v31 = vld [vmem:[#allocation44_spill] sm:$0xff] }
 0xd4c   :  { %3423 = vtanh.f32 %v2596_v13  ;;  %v5391_v13 = vld [vmem:[#allocation10 + $0xe4] ss:$16 sps:$4 sm:$0xff]  }
 0xd4d   :  { %3425 = vtanh.f32 %v2607_v55  ;;  %v5829_v55 = vld [vmem:[#allocation35_spill] sm:$0xff] }
 0xd54   :  { %v3420_v11 = vpop.eup %3419 }
 0xd55   :  { %v3422_v7 = vpop.eup %3421  ;;  %v2600_v48 = vmul.f32 0.5, %v3420_v11  ;;  %v5830_v11 = vsel %vm4075_vm3, %v5828_v31, %v5829_v55 }
 0xd56   :  { %v2604_v4 = vmul.f32 0.5, %v3422_v7  ;;  %v3424_v24 = vpop.eup %3423  ;;  %v5832_v7 = vld [vmem:[#allocation33_spill] sm:$0xff] }
 0xd57   :  { %v2601_v58 = vadd.f32 0.5, %v2600_v48  ;;  %v3426_v18 = vpop.eup %3425 }
 0xd58   :  { %v2605_v52 = vadd.f32 0.5, %v2604_v4  ;;  %v2609_v39 = vmul.f32 0.5, %v3426_v18 }
 0xd59   :  { %v2612_v36 = vmul.f32 %v3424_v24, %v2601_v58 }
 0xd5a   :  { %v2611_v9 = vmul.f32 %v2605_v52, %v5246_v53  ;;  %v2610_v40 = vadd.f32 0.5, %v2609_v39  ;;  %v5355_v53 = vld [vmem:[#allocation10 + $0x84] ss:$16 sps:$4 sm:$0xff]  }
 0xd5c   :  { %v5306_v60 = vadd.f32 %v2612_v36, %v2611_v9 }
 0xd5e   :  { %3427 = vtanh.f32 %v5306_v60 }
 0xd68   :  { %v3428_v61 = vpop.eup %3427 }
 0xd69   :  { %v2615_v27 = vmul.f32 %v3428_v61, %v2610_v40 }
 0xd6b   :  { %2616 = vst.msk [vmem:[#allocation11 + $0x20] sm:$0xff] %vm698_vm5, %v2615_v27  ;;  %v2622_v51 = vpack.c.bf16 %v2615_v27, %v2615_v27 }
 0xd6c   :  { %2617 = vst.msk [vmem:[#allocation11 + $0x18] sm:$0xff] %vm701_vm6, %v2615_v27 }
 0xd6d   :  { %2656 = vmatmul.mubr.bf16.vlgmr.msra.gmra.mrb[84].mxu0 %v2622_v51  ;;  %2697 = vmatmul.mubr.bf16.vlgmr.msra.gmra.mrb[84].mxu1 %v2622_v51 }
 0xd6e   :  { %2735 = vmatpush1.bf16.msra.mxu0 %v5311_v47  ;;  %2776 = vmatpush1.bf16.msra.mxu1 %v5314_v46 }
 0xd6f   :  { %2736 = vmatprep.subr.bf16.mxu0 %v5317_v30  ;;  %2777 = vmatprep.subr.bf16.mxu1 %v5320_v34 }
 0xd70   :  { %2766 = vmatprep.mubr.bf16.mxu0 %v5701_v57  ;;  %2807 = vmatprep.mubr.bf16.mxu1 %v5701_v57 }
 0xd72   :  { %2737 = vmatpush1.bf16.msra.mxu0 %v5325_v23  ;;  %2778 = vmatpush1.bf16.msra.mxu1 %v5328_v3 }
 0xd73   :  { %2738 = vmatprep.subr.bf16.mxu0 %v5331_v17  ;;  %2779 = vmatprep.subr.bf16.mxu1 %v5334_v14 }
 0xd76   :  { %2739 = vmatpush1.bf16.msra.mxu0 %v5337_v62  ;;  %2780 = vmatpush1.bf16.msra.mxu1 %v5340_v63 }
 0xd77   :  { %2740 = vmatprep.subr.bf16.mxu0 %v5343_v45  ;;  %2781 = vmatprep.subr.bf16.mxu1 %v5346_v1 }
 0xd7a   :  { %2741 = vmatpush1.bf16.msra.mxu0 %v5349_v15  ;;  %2782 = vmatpush1.bf16.msra.mxu1 %v5352_v32 }
 0xd7b   :  { %2742 = vmatprep.subr.bf16.mxu0 %v5355_v53  ;;  %2783 = vmatprep.subr.bf16.mxu1 %v5358_v33 }
 0xd7e   :  { %2743 = vmatpush1.bf16.msra.mxu0 %v5361_v6  ;;  %2784 = vmatpush1.bf16.msra.mxu1 %v5364_v25 }
 0xd7f   :  { %2744 = vmatprep.subr.bf16.mxu0 %v5367_v49  ;;  %2785 = vmatprep.subr.bf16.mxu1 %v5370_v56 }
 0xd82   :  { %2745 = vmatpush1.bf16.msra.mxu0 %v5373_v16  ;;  %2786 = vmatpush1.bf16.msra.mxu1 %v5376_v22 }
 0xd83   :  { %2746 = vmatprep.subr.bf16.mxu0 %v5379_v20  ;;  %2787 = vmatprep.subr.bf16.mxu1 %v5382_v12 }
 0xd86   :  { %2747 = vmatpush1.bf16.msra.mxu0 %v5385_v21  ;;  %2788 = vmatpush1.bf16.msra.mxu1 %v5388_v0 }
 0xd87   :  { %2748 = vmatprep.subr.bf16.mxu0 %v5391_v13  ;;  %2789 = vmatprep.subr.bf16.mxu1 %v5394_v19 }
 0xd8a   :  { %2749 = vmatpush1.bf16.msra.mxu0 %v5397_v26  ;;  %2790 = vmatpush1.bf16.msra.mxu1 %v5400_v28 }
 0xd8b   :  { %2845 = vmatprep.subr.bf16.mxu0 %v5283_v50  ;;  %2886 = vmatprep.subr.bf16.mxu1 %v5286_v2  ;;  %v5831_v2 = vld [vmem:[#allocation27_spill] sm:$0xff] }
 0xd8c   :  { %v5833_v48 = vsel %vm4079_vm4, %v5831_v2, %v5832_v7 }
 0xe40   :  { %v2657_v29 = vpop.f32.mrb[84].mxu0  ;;  %v2698_v37 = vpop.f32.mrb[84].mxu1 }
 0xe41   :  { %v2705_v41 = vadd.f32 %v2657_v29, %v5826_v38  ;;  %v2707_v54 = vadd.f32 %v2698_v37, %v5827_v44  ;;  %v2659_v42 = vpop.f32.mrb[85].mxu0  ;;  %v2700_v35 = vpop.f32.mrb[85].mxu1 }
 0xe42   :  { %v2706_v50 = vadd.f32 %v2659_v42, %v5830_v11  ;;  %v2708_v4 = vadd.f32 %v2700_v35, %v5833_v48  ;;  %v2661_v58 = vpop.f32.mrb[86].mxu0  ;;  %v2702_v24 = vpop.f32.mrb[86].mxu1 }
 0xe43   :  { %v2709_v52 = vmul.f32 0.5, %v2705_v41  ;;  %v2662_v36 = vpop.f32.mrb[87].mxu0  ;;  %v2703_v8 = vpop.f32.mrb[87].mxu1 }
 0xe44   :  { %v2713_v43 = vmul.f32 0.5, %v2706_v50  ;;  %v2718_v9 = vmul.f32 0.5, %v2708_v4 }
 0xe45   :  { %3429 = vtanh.f32 %v2709_v52 }
 0xe46   :  { %3431 = vtanh.f32 %v2713_v43  ;;  %v5844_v43 = vld [vmem:[#allocation29_spill] sm:$0xff] }
 0xe47   :  { %3433 = vtanh.f32 %v2707_v54 }
 0xe48   :  { %3435 = vtanh.f32 %v2718_v9 }
 0xe4f   :  { %v3430_v18 = vpop.eup %3429 }
 0xe50   :  { %v3432_v39 = vpop.eup %3431  ;;  %v2711_v40 = vmul.f32 0.5, %v3430_v18  ;;  %v5845_v18 = vld [vmem:[#allocation45_spill] sm:$0xff] }
 0xe51   :  { %v2715_v61 = vmul.f32 0.5, %v3432_v39  ;;  %v3434_v51 = vpop.eup %3433  ;;  %v5846_v39 = vld [vmem:[#allocation48_spill] sm:$0xff] }
 0xe52   :  { %v2712_v27 = vadd.f32 0.5, %v2711_v40  ;;  %v3436_v41 = vpop.eup %3435  ;;  %v5847_v40 = vsel %vm4071_vm2, %v5845_v18, %v5846_v39 }
 0xe53   :  { %v2716_v29 = vadd.f32 0.5, %v2715_v61  ;;  %v2720_v42 = vmul.f32 0.5, %v3436_v41  ;;  %v5851_v41 = vld [vmem:[#allocation46_spill] sm:$0xff] }
 0xe54   :  { %v2723_v37 = vmul.f32 %v3434_v51, %v2712_v27 }
 0xe55   :  { %v2722_v38 = vmul.f32 %v2716_v29, %v5306_v60  ;;  %v2721_v35 = vadd.f32 0.5, %v2720_v42  ;;  %v5848_v29 = vld [vmem:[#allocation51_spill] sm:$0xff]  ;;  %v5852_v42 = vld [vmem:[#allocation49_spill] sm:$0xff] }
 0xe57   :  { %v5422_v44 = vadd.f32 %v2723_v37, %v2722_v38  ;;  %v5849_v37 = vld [vmem:[#allocation53_spill] sm:$0xff] }
 0xe58   :  { %v5850_v38 = vsel %vm4075_vm3, %v5848_v29, %v5849_v37 }
 0xe59   :  { %3437 = vtanh.f32 %v5422_v44 }
 0xe63   :  { %v3438_v54 = vpop.eup %3437 }
 0xe64   :  { %v2726_v31 = vmul.f32 %v3438_v54, %v2721_v35  ;;  %v5853_v35 = vsel %vm4079_vm4, %v5851_v41, %v5852_v42 }
 0xe66   :  { %2727 = vst.msk [vmem:[#allocation11 + $0x28] sm:$0xff] %vm698_vm5, %v2726_v31  ;;  %v2733_v55 = vpack.c.bf16 %v2726_v31, %v2726_v31 }
 0xe67   :  { %2728 = vst.msk [vmem:[#allocation11 + $0x10] sm:$0xff] %vm701_vm6, %v2726_v31 }
 0xe68   :  { %2767 = vmatmul.mubr.bf16.vlgmr.msra.gmra.mrb[88].mxu0 %v2733_v55  ;;  %2808 = vmatmul.mubr.bf16.vlgmr.msra.gmra.mrb[88].mxu1 %v2733_v55 }
 0xe69   :  { %2846 = vmatpush1.bf16.msra.mxu0 %v5311_v47  ;;  %2887 = vmatpush1.bf16.msra.mxu1 %v5314_v46  ;;  %v5834_v47 = vld [vmem:[#allocation26_spill] sm:$0xff] }
 0xe6a   :  { %2847 = vmatprep.subr.bf16.mxu0 %v5317_v30  ;;  %2888 = vmatprep.subr.bf16.mxu1 %v5320_v34  ;;  %v5835_v30 = vld [vmem:[#allocation30_spill] sm:$0xff]  ;;  %v5836_v34 = vld [vmem:[#allocation40_spill] sm:$0xff] }
 0xe6b   :  { %2877 = vmatprep.mubr.bf16.mxu0 %v5701_v57  ;;  %2918 = vmatprep.mubr.bf16.mxu1 %v5701_v57 }
 0xe6d   :  { %2848 = vmatpush1.bf16.msra.mxu0 %v5325_v23  ;;  %2889 = vmatpush1.bf16.msra.mxu1 %v5328_v3  ;;  %v5837_v23 = vsel %vm4071_vm2, %v5835_v30, %v5836_v34 }
 0xe6e   :  { %2849 = vmatprep.subr.bf16.mxu0 %v5331_v17  ;;  %2890 = vmatprep.subr.bf16.mxu1 %v5334_v14 }
 0xe71   :  { %2850 = vmatpush1.bf16.msra.mxu0 %v5337_v62  ;;  %2891 = vmatpush1.bf16.msra.mxu1 %v5340_v63  ;;  %v5838_v62 = vld [vmem:[#allocation43_spill] sm:$0xff]  ;;  %v5839_v63 = vld [vmem:[#allocation38_spill] sm:$0xff] }
 0xe72   :  { %2851 = vmatprep.subr.bf16.mxu0 %v5343_v45  ;;  %2892 = vmatprep.subr.bf16.mxu1 %v5346_v1  ;;  %v5840_v45 = vsel %vm4075_vm3, %v5838_v62, %v5839_v63 }
 0xe75   :  { %2852 = vmatpush1.bf16.msra.mxu0 %v5349_v15  ;;  %2893 = vmatpush1.bf16.msra.mxu1 %v5352_v32  ;;  %v5841_v15 = vld [vmem:[#allocation50_spill] sm:$0xff]  ;;  %v5842_v32 = vld [vmem:[#allocation32_spill] sm:$0xff] }
 0xe76   :  { %2853 = vmatprep.subr.bf16.mxu0 %v5355_v53  ;;  %2894 = vmatprep.subr.bf16.mxu1 %v5358_v33  ;;  %v5843_v53 = vsel %vm4079_vm4, %v5841_v15, %v5842_v32 }
 0xe79   :  { %2854 = vmatpush1.bf16.msra.mxu0 %v5361_v6  ;;  %2895 = vmatpush1.bf16.msra.mxu1 %v5364_v25 }
 0xe7a   :  { %2855 = vmatprep.subr.bf16.mxu0 %v5367_v49  ;;  %2896 = vmatprep.subr.bf16.mxu1 %v5370_v56 }
 0xe7d   :  { %2856 = vmatpush1.bf16.msra.mxu0 %v5373_v16  ;;  %2897 = vmatpush1.bf16.msra.mxu1 %v5376_v22 }
 0xe7e   :  { %2857 = vmatprep.subr.bf16.mxu0 %v5379_v20  ;;  %2898 = vmatprep.subr.bf16.mxu1 %v5382_v12 }
 0xe81   :  { %2858 = vmatpush1.bf16.msra.mxu0 %v5385_v21  ;;  %2899 = vmatpush1.bf16.msra.mxu1 %v5388_v0 }
 0xe82   :  { %2859 = vmatprep.subr.bf16.mxu0 %v5391_v13  ;;  %2900 = vmatprep.subr.bf16.mxu1 %v5394_v19 }
 0xe85   :  { %2860 = vmatpush1.bf16.msra.mxu0 %v5397_v26  ;;  %2901 = vmatpush1.bf16.msra.mxu1 %v5400_v28 }
 0xf3b   :  { %v2768_v57 = vpop.f32.mrb[88].mxu0  ;;  %v2809_v60 = vpop.f32.mrb[88].mxu1 }
 0xf3c   :  { %v2816_v46 = vadd.f32 %v2768_v57, %v5834_v47  ;;  %v2818_v3 = vadd.f32 %v2809_v60, %v5837_v23  ;;  %v2770_v17 = vpop.f32.mrb[89].mxu0  ;;  %v2811_v14 = vpop.f32.mrb[89].mxu1 }
 0xf3d   :  { %v2817_v1 = vadd.f32 %v2770_v17, %v5840_v45  ;;  %v2819_v33 = vadd.f32 %v2811_v14, %v5843_v53  ;;  %v2772_v6 = vpop.f32.mrb[90].mxu0  ;;  %v2813_v25 = vpop.f32.mrb[90].mxu1 }
 0xf3e   :  { %v2820_v49 = vmul.f32 0.5, %v2816_v46  ;;  %v2773_v56 = vpop.f32.mrb[91].mxu0  ;;  %v2814_v16 = vpop.f32.mrb[91].mxu1 }
 0xf3f   :  { %v2824_v22 = vmul.f32 0.5, %v2817_v1  ;;  %v2829_v20 = vmul.f32 0.5, %v2819_v33 }
 0xf40   :  { %3439 = vtanh.f32 %v2820_v49 }
 0xf41   :  { %3441 = vtanh.f32 %v2824_v22 }
 0xf42   :  { %3443 = vtanh.f32 %v2818_v3 }
 0xf43   :  { %3445 = vtanh.f32 %v2829_v20 }
 0xf4a   :  { %v3440_v12 = vpop.eup %3439 }
 0xf4b   :  { %v3442_v21 = vpop.eup %3441  ;;  %v2822_v0 = vmul.f32 0.5, %v3440_v12 }
 0xf4c   :  { %v2826_v13 = vmul.f32 0.5, %v3442_v21  ;;  %v3444_v26 = vpop.eup %3443 }
 0xf4d   :  { %v2823_v19 = vadd.f32 0.5, %v2822_v0  ;;  %v3446_v7 = vpop.eup %3445 }
 0xf4e   :  { %v2827_v28 = vadd.f32 0.5, %v2826_v13  ;;  %v2831_v48 = vmul.f32 0.5, %v3446_v7 }
 0xf4f   :  { %v2834_v11 = vmul.f32 %v3444_v26, %v2823_v19 }
 0xf50   :  { %v2833_v50 = vmul.f32 %v2827_v28, %v5422_v44  ;;  %v2832_v4 = vadd.f32 0.5, %v2831_v48 }
 0xf52   :  { %v2835_v2 = vadd.f32 %v2834_v11, %v2833_v50 }
 0xf54   :  { %3447 = vtanh.f32 %v2835_v2 }
 0xf5e   :  { %v3448_v58 = vpop.eup %3447 }
 0xf5f   :  { %v2837_v24 = vmul.f32 %v3448_v58, %v2832_v4 }
 0xf61   :  { %2838 = vst.msk [vmem:[#allocation11 + $0x30] sm:$0xff] %vm698_vm5, %v2837_v24  ;;  %v2844_v52 = vpack.c.bf16 %v2837_v24, %v2837_v24 }
 0xf62   :  { %2839 = vst.msk [vmem:[#allocation11 + $0x8] sm:$0xff] %vm701_vm6, %v2837_v24 }
 0xf63   :  { %2878 = vmatmul.mubr.bf16.vlgmr.msra.gmra.mrb[92].mxu0 %v2844_v52  ;;  %2919 = vmatmul.mubr.bf16.vlgmr.msra.gmra.mrb[92].mxu1 %v2844_v52 }
0x1036   :  { %v2879_v36 = vpop.f32.mrb[92].mxu0  ;;  %v2920_v8 = vpop.f32.mrb[92].mxu1 }
0x1037   :  { %v2927_v9 = vadd.f32 %v2879_v36, %v5844_v43  ;;  %v2929_v61 = vadd.f32 %v2920_v8, %v5847_v40  ;;  %v2881_v27 = vpop.f32.mrb[93].mxu0  ;;  %v2922_v51 = vpop.f32.mrb[93].mxu1 }
0x1038   :  { %v2928_v44 = vadd.f32 %v2881_v27, %v5850_v38  ;;  %v2930_v54 = vadd.f32 %v2922_v51, %v5853_v35  ;;  %v2883_v31 = vpop.f32.mrb[94].mxu0  ;;  %v2924_v5 = vpop.f32.mrb[94].mxu1 }
0x1039   :  { %v2931_v55 = vmul.f32 0.5, %v2927_v9  ;;  %v2884_v57 = vpop.f32.mrb[95].mxu0  ;;  %v2925_v60 = vpop.f32.mrb[95].mxu1 }
0x103a   :  { %v2935_v47 = vmul.f32 0.5, %v2928_v44  ;;  %v2940_v10 = vmul.f32 0.5, %v2930_v54 }
0x103b   :  { %3449 = vtanh.f32 %v2931_v55 }
0x103c   :  { %3451 = vtanh.f32 %v2935_v47 }
0x103d   :  { %3453 = vtanh.f32 %v2929_v61 }
0x103e   :  { %3455 = vtanh.f32 %v2940_v10 }
0x1045   :  { %v3450_v46 = vpop.eup %3449 }
0x1046   :  { %v3452_v30 = vpop.eup %3451  ;;  %v2933_v34 = vmul.f32 0.5, %v3450_v46 }
0x1047   :  { %v2937_v23 = vmul.f32 0.5, %v3452_v30  ;;  %v3454_v3 = vpop.eup %3453 }
0x1048   :  { %v2934_v59 = vadd.f32 0.5, %v2933_v34  ;;  %v3456_v45 = vpop.eup %3455 }
0x1049   :  { %v2938_v17 = vadd.f32 0.5, %v2937_v23  ;;  %v2942_v1 = vmul.f32 0.5, %v3456_v45 }
0x104a   :  { %v2945_v14 = vmul.f32 %v3454_v3, %v2934_v59 }
0x104b   :  { %v2944_v62 = vmul.f32 %v2938_v17, %v2835_v2  ;;  %v2943_v15 = vadd.f32 0.5, %v2942_v1 }
0x104d   :  { %v2946_v63 = vadd.f32 %v2945_v14, %v2944_v62 }
0x104f   :  { %2962 = vrot.lane.b32.xlu1 %v2946_v63, %s3719_s3  ;;  %3457 = vtanh.f32 %v2946_v63  ;;  %2954 = vst.msk [vmem:[#allocation14 + $0x10] sm:$0xff] %vm698_vm5, %v2946_v63 }
0x1059   :  { %v3458_v32 = vpop.eup %3457 }
0x105a   :  { %v2948_v53 = vmul.f32 %v3458_v32, %v2943_v15 }
0x105c   :  { %2956 = vrot.lane.b32.xlu0 %v2948_v53, %s3719_s3  ;;  %2949 = vst.msk [vmem:[#allocation11 + $0x38] sm:$0xff] %vm698_vm5, %v2948_v53  ;;  %2952 = vst.msk [vmem:[#allocation12 + $0x10] sm:$0xff] %vm698_vm5, %v2948_v53 }
0x105d   :  { %2950 = vst.msk [vmem:[#allocation11] sm:$0xff] %vm701_vm6, %v2948_v53 }
0x105e   :  { %3644 = shalt.err (!%p3641_p2)
}
0x105f   :  { %s3645_s15 = scalar_lea.hbm %s5561_s7, 1024 }
0x1060   :  { %p3646_p3 = scmp.ne.s32.totalorder %s5561_s7, %s3645_s15  ;;  %p3649_p4 = scmp.lt.u32.totalorder %s3645_s15, %s5561_s7 }
0x1062   :  { %p3651_p5 = pnand %p3649_p4, %p3646_p3 }
0x1064   :  { %3654 = shalt.err (!%p3651_p5)
}
0x1065   :  { %2978 = dma.vmem_to_hbm [thread:$0]  %s2973_s13, 1024, %s5561_s7, [#allocation4], %s3714_s4, %s3714_s4, %s3715_s24  }
0x1066   :  { %s3721_s22 = smov [#allocation12]   ;;  %s3722_s25 = smov [#allocation14]  }
0x1067   :  { %s2984_s23 = sshll.u32 %s3721_s22, 4  ;;  %s2996_s27 = sshll.u32 %s3722_s25, 4  ;;  %s2985_s23 = int_to_ptr.vmem [resolvable:$true] %s2984_s23  ;;  %s5516_s27 = int_to_ptr.vmem [resolvable:$true] %s2996_s27 }
0x1068   :  { %s3655_s28 = scalar_lea.vmem %s2985_s23, 512  ;;  %p3660_p7 = scmp.lt.s32.totalorder %s2985_s23, %s2985_s23 }
0x1069   :  { %p3656_p6 = scmp.ne.s32.totalorder %s2985_s23, %s3655_s28  ;;  %p3661_p8 = scmp.lt.s32.totalorder %s3655_s28, %s3655_s28 }
0x106b   :  { %p3662_p9 = por %p3661_p8, %p3660_p7 }
0x106d   :  { %p3663_p10 = pnand %p3662_p9, %p3656_p6 }
0x10c1   :  { %v2963_v33 = vpop.permute.xlu1 %2962 }
0x10c2   :  { %2966 = vst.msk [vmem:[#allocation14 + $0x18] sm:$0xff] %vm698_vm5, %v2963_v33 }
0x10ce   :  { %v2957_v6 = vpop.permute.xlu0 %2956 }
0x10cf   :  { %2960 = vst.msk [vmem:[#allocation12 + $0x18] sm:$0xff] %vm698_vm5, %v2957_v6 }
0x10d0   :  { %3666 = shalt.err (!%p3663_p10)
}
0x10d1   :  { %s3667_s11 = scalar_lea.hbm %s5562_s8, 512 }
0x10d2   :  { %p3668_p11 = scmp.ne.s32.totalorder %s5562_s8, %s3667_s11  ;;  %p3671_p12 = scmp.lt.u32.totalorder %s3667_s11, %s5562_s8 }
0x10d4   :  { %p3673_p13 = pnand %p3671_p12, %p3668_p11 }
0x10d6   :  { %3676 = shalt.err (!%p3673_p13)
}
0x10d7   :  { %2990 = dma.vmem_to_hbm [thread:$0]  %s2985_s23, 512, %s5562_s8, [#allocation13], %s3714_s4, %s3714_s4, %s3715_s24  }
0x10d8   :  { %s3677_s12 = scalar_lea.vmem %s5516_s27, 512  ;;  %p3682_p1 = scmp.lt.s32.totalorder %s5516_s27, %s5516_s27 }
0x10d9   :  { %p3678_p0 = scmp.ne.s32.totalorder %s5516_s27, %s3677_s12  ;;  %p3683_p2 = scmp.lt.s32.totalorder %s3677_s12, %s3677_s12 }
0x10db   :  { %p3684_p3 = por %p3683_p2, %p3682_p1 }
0x10dd   :  { %p3685_p4 = pnand %p3684_p3, %p3678_p0 }
0x10df   :  { %3688 = shalt.err (!%p3685_p4)
}
0x10e0   :  { %s3689_s1 = scalar_lea.hbm %s5563_s9, 512 }
0x10e1   :  { %p3690_p5 = scmp.ne.s32.totalorder %s5563_s9, %s3689_s1  ;;  %p3693_p6 = scmp.lt.u32.totalorder %s3689_s1, %s5563_s9 }
0x10e3   :  { %p3695_p7 = pnand %p3693_p6, %p3690_p5 }
0x10e5   :  { %3698 = shalt.err (!%p3695_p7)
}
0x10e6   :  { %3002 = dma.vmem_to_hbm [thread:$0]  %s5516_s27, 512, %s5563_s9, [#allocation13], %s3714_s4, %s3714_s4, %s3715_s24  }
0x10e7   :  { %3705 = dma.done.wait [#allocation4], 1024  }
0x10e8   :  { %3706 = vsyncadd [#allocation4], 4294966272 }
0x10e9   :  { %3707 = dma.done.wait [#allocation13], 1024  }
0x10ea   :  { %3708 = vsyncadd [#allocation13], 4294966272 }
0x10eb   :  { %3012 = vsyncpa [#allocation3], 1 }
0x10ec   :  { %3013 = vsyncpa [#allocation6], 1 }
0x10ed   :  { %3014 = vsyncpa [#allocation9], 1 }
0x10ee   :  { %3015 = vsyncpa [#allocation4], 1 }
0x10ef   :  { %3016 = vsyncpa [#allocation13], 1 }

</bundles_post_ra>
